<compile_context>
chip_gen: v7x
topology: tpu7x:2x2x1
jax: 0.10.0
libtpu: 0.0.40
codegen_flags: <defaults>
</compile_context>

<pallas_src>
import jax
import jax.numpy as jnp
from jax import lax
from jax.experimental import pallas as pl
from jax.experimental.pallas import tpu as pltpu


def _round_up(x, m):
    return (x + m - 1) // m * m


def _gate_pad_cols(w, H, Hp):
    """(in, 3H) with gate order [r,z,n] -> (in, 3Hp); each gate zero-padded to Hp."""
    pad = ((0, 0), (0, Hp - H))
    return jnp.concatenate(
        [jnp.pad(w[:, g * H:(g + 1) * H], pad) for g in range(3)], axis=1)


def _fold_input_bias(bih, bhh, H, Hp):
    """r,z columns get b_ih + b_hh; n columns get b_in only (b_hn stays on h path)."""
    pad = ((0, 0), (0, Hp - H))
    return jnp.concatenate([
        jnp.pad(bih[:, :H] + bhh[:, :H], pad),
        jnp.pad(bih[:, H:2 * H] + bhh[:, H:2 * H], pad),
        jnp.pad(bih[:, 2 * H:], pad),
    ], axis=1)


# --------------------------- recurrent Pallas kernel -------------------------
def bigru_kernel(emb_f_ref, emb_b_ref, wih_f_ref, wih_b_ref, bi_f_ref, bi_b_ref,
                 whh_f_ref, whh_b_ref, bhn_f_ref, bhn_b_ref, out_ref, hid_ref):
    tb = pl.program_id(0)
    nT = pl.num_programs(0)
    TT, Bp, _ = emb_f_ref.shape
    Hp = hid_ref.shape[-1]

    @pl.when(tb == 0)
    def _init():
        # Resident (constant-index) outputs: zero once, both directions
        # accumulate, single HBM writeback at the end of the grid.
        out_ref[...] = jnp.zeros_like(out_ref)
        hid_ref[...] = jnp.zeros_like(hid_ref)

    # Loop-invariant broadcasts hoisted out of the per-timestep body
    # (JAX does not CSE broadcast_in_dim).
    bi_f = jnp.broadcast_to(bi_f_ref[...], (Bp, 3 * Hp))
    bi_b = jnp.broadcast_to(bi_b_ref[...], (Bp, 3 * Hp))
    bhn_f = jnp.broadcast_to(bhn_f_ref[...], (Bp, Hp))
    bhn_b = jnp.broadcast_to(bhn_b_ref[...], (Bp, Hp))

    t0_f = tb * TT                 # global time offset of the forward block
    t0_b = (nT - 1 - tb) * TT      # global time offset of the backward block

    def gru_step(x, h, wih_ref, bi, whh_ref, bhn):
        # Input projection (bf16 MXU, f32 accumulate): per-timestep parallel
        # work that hides under the serial h-path.  Biases pre-folded
        # (r,z: b_ih + b_hh; n: b_in; b_hn stays on the h path).
        gi = jnp.dot(x, wih_ref[...], preferred_element_type=jnp.float32) + bi
        # Recurrent path stays f32: no bf16 drift compounding through the chain.
        gh = jnp.dot(h, whh_ref[...], preferred_element_type=jnp.float32)
        r = jax.nn.sigmoid(gi[:, :Hp] + gh[:, :Hp])
        z = jax.nn.sigmoid(gi[:, Hp:2 * Hp] + gh[:, Hp:2 * Hp])
        n = jnp.tanh(gi[:, 2 * Hp:] + r * (gh[:, 2 * Hp:] + bhn))
        return (1.0 - z) * n + z * h

    def body(i, carry):
        hf, hb = carry
        j = TT - 1 - i                                  # backward index in block
        hf = gru_step(emb_f_ref[i], hf, wih_f_ref, bi_f, whh_f_ref, bhn_f)
        hb = gru_step(emb_b_ref[j], hb, wih_b_ref, bi_b, whh_b_ref, bhn_b)
        # Fused fwd + bwd output sum, accumulated into the resident block.
        out_ref[t0_f + i] = out_ref[t0_f + i] + hf
        out_ref[t0_b + j] = out_ref[t0_b + j] + hb
        return hf, hb

    # hid_ref doubles as the recurrent carry across grid steps (resident block).
    hf_fin, hb_fin = lax.fori_loop(0, TT, body, (hid_ref[0], hid_ref[1]),
                                   unroll=min(TT, 8))
    hid_ref[0] = hf_fin
    hid_ref[1] = hb_fin


# ------------------------------ wrapper ---------------------------------------
def encoder_forward(src, params, *, time_block=8):
    """src: (T, B) int32 token ids. Returns (outputs (T,B,H), hidden (2,B,H))."""
    T, B = src.shape
    E = params["embed"].shape[1]
    H = params["whh_f"].shape[0]
    Hp = _round_up(H, 128)          # lane-aligned gate width
    Bp = _round_up(B, 8)            # sublane-aligned batch

    # Largest divisor of T <= time_block (never falls back to TT=1 unless T is prime).
    tb_cap = max(1, min(time_block, T))
    TT = max(d for d in range(1, tb_cap + 1) if T % d == 0)
    nT = T // TT

    # ---- plain-JAX glue (off the serial critical path) -----------------------
    emb = jnp.take(params["embed"], src, axis=0)                        # (T,B,E)
    emb = jnp.pad(emb, ((0, 0), (0, Bp - B), (0, 0))).astype(jnp.bfloat16)

    # Gate-aligned input weights (bf16, resident) + folded input-side biases.
    wih_f = _gate_pad_cols(params["wih_f"], H, Hp).astype(jnp.bfloat16)  # (E,3Hp)
    wih_b = _gate_pad_cols(params["wih_b"], H, Hp).astype(jnp.bfloat16)
    bi_f = _fold_input_bias(params["bih_f"], params["bhh_f"], H, Hp)     # (1,3Hp)
    bi_b = _fold_input_bias(params["bih_b"], params["bhh_b"], H, Hp)

    # Recurrent (h-path) weights: row/gate padded, kept f32 (drift-safe).
    def _prep_whh(w):
        return _gate_pad_cols(jnp.pad(w, ((0, Hp - H), (0, 0))), H, Hp)

    whh_f = _prep_whh(params["whh_f"])
    whh_b = _prep_whh(params["whh_b"])
    bhn_f = jnp.pad(params["bhh_f"][:, 2 * H:], ((0, 0), (0, Hp - H)))
    bhn_b = jnp.pad(params["bhh_b"][:, 2 * H:], ((0, 0), (0, Hp - H)))

    def resident(shape):
        # Constant-index (resident) blocks: weights / biases.
        return pl.BlockSpec(shape, lambda tb: (0,) * len(shape))

    # Explicit VMEM budget (streamed inputs double-buffered, outputs resident).
    vmem_bytes = (
        2 * 2 * TT * Bp * E * 2            # emb blocks: 2 dirs x 2 buffers, bf16
        + 2 * 2 * E * 3 * Hp * 2           # W_ih (bf16, default double-buffered)
        + 2 * 2 * Hp * 3 * Hp * 4          # W_hh (f32)
        + 2 * 2 * 4 * Hp * 4               # biases
        + T * Bp * Hp * 4                  # resident fused output
        + 2 * Bp * Hp * 4)                 # resident hidden / carry
    vmem_limit = int(min(max(2 * vmem_bytes, 16 * 1024 * 1024), 64 * 1024 * 1024))

    out, hid = pl.pallas_call(
        bigru_kernel,
        out_shape=(
            jax.ShapeDtypeStruct((T, Bp, Hp), jnp.float32),   # fused fwd+bwd sum
            jax.ShapeDtypeStruct((2, Bp, Hp), jnp.float32),   # final hidden
        ),
        grid_spec=pltpu.PrefetchScalarGridSpec(
            num_scalar_prefetch=0,
            grid=(nT,),
            in_specs=[
                pl.BlockSpec((TT, Bp, E), lambda tb: (tb, 0, 0)),            # emb fwd
                pl.BlockSpec((TT, Bp, E), lambda tb: (nT - 1 - tb, 0, 0)),   # emb bwd
                resident((E, 3 * Hp)), resident((E, 3 * Hp)),                # W_ih f/b
                resident((1, 3 * Hp)), resident((1, 3 * Hp)),                # folded b f/b
                resident((Hp, 3 * Hp)), resident((Hp, 3 * Hp)),              # W_hh f/b
                resident((1, Hp)), resident((1, Hp)),                        # b_hn f/b
            ],
            out_specs=[
                pl.BlockSpec((T, Bp, Hp), lambda tb: (0, 0, 0)),
                pl.BlockSpec((2, Bp, Hp), lambda tb: (0, 0, 0)),
            ],
        ),
        compiler_params=pltpu.CompilerParams(
            dimension_semantics=("arbitrary",),      # time recurrence: sequential
            vmem_limit_bytes=vmem_limit),
    )(emb, emb, wih_f, wih_b, bi_f, bi_b, whh_f, whh_b, bhn_f, bhn_b)

    # nn.GRU dropout acts between layers only -> no-op for n_layers=1.
    outputs = out[:, :B, :H]
    hidden = hid[:, :B, :H]
    return outputs, hidden


# ------------------------- pure-JAX reference ---------------------------------
def _gru_direction_ref(xs, wih, whh, bih, bhh):
    H = whh.shape[0]
    B = xs.shape[1]

    def step(h, xt):
        gi = xt @ wih + bih[0]
        gh = h @ whh + bhh[0]
        i_r, i_z, i_n = gi[:, :H], gi[:, H:2 * H], gi[:, 2 * H:]
        h_r, h_z, h_n = gh[:, :H], gh[:, H:2 * H], gh[:, 2 * H:]
        r = jax.nn.sigmoid(i_r + h_r)
        z = jax.nn.sigmoid(i_z + h_z)
        n = jnp.tanh(i_n + r * h_n)
        h_new = (1.0 - z) * n + z * h
        return h_new, h_new

    h0 = jnp.zeros((B, H), jnp.float32)
    hT, outs = lax.scan(step, h0, xs)
    return outs, hT


def encoder_ref(src, params):
    emb = jnp.take(params["embed"], src, axis=0).astype(jnp.float32)
    out_f, hf = _gru_direction_ref(emb, params["wih_f"], params["whh_f"],
                                   params["bih_f"], params["bhh_f"])
    out_b_rev, hb = _gru_direction_ref(emb[::-1], params["wih_b"], params["whh_b"],
                                       params["bih_b"], params["bhh_b"])
    out_b = out_b_rev[::-1]
    return out_f + out_b, jnp.stack([hf, hb], axis=0)


# ----------------------------------- main --------------------------------------
if __name__ == "__main__":
    input_size = 16    # vocab
    embed_size = 32
    hidden_size = 32
    T, B = 8, 4

    key = jax.random.PRNGKey(0)
    ks = jax.random.split(key, 11)
    k = 1.0 / jnp.sqrt(jnp.float32(hidden_size))

    def uni(kk, shape):
        return jax.random.uniform(kk, shape, jnp.float32, minval=-k, maxval=k)

    params = {
        "embed": jax.random.normal(ks[0], (input_size, embed_size), jnp.float32),
        # forward direction (pre-transposed: (in, 3H)), gate order [r, z, n]
        "wih_f": uni(ks[1], (embed_size, 3 * hidden_size)),
        "whh_f": uni(ks[2], (hidden_size, 3 * hidden_size)),
        "bih_f": uni(ks[3], (1, 3 * hidden_size)),
        "bhh_f": uni(ks[4], (1, 3 * hidden_size)),
        # backward direction
        "wih_b": uni(ks[5], (embed_size, 3 * hidden_size)),
        "whh_b": uni(ks[6], (hidden_size, 3 * hidden_size)),
        "bih_b": uni(ks[7], (1, 3 * hidden_size)),
        "bhh_b": uni(ks[8], (1, 3 * hidden_size)),
    }

    src = jax.random.randint(ks[9], (T, B), 0, input_size, dtype=jnp.int32)

    outputs, hidden = jax.jit(encoder_forward)(src, params)
    outputs = jax.block_until_ready(outputs)
    hidden = jax.block_until_ready(hidden)

    out_ref, hid_ref = encoder_ref(src, params)

    assert outputs.shape == (T, B, hidden_size)
    assert hidden.shape == (2, B, hidden_size)
    assert jnp.allclose(outputs, out_ref, rtol=2e-2, atol=2e-2)
    assert jnp.allclose(hidden, hid_ref, rtol=2e-2, atol=2e-2)

    print("KERNEL_OK")
</pallas_src>

<mosaic_0001>
module attributes {stable_mosaic.version = 11 : i64} {
  func.func @bigru_kernel(%arg0: i32, %arg1: memref<8x8x32xbf16, #tpu.memory_space<vmem>>, %arg2: memref<8x8x32xbf16, #tpu.memory_space<vmem>>, %arg3: memref<32x384xbf16, #tpu.memory_space<vmem>>, %arg4: memref<32x384xbf16, #tpu.memory_space<vmem>>, %arg5: memref<1x384xf32, #tpu.memory_space<vmem>>, %arg6: memref<1x384xf32, #tpu.memory_space<vmem>>, %arg7: memref<128x384xf32, #tpu.memory_space<vmem>>, %arg8: memref<128x384xf32, #tpu.memory_space<vmem>>, %arg9: memref<1x128xf32, #tpu.memory_space<vmem>>, %arg10: memref<1x128xf32, #tpu.memory_space<vmem>>, %arg11: memref<8x8x128xf32, #tpu.memory_space<vmem>>, %arg12: memref<2x8x128xf32, #tpu.memory_space<vmem>>) attributes {dimension_semantics = [#tpu.dimension_semantics<arbitrary>], iteration_bounds = array<i64: 1>, scalar_prefetch = 0 : i64, scratch_operands = 0 : i64, tpu.core_type = #tpu.core_type<tc>, window_params = [{transform_indices = @transform_0, window_bounds = array<i64: 8, 8, 32>}, {transform_indices = @transform_1, window_bounds = array<i64: 8, 8, 32>}, {pipeline_mode = #tpu.pipeline_mode<synchronous>, transform_indices = @transform_2, window_bounds = array<i64: 32, 384>}, {pipeline_mode = #tpu.pipeline_mode<synchronous>, transform_indices = @transform_3, window_bounds = array<i64: 32, 384>}, {pipeline_mode = #tpu.pipeline_mode<synchronous>, transform_indices = @transform_4, window_bounds = array<i64: 1, 384>}, {pipeline_mode = #tpu.pipeline_mode<synchronous>, transform_indices = @transform_5, window_bounds = array<i64: 1, 384>}, {pipeline_mode = #tpu.pipeline_mode<synchronous>, transform_indices = @transform_6, window_bounds = array<i64: 128, 384>}, {pipeline_mode = #tpu.pipeline_mode<synchronous>, transform_indices = @transform_7, window_bounds = array<i64: 128, 384>}, {pipeline_mode = #tpu.pipeline_mode<synchronous>, transform_indices = @transform_8, window_bounds = array<i64: 1, 128>}, {pipeline_mode = #tpu.pipeline_mode<synchronous>, transform_indices = @transform_9, window_bounds = array<i64: 1, 128>}, {pipeline_mode = #tpu.pipeline_mode<synchronous>, transform_indices = @transform_10, window_bounds = array<i64: 8, 8, 128>}, {pipeline_mode = #tpu.pipeline_mode<synchronous>, transform_indices = @transform_11, window_bounds = array<i64: 2, 8, 128>}]} {
    %c0_i32 = arith.constant 0 : i32
    %0 = arith.cmpi eq, %arg0, %c0_i32 : i32
    %1 = arith.extui %0 : i1 to i32
    %c0_i32_0 = arith.constant 0 : i32
    %2 = arith.cmpi ne, %1, %c0_i32_0 : i32
    scf.if %2 {
      %cst_270 = arith.constant 0.000000e+00 : f32
      %756 = vector.broadcast %cst_270 : f32 to vector<8x8x128xf32>
      %c0_271 = arith.constant 0 : index
      %c0_272 = arith.constant 0 : index
      %c0_273 = arith.constant 0 : index
      %757 = vector.load %arg11[%c0_271, %c0_272, %c0_273] : memref<8x8x128xf32, #tpu.memory_space<vmem>>, vector<8x8x128xf32>
      tpu.vector_store %arg11[%c0_271, %c0_272, %c0_273], %756 {strides = array<i32>} : memref<8x8x128xf32, #tpu.memory_space<vmem>>, vector<8x8x128xf32>,
      %cst_274 = arith.constant 0.000000e+00 : f32
      %758 = vector.broadcast %cst_274 : f32 to vector<2x8x128xf32>
      %c0_275 = arith.constant 0 : index
      %c0_276 = arith.constant 0 : index
      %c0_277 = arith.constant 0 : index
      %759 = vector.load %arg12[%c0_275, %c0_276, %c0_277] : memref<2x8x128xf32, #tpu.memory_space<vmem>>, vector<2x8x128xf32>
      tpu.vector_store %arg12[%c0_275, %c0_276, %c0_277], %758 {strides = array<i32>} : memref<2x8x128xf32, #tpu.memory_space<vmem>>, vector<2x8x128xf32>,
    } else {
    }
    %c0 = arith.constant 0 : index
    %c0_1 = arith.constant 0 : index
    %3 = vector.load %arg5[%c0, %c0_1] : memref<1x384xf32, #tpu.memory_space<vmem>>, vector<1x384xf32>
    %4 = vector.shape_cast %3 : vector<1x384xf32> to vector<1x384xf32>
    %5 = vector.broadcast %4 : vector<1x384xf32> to vector<8x384xf32>
    %c0_2 = arith.constant 0 : index
    %c0_3 = arith.constant 0 : index
    %6 = vector.load %arg6[%c0_2, %c0_3] : memref<1x384xf32, #tpu.memory_space<vmem>>, vector<1x384xf32>
    %7 = vector.shape_cast %6 : vector<1x384xf32> to vector<1x384xf32>
    %8 = vector.broadcast %7 : vector<1x384xf32> to vector<8x384xf32>
    %c0_4 = arith.constant 0 : index
    %c0_5 = arith.constant 0 : index
    %9 = vector.load %arg9[%c0_4, %c0_5] : memref<1x128xf32, #tpu.memory_space<vmem>>, vector<1x128xf32>
    %10 = vector.shape_cast %9 : vector<1x128xf32> to vector<1x128xf32>
    %11 = vector.broadcast %10 : vector<1x128xf32> to vector<8x128xf32>
    %c0_6 = arith.constant 0 : index
    %c0_7 = arith.constant 0 : index
    %12 = vector.load %arg10[%c0_6, %c0_7] : memref<1x128xf32, #tpu.memory_space<vmem>>, vector<1x128xf32>
    %13 = vector.shape_cast %12 : vector<1x128xf32> to vector<1x128xf32>
    %14 = vector.broadcast %13 : vector<1x128xf32> to vector<8x128xf32>
    %c8_i32 = arith.constant 8 : i32
    %15 = arith.muli %arg0, %c8_i32 : i32
    %c0_i32_8 = arith.constant 0 : i32
    %16 = arith.subi %c0_i32_8, %arg0 : i32
    %c8_i32_9 = arith.constant 8 : i32
    %17 = arith.muli %16, %c8_i32_9 : i32
    %c0_10 = arith.constant 0 : index
    %c0_11 = arith.constant 0 : index
    %c0_12 = arith.constant 0 : index
    %18 = vector.load %arg12[%c0_10, %c0_11, %c0_12] : memref<2x8x128xf32, #tpu.memory_space<vmem>>, vector<1x8x128xf32>
    %19 = vector.shape_cast %18 : vector<1x8x128xf32> to vector<8x128xf32>
    %c1 = arith.constant 1 : index
    %c0_13 = arith.constant 0 : index
    %c0_14 = arith.constant 0 : index
    %20 = vector.load %arg12[%c1, %c0_13, %c0_14] : memref<2x8x128xf32, #tpu.memory_space<vmem>>, vector<1x8x128xf32>
    %21 = vector.shape_cast %20 : vector<1x8x128xf32> to vector<8x128xf32>
    %c0_i32_15 = arith.constant 0 : i32
    %c7_i32 = arith.constant 7 : i32
    %22 = arith.subi %c7_i32, %c0_i32_15 : i32
    %23 = arith.index_cast %c0_i32_15 : i32 to index
    %c0_16 = arith.constant 0 : index
    %c0_17 = arith.constant 0 : index
    %24 = vector.load %arg1[%23, %c0_16, %c0_17] : memref<8x8x32xbf16, #tpu.memory_space<vmem>>, vector<1x8x32xbf16>
    %25 = vector.shape_cast %24 : vector<1x8x32xbf16> to vector<8x32xbf16>
    %c0_18 = arith.constant 0 : index
    %c0_19 = arith.constant 0 : index
    %26 = vector.load %arg3[%c0_18, %c0_19] : memref<32x384xbf16, #tpu.memory_space<vmem>>, vector<32x384xbf16>
    %cst = arith.constant dense<0.000000e+00> : vector<8x384xf32>
    %27 = tpu.matmul %25, %26, %cst {dimension_numbers = #tpu.dot_dimension_numbers<[1], [0], [0], [1], [0, 0, 1, 1], [], []>} : vector<8x32xbf16>, vector<32x384xbf16>, vector<8x384xf32> -> vector<8x384xf32>
    %28 = arith.addf %27, %5 : vector<8x384xf32>
    %c0_20 = arith.constant 0 : index
    %c0_21 = arith.constant 0 : index
    %29 = vector.load %arg7[%c0_20, %c0_21] : memref<128x384xf32, #tpu.memory_space<vmem>>, vector<128x384xf32>
    %cst_22 = arith.constant dense<0.000000e+00> : vector<8x384xf32>
    %30 = tpu.matmul %19, %29, %cst_22 {dimension_numbers = #tpu.dot_dimension_numbers<[1], [0], [0], [1], [0, 0, 1, 1], [], []>} : vector<8x128xf32>, vector<128x384xf32>, vector<8x384xf32> -> vector<8x384xf32>
    %31 = vector.extract_strided_slice %28 {offsets = [0, 0], sizes = [8, 128], strides = [1, 1]} : vector<8x384xf32> to vector<8x128xf32>
    %32 = vector.extract_strided_slice %30 {offsets = [0, 0], sizes = [8, 128], strides = [1, 1]} : vector<8x384xf32> to vector<8x128xf32>
    %33 = arith.addf %31, %32 : vector<8x128xf32>
    %34 = arith.negf %33 : vector<8x128xf32>
    %35 = math.exp %34 : vector<8x128xf32>
    %cst_23 = arith.constant 1.000000e+00 : f32
    %36 = vector.broadcast %cst_23 : f32 to vector<8x128xf32>
    %37 = arith.addf %36, %35 : vector<8x128xf32>
    %38 = arith.divf %36, %37 : vector<8x128xf32>
    %39 = vector.extract_strided_slice %28 {offsets = [0, 128], sizes = [8, 128], strides = [1, 1]} : vector<8x384xf32> to vector<8x128xf32>
    %40 = vector.extract_strided_slice %30 {offsets = [0, 128], sizes = [8, 128], strides = [1, 1]} : vector<8x384xf32> to vector<8x128xf32>
    %41 = arith.addf %39, %40 : vector<8x128xf32>
    %42 = arith.negf %41 : vector<8x128xf32>
    %43 = math.exp %42 : vector<8x128xf32>
    %cst_24 = arith.constant 1.000000e+00 : f32
    %44 = vector.broadcast %cst_24 : f32 to vector<8x128xf32>
    %45 = arith.addf %44, %43 : vector<8x128xf32>
    %46 = arith.divf %44, %45 : vector<8x128xf32>
    %47 = vector.extract_strided_slice %28 {offsets = [0, 256], sizes = [8, 128], strides = [1, 1]} : vector<8x384xf32> to vector<8x128xf32>
    %48 = vector.extract_strided_slice %30 {offsets = [0, 256], sizes = [8, 128], strides = [1, 1]} : vector<8x384xf32> to vector<8x128xf32>
    %49 = arith.addf %48, %11 : vector<8x128xf32>
    %50 = arith.mulf %38, %49 : vector<8x128xf32>
    %51 = arith.addf %47, %50 : vector<8x128xf32>
    %52 = math.tanh %51 : vector<8x128xf32>
    %cst_25 = arith.constant 1.000000e+00 : f32
    %53 = vector.broadcast %cst_25 : f32 to vector<8x128xf32>
    %54 = arith.subf %53, %46 : vector<8x128xf32>
    %55 = arith.mulf %54, %52 : vector<8x128xf32>
    %56 = arith.mulf %46, %19 : vector<8x128xf32>
    %57 = arith.addf %55, %56 : vector<8x128xf32>
    %58 = arith.index_cast %22 : i32 to index
    %c0_26 = arith.constant 0 : index
    %c0_27 = arith.constant 0 : index
    %59 = vector.load %arg2[%58, %c0_26, %c0_27] : memref<8x8x32xbf16, #tpu.memory_space<vmem>>, vector<1x8x32xbf16>
    %60 = vector.shape_cast %59 : vector<1x8x32xbf16> to vector<8x32xbf16>
    %c0_28 = arith.constant 0 : index
    %c0_29 = arith.constant 0 : index
    %61 = vector.load %arg4[%c0_28, %c0_29] : memref<32x384xbf16, #tpu.memory_space<vmem>>, vector<32x384xbf16>
    %cst_30 = arith.constant dense<0.000000e+00> : vector<8x384xf32>
    %62 = tpu.matmul %60, %61, %cst_30 {dimension_numbers = #tpu.dot_dimension_numbers<[1], [0], [0], [1], [0, 0, 1, 1], [], []>} : vector<8x32xbf16>, vector<32x384xbf16>, vector<8x384xf32> -> vector<8x384xf32>
    %63 = arith.addf %62, %8 : vector<8x384xf32>
    %c0_31 = arith.constant 0 : index
    %c0_32 = arith.constant 0 : index
    %64 = vector.load %arg8[%c0_31, %c0_32] : memref<128x384xf32, #tpu.memory_space<vmem>>, vector<128x384xf32>
    %cst_33 = arith.constant dense<0.000000e+00> : vector<8x384xf32>
    %65 = tpu.matmul %21, %64, %cst_33 {dimension_numbers = #tpu.dot_dimension_numbers<[1], [0], [0], [1], [0, 0, 1, 1], [], []>} : vector<8x128xf32>, vector<128x384xf32>, vector<8x384xf32> -> vector<8x384xf32>
    %66 = vector.extract_strided_slice %63 {offsets = [0, 0], sizes = [8, 128], strides = [1, 1]} : vector<8x384xf32> to vector<8x128xf32>
    %67 = vector.extract_strided_slice %65 {offsets = [0, 0], sizes = [8, 128], strides = [1, 1]} : vector<8x384xf32> to vector<8x128xf32>
    %68 = arith.addf %66, %67 : vector<8x128xf32>
    %69 = arith.negf %68 : vector<8x128xf32>
    %70 = math.exp %69 : vector<8x128xf32>
    %cst_34 = arith.constant 1.000000e+00 : f32
    %71 = vector.broadcast %cst_34 : f32 to vector<8x128xf32>
    %72 = arith.addf %71, %70 : vector<8x128xf32>
    %73 = arith.divf %71, %72 : vector<8x128xf32>
    %74 = vector.extract_strided_slice %63 {offsets = [0, 128], sizes = [8, 128], strides = [1, 1]} : vector<8x384xf32> to vector<8x128xf32>
    %75 = vector.extract_strided_slice %65 {offsets = [0, 128], sizes = [8, 128], strides = [1, 1]} : vector<8x384xf32> to vector<8x128xf32>
    %76 = arith.addf %74, %75 : vector<8x128xf32>
    %77 = arith.negf %76 : vector<8x128xf32>
    %78 = math.exp %77 : vector<8x128xf32>
    %cst_35 = arith.constant 1.000000e+00 : f32
    %79 = vector.broadcast %cst_35 : f32 to vector<8x128xf32>
    %80 = arith.addf %79, %78 : vector<8x128xf32>
    %81 = arith.divf %79, %80 : vector<8x128xf32>
    %82 = vector.extract_strided_slice %63 {offsets = [0, 256], sizes = [8, 128], strides = [1, 1]} : vector<8x384xf32> to vector<8x128xf32>
    %83 = vector.extract_strided_slice %65 {offsets = [0, 256], sizes = [8, 128], strides = [1, 1]} : vector<8x384xf32> to vector<8x128xf32>
    %84 = arith.addf %83, %14 : vector<8x128xf32>
    %85 = arith.mulf %73, %84 : vector<8x128xf32>
    %86 = arith.addf %82, %85 : vector<8x128xf32>
    %87 = math.tanh %86 : vector<8x128xf32>
    %cst_36 = arith.constant 1.000000e+00 : f32
    %88 = vector.broadcast %cst_36 : f32 to vector<8x128xf32>
    %89 = arith.subf %88, %81 : vector<8x128xf32>
    %90 = arith.mulf %89, %87 : vector<8x128xf32>
    %91 = arith.mulf %81, %21 : vector<8x128xf32>
    %92 = arith.addf %90, %91 : vector<8x128xf32>
    %93 = arith.addi %15, %c0_i32_15 : i32
    %94 = arith.index_cast %93 : i32 to index
    %c0_37 = arith.constant 0 : index
    %c0_38 = arith.constant 0 : index
    %95 = vector.load %arg11[%94, %c0_37, %c0_38] : memref<8x8x128xf32, #tpu.memory_space<vmem>>, vector<1x8x128xf32>
    %96 = vector.shape_cast %95 : vector<1x8x128xf32> to vector<8x128xf32>
    %97 = arith.addf %96, %57 : vector<8x128xf32>
    %98 = arith.addi %15, %c0_i32_15 : i32
    %99 = arith.index_cast %98 : i32 to index
    %c0_39 = arith.constant 0 : index
    %c0_40 = arith.constant 0 : index
    %100 = vector.load %arg11[%99, %c0_39, %c0_40] : memref<8x8x128xf32, #tpu.memory_space<vmem>>, vector<1x8x128xf32>
    %101 = vector.shape_cast %100 : vector<1x8x128xf32> to vector<8x128xf32>
    %102 = vector.shape_cast %97 : vector<8x128xf32> to vector<1x8x128xf32>
    tpu.vector_store %arg11[%99, %c0_39, %c0_40], %102 {strides = array<i32>} : memref<8x8x128xf32, #tpu.memory_space<vmem>>, vector<1x8x128xf32>,
    %103 = arith.addi %17, %22 : i32
    %104 = arith.index_cast %103 : i32 to index
    %c0_41 = arith.constant 0 : index
    %c0_42 = arith.constant 0 : index
    %105 = vector.load %arg11[%104, %c0_41, %c0_42] : memref<8x8x128xf32, #tpu.memory_space<vmem>>, vector<1x8x128xf32>
    %106 = vector.shape_cast %105 : vector<1x8x128xf32> to vector<8x128xf32>
    %107 = arith.addf %106, %92 : vector<8x128xf32>
    %108 = arith.addi %17, %22 : i32
    %109 = arith.index_cast %108 : i32 to index
    %c0_43 = arith.constant 0 : index
    %c0_44 = arith.constant 0 : index
    %110 = vector.load %arg11[%109, %c0_43, %c0_44] : memref<8x8x128xf32, #tpu.memory_space<vmem>>, vector<1x8x128xf32>
    %111 = vector.shape_cast %110 : vector<1x8x128xf32> to vector<8x128xf32>
    %112 = vector.shape_cast %107 : vector<8x128xf32> to vector<1x8x128xf32>
    tpu.vector_store %arg11[%109, %c0_43, %c0_44], %112 {strides = array<i32>} : memref<8x8x128xf32, #tpu.memory_space<vmem>>, vector<1x8x128xf32>,
    %c1_i32 = arith.constant 1 : i32
    %c7_i32_45 = arith.constant 7 : i32
    %113 = arith.subi %c7_i32_45, %c1_i32 : i32
    %114 = arith.index_cast %c1_i32 : i32 to index
    %c0_46 = arith.constant 0 : index
    %c0_47 = arith.constant 0 : index
    %115 = vector.load %arg1[%114, %c0_46, %c0_47] : memref<8x8x32xbf16, #tpu.memory_space<vmem>>, vector<1x8x32xbf16>
    %116 = vector.shape_cast %115 : vector<1x8x32xbf16> to vector<8x32xbf16>
    %c0_48 = arith.constant 0 : index
    %c0_49 = arith.constant 0 : index
    %117 = vector.load %arg3[%c0_48, %c0_49] : memref<32x384xbf16, #tpu.memory_space<vmem>>, vector<32x384xbf16>
    %cst_50 = arith.constant dense<0.000000e+00> : vector<8x384xf32>
    %118 = tpu.matmul %116, %117, %cst_50 {dimension_numbers = #tpu.dot_dimension_numbers<[1], [0], [0], [1], [0, 0, 1, 1], [], []>} : vector<8x32xbf16>, vector<32x384xbf16>, vector<8x384xf32> -> vector<8x384xf32>
    %119 = arith.addf %118, %5 : vector<8x384xf32>
    %c0_51 = arith.constant 0 : index
    %c0_52 = arith.constant 0 : index
    %120 = vector.load %arg7[%c0_51, %c0_52] : memref<128x384xf32, #tpu.memory_space<vmem>>, vector<128x384xf32>
    %cst_53 = arith.constant dense<0.000000e+00> : vector<8x384xf32>
    %121 = tpu.matmul %57, %120, %cst_53 {dimension_numbers = #tpu.dot_dimension_numbers<[1], [0], [0], [1], [0, 0, 1, 1], [], []>} : vector<8x128xf32>, vector<128x384xf32>, vector<8x384xf32> -> vector<8x384xf32>
    %122 = vector.extract_strided_slice %119 {offsets = [0, 0], sizes = [8, 128], strides = [1, 1]} : vector<8x384xf32> to vector<8x128xf32>
    %123 = vector.extract_strided_slice %121 {offsets = [0, 0], sizes = [8, 128], strides = [1, 1]} : vector<8x384xf32> to vector<8x128xf32>
    %124 = arith.addf %122, %123 : vector<8x128xf32>
    %125 = arith.negf %124 : vector<8x128xf32>
    %126 = math.exp %125 : vector<8x128xf32>
    %cst_54 = arith.constant 1.000000e+00 : f32
    %127 = vector.broadcast %cst_54 : f32 to vector<8x128xf32>
    %128 = arith.addf %127, %126 : vector<8x128xf32>
    %129 = arith.divf %127, %128 : vector<8x128xf32>
    %130 = vector.extract_strided_slice %119 {offsets = [0, 128], sizes = [8, 128], strides = [1, 1]} : vector<8x384xf32> to vector<8x128xf32>
    %131 = vector.extract_strided_slice %121 {offsets = [0, 128], sizes = [8, 128], strides = [1, 1]} : vector<8x384xf32> to vector<8x128xf32>
    %132 = arith.addf %130, %131 : vector<8x128xf32>
    %133 = arith.negf %132 : vector<8x128xf32>
    %134 = math.exp %133 : vector<8x128xf32>
    %cst_55 = arith.constant 1.000000e+00 : f32
    %135 = vector.broadcast %cst_55 : f32 to vector<8x128xf32>
    %136 = arith.addf %135, %134 : vector<8x128xf32>
    %137 = arith.divf %135, %136 : vector<8x128xf32>
    %138 = vector.extract_strided_slice %119 {offsets = [0, 256], sizes = [8, 128], strides = [1, 1]} : vector<8x384xf32> to vector<8x128xf32>
    %139 = vector.extract_strided_slice %121 {offsets = [0, 256], sizes = [8, 128], strides = [1, 1]} : vector<8x384xf32> to vector<8x128xf32>
    %140 = arith.addf %139, %11 : vector<8x128xf32>
    %141 = arith.mulf %129, %140 : vector<8x128xf32>
    %142 = arith.addf %138, %141 : vector<8x128xf32>
    %143 = math.tanh %142 : vector<8x128xf32>
    %cst_56 = arith.constant 1.000000e+00 : f32
    %144 = vector.broadcast %cst_56 : f32 to vector<8x128xf32>
    %145 = arith.subf %144, %137 : vector<8x128xf32>
    %146 = arith.mulf %145, %143 : vector<8x128xf32>
    %147 = arith.mulf %137, %57 : vector<8x128xf32>
    %148 = arith.addf %146, %147 : vector<8x128xf32>
    %149 = arith.index_cast %113 : i32 to index
    %c0_57 = arith.constant 0 : index
    %c0_58 = arith.constant 0 : index
    %150 = vector.load %arg2[%149, %c0_57, %c0_58] : memref<8x8x32xbf16, #tpu.memory_space<vmem>>, vector<1x8x32xbf16>
    %151 = vector.shape_cast %150 : vector<1x8x32xbf16> to vector<8x32xbf16>
    %c0_59 = arith.constant 0 : index
    %c0_60 = arith.constant 0 : index
    %152 = vector.load %arg4[%c0_59, %c0_60] : memref<32x384xbf16, #tpu.memory_space<vmem>>, vector<32x384xbf16>
    %cst_61 = arith.constant dense<0.000000e+00> : vector<8x384xf32>
    %153 = tpu.matmul %151, %152, %cst_61 {dimension_numbers = #tpu.dot_dimension_numbers<[1], [0], [0], [1], [0, 0, 1, 1], [], []>} : vector<8x32xbf16>, vector<32x384xbf16>, vector<8x384xf32> -> vector<8x384xf32>
    %154 = arith.addf %153, %8 : vector<8x384xf32>
    %c0_62 = arith.constant 0 : index
    %c0_63 = arith.constant 0 : index
    %155 = vector.load %arg8[%c0_62, %c0_63] : memref<128x384xf32, #tpu.memory_space<vmem>>, vector<128x384xf32>
    %cst_64 = arith.constant dense<0.000000e+00> : vector<8x384xf32>
    %156 = tpu.matmul %92, %155, %cst_64 {dimension_numbers = #tpu.dot_dimension_numbers<[1], [0], [0], [1], [0, 0, 1, 1], [], []>} : vector<8x128xf32>, vector<128x384xf32>, vector<8x384xf32> -> vector<8x384xf32>
    %157 = vector.extract_strided_slice %154 {offsets = [0, 0], sizes = [8, 128], strides = [1, 1]} : vector<8x384xf32> to vector<8x128xf32>
    %158 = vector.extract_strided_slice %156 {offsets = [0, 0], sizes = [8, 128], strides = [1, 1]} : vector<8x384xf32> to vector<8x128xf32>
    %159 = arith.addf %157, %158 : vector<8x128xf32>
    %160 = arith.negf %159 : vector<8x128xf32>
    %161 = math.exp %160 : vector<8x128xf32>
    %cst_65 = arith.constant 1.000000e+00 : f32
    %162 = vector.broadcast %cst_65 : f32 to vector<8x128xf32>
    %163 = arith.addf %162, %161 : vector<8x128xf32>
    %164 = arith.divf %162, %163 : vector<8x128xf32>
    %165 = vector.extract_strided_slice %154 {offsets = [0, 128], sizes = [8, 128], strides = [1, 1]} : vector<8x384xf32> to vector<8x128xf32>
    %166 = vector.extract_strided_slice %156 {offsets = [0, 128], sizes = [8, 128], strides = [1, 1]} : vector<8x384xf32> to vector<8x128xf32>
    %167 = arith.addf %165, %166 : vector<8x128xf32>
    %168 = arith.negf %167 : vector<8x128xf32>
    %169 = math.exp %168 : vector<8x128xf32>
    %cst_66 = arith.constant 1.000000e+00 : f32
    %170 = vector.broadcast %cst_66 : f32 to vector<8x128xf32>
    %171 = arith.addf %170, %169 : vector<8x128xf32>
    %172 = arith.divf %170, %171 : vector<8x128xf32>
    %173 = vector.extract_strided_slice %154 {offsets = [0, 256], sizes = [8, 128], strides = [1, 1]} : vector<8x384xf32> to vector<8x128xf32>
    %174 = vector.extract_strided_slice %156 {offsets = [0, 256], sizes = [8, 128], strides = [1, 1]} : vector<8x384xf32> to vector<8x128xf32>
    %175 = arith.addf %174, %14 : vector<8x128xf32>
    %176 = arith.mulf %164, %175 : vector<8x128xf32>
    %177 = arith.addf %173, %176 : vector<8x128xf32>
    %178 = math.tanh %177 : vector<8x128xf32>
    %cst_67 = arith.constant 1.000000e+00 : f32
    %179 = vector.broadcast %cst_67 : f32 to vector<8x128xf32>
    %180 = arith.subf %179, %172 : vector<8x128xf32>
    %181 = arith.mulf %180, %178 : vector<8x128xf32>
    %182 = arith.mulf %172, %92 : vector<8x128xf32>
    %183 = arith.addf %181, %182 : vector<8x128xf32>
    %184 = arith.addi %15, %c1_i32 : i32
    %185 = arith.index_cast %184 : i32 to index
    %c0_68 = arith.constant 0 : index
    %c0_69 = arith.constant 0 : index
    %186 = vector.load %arg11[%185, %c0_68, %c0_69] : memref<8x8x128xf32, #tpu.memory_space<vmem>>, vector<1x8x128xf32>
    %187 = vector.shape_cast %186 : vector<1x8x128xf32> to vector<8x128xf32>
    %188 = arith.addf %187, %148 : vector<8x128xf32>
    %189 = arith.addi %15, %c1_i32 : i32
    %190 = arith.index_cast %189 : i32 to index
    %c0_70 = arith.constant 0 : index
    %c0_71 = arith.constant 0 : index
    %191 = vector.load %arg11[%190, %c0_70, %c0_71] : memref<8x8x128xf32, #tpu.memory_space<vmem>>, vector<1x8x128xf32>
    %192 = vector.shape_cast %191 : vector<1x8x128xf32> to vector<8x128xf32>
    %193 = vector.shape_cast %188 : vector<8x128xf32> to vector<1x8x128xf32>
    tpu.vector_store %arg11[%190, %c0_70, %c0_71], %193 {strides = array<i32>} : memref<8x8x128xf32, #tpu.memory_space<vmem>>, vector<1x8x128xf32>,
    %194 = arith.addi %17, %113 : i32
    %195 = arith.index_cast %194 : i32 to index
    %c0_72 = arith.constant 0 : index
    %c0_73 = arith.constant 0 : index
    %196 = vector.load %arg11[%195, %c0_72, %c0_73] : memref<8x8x128xf32, #tpu.memory_space<vmem>>, vector<1x8x128xf32>
    %197 = vector.shape_cast %196 : vector<1x8x128xf32> to vector<8x128xf32>
    %198 = arith.addf %197, %183 : vector<8x128xf32>
    %199 = arith.addi %17, %113 : i32
    %200 = arith.index_cast %199 : i32 to index
    %c0_74 = arith.constant 0 : index
    %c0_75 = arith.constant 0 : index
    %201 = vector.load %arg11[%200, %c0_74, %c0_75] : memref<8x8x128xf32, #tpu.memory_space<vmem>>, vector<1x8x128xf32>
    %202 = vector.shape_cast %201 : vector<1x8x128xf32> to vector<8x128xf32>
    %203 = vector.shape_cast %198 : vector<8x128xf32> to vector<1x8x128xf32>
    tpu.vector_store %arg11[%200, %c0_74, %c0_75], %203 {strides = array<i32>} : memref<8x8x128xf32, #tpu.memory_space<vmem>>, vector<1x8x128xf32>,
    %c2_i32 = arith.constant 2 : i32
    %c7_i32_76 = arith.constant 7 : i32
    %204 = arith.subi %c7_i32_76, %c2_i32 : i32
    %205 = arith.index_cast %c2_i32 : i32 to index
    %c0_77 = arith.constant 0 : index
    %c0_78 = arith.constant 0 : index
    %206 = vector.load %arg1[%205, %c0_77, %c0_78] : memref<8x8x32xbf16, #tpu.memory_space<vmem>>, vector<1x8x32xbf16>
    %207 = vector.shape_cast %206 : vector<1x8x32xbf16> to vector<8x32xbf16>
    %c0_79 = arith.constant 0 : index
    %c0_80 = arith.constant 0 : index
    %208 = vector.load %arg3[%c0_79, %c0_80] : memref<32x384xbf16, #tpu.memory_space<vmem>>, vector<32x384xbf16>
    %cst_81 = arith.constant dense<0.000000e+00> : vector<8x384xf32>
    %209 = tpu.matmul %207, %208, %cst_81 {dimension_numbers = #tpu.dot_dimension_numbers<[1], [0], [0], [1], [0, 0, 1, 1], [], []>} : vector<8x32xbf16>, vector<32x384xbf16>, vector<8x384xf32> -> vector<8x384xf32>
    %210 = arith.addf %209, %5 : vector<8x384xf32>
    %c0_82 = arith.constant 0 : index
    %c0_83 = arith.constant 0 : index
    %211 = vector.load %arg7[%c0_82, %c0_83] : memref<128x384xf32, #tpu.memory_space<vmem>>, vector<128x384xf32>
    %cst_84 = arith.constant dense<0.000000e+00> : vector<8x384xf32>
    %212 = tpu.matmul %148, %211, %cst_84 {dimension_numbers = #tpu.dot_dimension_numbers<[1], [0], [0], [1], [0, 0, 1, 1], [], []>} : vector<8x128xf32>, vector<128x384xf32>, vector<8x384xf32> -> vector<8x384xf32>
    %213 = vector.extract_strided_slice %210 {offsets = [0, 0], sizes = [8, 128], strides = [1, 1]} : vector<8x384xf32> to vector<8x128xf32>
    %214 = vector.extract_strided_slice %212 {offsets = [0, 0], sizes = [8, 128], strides = [1, 1]} : vector<8x384xf32> to vector<8x128xf32>
    %215 = arith.addf %213, %214 : vector<8x128xf32>
    %216 = arith.negf %215 : vector<8x128xf32>
    %217 = math.exp %216 : vector<8x128xf32>
    %cst_85 = arith.constant 1.000000e+00 : f32
    %218 = vector.broadcast %cst_85 : f32 to vector<8x128xf32>
    %219 = arith.addf %218, %217 : vector<8x128xf32>
    %220 = arith.divf %218, %219 : vector<8x128xf32>
    %221 = vector.extract_strided_slice %210 {offsets = [0, 128], sizes = [8, 128], strides = [1, 1]} : vector<8x384xf32> to vector<8x128xf32>
    %222 = vector.extract_strided_slice %212 {offsets = [0, 128], sizes = [8, 128], strides = [1, 1]} : vector<8x384xf32> to vector<8x128xf32>
    %223 = arith.addf %221, %222 : vector<8x128xf32>
    %224 = arith.negf %223 : vector<8x128xf32>
    %225 = math.exp %224 : vector<8x128xf32>
    %cst_86 = arith.constant 1.000000e+00 : f32
    %226 = vector.broadcast %cst_86 : f32 to vector<8x128xf32>
    %227 = arith.addf %226, %225 : vector<8x128xf32>
    %228 = arith.divf %226, %227 : vector<8x128xf32>
    %229 = vector.extract_strided_slice %210 {offsets = [0, 256], sizes = [8, 128], strides = [1, 1]} : vector<8x384xf32> to vector<8x128xf32>
    %230 = vector.extract_strided_slice %212 {offsets = [0, 256], sizes = [8, 128], strides = [1, 1]} : vector<8x384xf32> to vector<8x128xf32>
    %231 = arith.addf %230, %11 : vector<8x128xf32>
    %232 = arith.mulf %220, %231 : vector<8x128xf32>
    %233 = arith.addf %229, %232 : vector<8x128xf32>
    %234 = math.tanh %233 : vector<8x128xf32>
    %cst_87 = arith.constant 1.000000e+00 : f32
    %235 = vector.broadcast %cst_87 : f32 to vector<8x128xf32>
    %236 = arith.subf %235, %228 : vector<8x128xf32>
    %237 = arith.mulf %236, %234 : vector<8x128xf32>
    %238 = arith.mulf %228, %148 : vector<8x128xf32>
    %239 = arith.addf %237, %238 : vector<8x128xf32>
    %240 = arith.index_cast %204 : i32 to index
    %c0_88 = arith.constant 0 : index
    %c0_89 = arith.constant 0 : index
    %241 = vector.load %arg2[%240, %c0_88, %c0_89] : memref<8x8x32xbf16, #tpu.memory_space<vmem>>, vector<1x8x32xbf16>
    %242 = vector.shape_cast %241 : vector<1x8x32xbf16> to vector<8x32xbf16>
    %c0_90 = arith.constant 0 : index
    %c0_91 = arith.constant 0 : index
    %243 = vector.load %arg4[%c0_90, %c0_91] : memref<32x384xbf16, #tpu.memory_space<vmem>>, vector<32x384xbf16>
    %cst_92 = arith.constant dense<0.000000e+00> : vector<8x384xf32>
    %244 = tpu.matmul %242, %243, %cst_92 {dimension_numbers = #tpu.dot_dimension_numbers<[1], [0], [0], [1], [0, 0, 1, 1], [], []>} : vector<8x32xbf16>, vector<32x384xbf16>, vector<8x384xf32> -> vector<8x384xf32>
    %245 = arith.addf %244, %8 : vector<8x384xf32>
    %c0_93 = arith.constant 0 : index
    %c0_94 = arith.constant 0 : index
    %246 = vector.load %arg8[%c0_93, %c0_94] : memref<128x384xf32, #tpu.memory_space<vmem>>, vector<128x384xf32>
    %cst_95 = arith.constant dense<0.000000e+00> : vector<8x384xf32>
    %247 = tpu.matmul %183, %246, %cst_95 {dimension_numbers = #tpu.dot_dimension_numbers<[1], [0], [0], [1], [0, 0, 1, 1], [], []>} : vector<8x128xf32>, vector<128x384xf32>, vector<8x384xf32> -> vector<8x384xf32>
    %248 = vector.extract_strided_slice %245 {offsets = [0, 0], sizes = [8, 128], strides = [1, 1]} : vector<8x384xf32> to vector<8x128xf32>
    %249 = vector.extract_strided_slice %247 {offsets = [0, 0], sizes = [8, 128], strides = [1, 1]} : vector<8x384xf32> to vector<8x128xf32>
    %250 = arith.addf %248, %249 : vector<8x128xf32>
    %251 = arith.negf %250 : vector<8x128xf32>
    %252 = math.exp %251 : vector<8x128xf32>
    %cst_96 = arith.constant 1.000000e+00 : f32
    %253 = vector.broadcast %cst_96 : f32 to vector<8x128xf32>
    %254 = arith.addf %253, %252 : vector<8x128xf32>
    %255 = arith.divf %253, %254 : vector<8x128xf32>
    %256 = vector.extract_strided_slice %245 {offsets = [0, 128], sizes = [8, 128], strides = [1, 1]} : vector<8x384xf32> to vector<8x128xf32>
    %257 = vector.extract_strided_slice %247 {offsets = [0, 128], sizes = [8, 128], strides = [1, 1]} : vector<8x384xf32> to vector<8x128xf32>
    %258 = arith.addf %256, %257 : vector<8x128xf32>
    %259 = arith.negf %258 : vector<8x128xf32>
    %260 = math.exp %259 : vector<8x128xf32>
    %cst_97 = arith.constant 1.000000e+00 : f32
    %261 = vector.broadcast %cst_97 : f32 to vector<8x128xf32>
    %262 = arith.addf %261, %260 : vector<8x128xf32>
    %263 = arith.divf %261, %262 : vector<8x128xf32>
    %264 = vector.extract_strided_slice %245 {offsets = [0, 256], sizes = [8, 128], strides = [1, 1]} : vector<8x384xf32> to vector<8x128xf32>
    %265 = vector.extract_strided_slice %247 {offsets = [0, 256], sizes = [8, 128], strides = [1, 1]} : vector<8x384xf32> to vector<8x128xf32>
    %266 = arith.addf %265, %14 : vector<8x128xf32>
    %267 = arith.mulf %255, %266 : vector<8x128xf32>
    %268 = arith.addf %264, %267 : vector<8x128xf32>
    %269 = math.tanh %268 : vector<8x128xf32>
    %cst_98 = arith.constant 1.000000e+00 : f32
    %270 = vector.broadcast %cst_98 : f32 to vector<8x128xf32>
    %271 = arith.subf %270, %263 : vector<8x128xf32>
    %272 = arith.mulf %271, %269 : vector<8x128xf32>
    %273 = arith.mulf %263, %183 : vector<8x128xf32>
    %274 = arith.addf %272, %273 : vector<8x128xf32>
    %275 = arith.addi %15, %c2_i32 : i32
    %276 = arith.index_cast %275 : i32 to index
    %c0_99 = arith.constant 0 : index
    %c0_100 = arith.constant 0 : index
    %277 = vector.load %arg11[%276, %c0_99, %c0_100] : memref<8x8x128xf32, #tpu.memory_space<vmem>>, vector<1x8x128xf32>
    %278 = vector.shape_cast %277 : vector<1x8x128xf32> to vector<8x128xf32>
    %279 = arith.addf %278, %239 : vector<8x128xf32>
    %280 = arith.addi %15, %c2_i32 : i32
    %281 = arith.index_cast %280 : i32 to index
    %c0_101 = arith.constant 0 : index
    %c0_102 = arith.constant 0 : index
    %282 = vector.load %arg11[%281, %c0_101, %c0_102] : memref<8x8x128xf32, #tpu.memory_space<vmem>>, vector<1x8x128xf32>
    %283 = vector.shape_cast %282 : vector<1x8x128xf32> to vector<8x128xf32>
    %284 = vector.shape_cast %279 : vector<8x128xf32> to vector<1x8x128xf32>
    tpu.vector_store %arg11[%281, %c0_101, %c0_102], %284 {strides = array<i32>} : memref<8x8x128xf32, #tpu.memory_space<vmem>>, vector<1x8x128xf32>,
    %285 = arith.addi %17, %204 : i32
    %286 = arith.index_cast %285 : i32 to index
    %c0_103 = arith.constant 0 : index
    %c0_104 = arith.constant 0 : index
    %287 = vector.load %arg11[%286, %c0_103, %c0_104] : memref<8x8x128xf32, #tpu.memory_space<vmem>>, vector<1x8x128xf32>
    %288 = vector.shape_cast %287 : vector<1x8x128xf32> to vector<8x128xf32>
    %289 = arith.addf %288, %274 : vector<8x128xf32>
    %290 = arith.addi %17, %204 : i32
    %291 = arith.index_cast %290 : i32 to index
    %c0_105 = arith.constant 0 : index
    %c0_106 = arith.constant 0 : index
    %292 = vector.load %arg11[%291, %c0_105, %c0_106] : memref<8x8x128xf32, #tpu.memory_space<vmem>>, vector<1x8x128xf32>
    %293 = vector.shape_cast %292 : vector<1x8x128xf32> to vector<8x128xf32>
    %294 = vector.shape_cast %289 : vector<8x128xf32> to vector<1x8x128xf32>
    tpu.vector_store %arg11[%291, %c0_105, %c0_106], %294 {strides = array<i32>} : memref<8x8x128xf32, #tpu.memory_space<vmem>>, vector<1x8x128xf32>,
    %c3_i32 = arith.constant 3 : i32
    %c7_i32_107 = arith.constant 7 : i32
    %295 = arith.subi %c7_i32_107, %c3_i32 : i32
    %296 = arith.index_cast %c3_i32 : i32 to index
    %c0_108 = arith.constant 0 : index
    %c0_109 = arith.constant 0 : index
    %297 = vector.load %arg1[%296, %c0_108, %c0_109] : memref<8x8x32xbf16, #tpu.memory_space<vmem>>, vector<1x8x32xbf16>
    %298 = vector.shape_cast %297 : vector<1x8x32xbf16> to vector<8x32xbf16>
    %c0_110 = arith.constant 0 : index
    %c0_111 = arith.constant 0 : index
    %299 = vector.load %arg3[%c0_110, %c0_111] : memref<32x384xbf16, #tpu.memory_space<vmem>>, vector<32x384xbf16>
    %cst_112 = arith.constant dense<0.000000e+00> : vector<8x384xf32>
    %300 = tpu.matmul %298, %299, %cst_112 {dimension_numbers = #tpu.dot_dimension_numbers<[1], [0], [0], [1], [0, 0, 1, 1], [], []>} : vector<8x32xbf16>, vector<32x384xbf16>, vector<8x384xf32> -> vector<8x384xf32>
    %301 = arith.addf %300, %5 : vector<8x384xf32>
    %c0_113 = arith.constant 0 : index
    %c0_114 = arith.constant 0 : index
    %302 = vector.load %arg7[%c0_113, %c0_114] : memref<128x384xf32, #tpu.memory_space<vmem>>, vector<128x384xf32>
    %cst_115 = arith.constant dense<0.000000e+00> : vector<8x384xf32>
    %303 = tpu.matmul %239, %302, %cst_115 {dimension_numbers = #tpu.dot_dimension_numbers<[1], [0], [0], [1], [0, 0, 1, 1], [], []>} : vector<8x128xf32>, vector<128x384xf32>, vector<8x384xf32> -> vector<8x384xf32>
    %304 = vector.extract_strided_slice %301 {offsets = [0, 0], sizes = [8, 128], strides = [1, 1]} : vector<8x384xf32> to vector<8x128xf32>
    %305 = vector.extract_strided_slice %303 {offsets = [0, 0], sizes = [8, 128], strides = [1, 1]} : vector<8x384xf32> to vector<8x128xf32>
    %306 = arith.addf %304, %305 : vector<8x128xf32>
    %307 = arith.negf %306 : vector<8x128xf32>
    %308 = math.exp %307 : vector<8x128xf32>
    %cst_116 = arith.constant 1.000000e+00 : f32
    %309 = vector.broadcast %cst_116 : f32 to vector<8x128xf32>
    %310 = arith.addf %309, %308 : vector<8x128xf32>
    %311 = arith.divf %309, %310 : vector<8x128xf32>
    %312 = vector.extract_strided_slice %301 {offsets = [0, 128], sizes = [8, 128], strides = [1, 1]} : vector<8x384xf32> to vector<8x128xf32>
    %313 = vector.extract_strided_slice %303 {offsets = [0, 128], sizes = [8, 128], strides = [1, 1]} : vector<8x384xf32> to vector<8x128xf32>
    %314 = arith.addf %312, %313 : vector<8x128xf32>
    %315 = arith.negf %314 : vector<8x128xf32>
    %316 = math.exp %315 : vector<8x128xf32>
    %cst_117 = arith.constant 1.000000e+00 : f32
    %317 = vector.broadcast %cst_117 : f32 to vector<8x128xf32>
    %318 = arith.addf %317, %316 : vector<8x128xf32>
    %319 = arith.divf %317, %318 : vector<8x128xf32>
    %320 = vector.extract_strided_slice %301 {offsets = [0, 256], sizes = [8, 128], strides = [1, 1]} : vector<8x384xf32> to vector<8x128xf32>
    %321 = vector.extract_strided_slice %303 {offsets = [0, 256], sizes = [8, 128], strides = [1, 1]} : vector<8x384xf32> to vector<8x128xf32>
    %322 = arith.addf %321, %11 : vector<8x128xf32>
    %323 = arith.mulf %311, %322 : vector<8x128xf32>
    %324 = arith.addf %320, %323 : vector<8x128xf32>
    %325 = math.tanh %324 : vector<8x128xf32>
    %cst_118 = arith.constant 1.000000e+00 : f32
    %326 = vector.broadcast %cst_118 : f32 to vector<8x128xf32>
    %327 = arith.subf %326, %319 : vector<8x128xf32>
    %328 = arith.mulf %327, %325 : vector<8x128xf32>
    %329 = arith.mulf %319, %239 : vector<8x128xf32>
    %330 = arith.addf %328, %329 : vector<8x128xf32>
    %331 = arith.index_cast %295 : i32 to index
    %c0_119 = arith.constant 0 : index
    %c0_120 = arith.constant 0 : index
    %332 = vector.load %arg2[%331, %c0_119, %c0_120] : memref<8x8x32xbf16, #tpu.memory_space<vmem>>, vector<1x8x32xbf16>
    %333 = vector.shape_cast %332 : vector<1x8x32xbf16> to vector<8x32xbf16>
    %c0_121 = arith.constant 0 : index
    %c0_122 = arith.constant 0 : index
    %334 = vector.load %arg4[%c0_121, %c0_122] : memref<32x384xbf16, #tpu.memory_space<vmem>>, vector<32x384xbf16>
    %cst_123 = arith.constant dense<0.000000e+00> : vector<8x384xf32>
    %335 = tpu.matmul %333, %334, %cst_123 {dimension_numbers = #tpu.dot_dimension_numbers<[1], [0], [0], [1], [0, 0, 1, 1], [], []>} : vector<8x32xbf16>, vector<32x384xbf16>, vector<8x384xf32> -> vector<8x384xf32>
    %336 = arith.addf %335, %8 : vector<8x384xf32>
    %c0_124 = arith.constant 0 : index
    %c0_125 = arith.constant 0 : index
    %337 = vector.load %arg8[%c0_124, %c0_125] : memref<128x384xf32, #tpu.memory_space<vmem>>, vector<128x384xf32>
    %cst_126 = arith.constant dense<0.000000e+00> : vector<8x384xf32>
    %338 = tpu.matmul %274, %337, %cst_126 {dimension_numbers = #tpu.dot_dimension_numbers<[1], [0], [0], [1], [0, 0, 1, 1], [], []>} : vector<8x128xf32>, vector<128x384xf32>, vector<8x384xf32> -> vector<8x384xf32>
    %339 = vector.extract_strided_slice %336 {offsets = [0, 0], sizes = [8, 128], strides = [1, 1]} : vector<8x384xf32> to vector<8x128xf32>
    %340 = vector.extract_strided_slice %338 {offsets = [0, 0], sizes = [8, 128], strides = [1, 1]} : vector<8x384xf32> to vector<8x128xf32>
    %341 = arith.addf %339, %340 : vector<8x128xf32>
    %342 = arith.negf %341 : vector<8x128xf32>
    %343 = math.exp %342 : vector<8x128xf32>
    %cst_127 = arith.constant 1.000000e+00 : f32
    %344 = vector.broadcast %cst_127 : f32 to vector<8x128xf32>
    %345 = arith.addf %344, %343 : vector<8x128xf32>
    %346 = arith.divf %344, %345 : vector<8x128xf32>
    %347 = vector.extract_strided_slice %336 {offsets = [0, 128], sizes = [8, 128], strides = [1, 1]} : vector<8x384xf32> to vector<8x128xf32>
    %348 = vector.extract_strided_slice %338 {offsets = [0, 128], sizes = [8, 128], strides = [1, 1]} : vector<8x384xf32> to vector<8x128xf32>
    %349 = arith.addf %347, %348 : vector<8x128xf32>
    %350 = arith.negf %349 : vector<8x128xf32>
    %351 = math.exp %350 : vector<8x128xf32>
    %cst_128 = arith.constant 1.000000e+00 : f32
    %352 = vector.broadcast %cst_128 : f32 to vector<8x128xf32>
    %353 = arith.addf %352, %351 : vector<8x128xf32>
    %354 = arith.divf %352, %353 : vector<8x128xf32>
    %355 = vector.extract_strided_slice %336 {offsets = [0, 256], sizes = [8, 128], strides = [1, 1]} : vector<8x384xf32> to vector<8x128xf32>
    %356 = vector.extract_strided_slice %338 {offsets = [0, 256], sizes = [8, 128], strides = [1, 1]} : vector<8x384xf32> to vector<8x128xf32>
    %357 = arith.addf %356, %14 : vector<8x128xf32>
    %358 = arith.mulf %346, %357 : vector<8x128xf32>
    %359 = arith.addf %355, %358 : vector<8x128xf32>
    %360 = math.tanh %359 : vector<8x128xf32>
    %cst_129 = arith.constant 1.000000e+00 : f32
    %361 = vector.broadcast %cst_129 : f32 to vector<8x128xf32>
    %362 = arith.subf %361, %354 : vector<8x128xf32>
    %363 = arith.mulf %362, %360 : vector<8x128xf32>
    %364 = arith.mulf %354, %274 : vector<8x128xf32>
    %365 = arith.addf %363, %364 : vector<8x128xf32>
    %366 = arith.addi %15, %c3_i32 : i32
    %367 = arith.index_cast %366 : i32 to index
    %c0_130 = arith.constant 0 : index
    %c0_131 = arith.constant 0 : index
    %368 = vector.load %arg11[%367, %c0_130, %c0_131] : memref<8x8x128xf32, #tpu.memory_space<vmem>>, vector<1x8x128xf32>
    %369 = vector.shape_cast %368 : vector<1x8x128xf32> to vector<8x128xf32>
    %370 = arith.addf %369, %330 : vector<8x128xf32>
    %371 = arith.addi %15, %c3_i32 : i32
    %372 = arith.index_cast %371 : i32 to index
    %c0_132 = arith.constant 0 : index
    %c0_133 = arith.constant 0 : index
    %373 = vector.load %arg11[%372, %c0_132, %c0_133] : memref<8x8x128xf32, #tpu.memory_space<vmem>>, vector<1x8x128xf32>
    %374 = vector.shape_cast %373 : vector<1x8x128xf32> to vector<8x128xf32>
    %375 = vector.shape_cast %370 : vector<8x128xf32> to vector<1x8x128xf32>
    tpu.vector_store %arg11[%372, %c0_132, %c0_133], %375 {strides = array<i32>} : memref<8x8x128xf32, #tpu.memory_space<vmem>>, vector<1x8x128xf32>,
    %376 = arith.addi %17, %295 : i32
    %377 = arith.index_cast %376 : i32 to index
    %c0_134 = arith.constant 0 : index
    %c0_135 = arith.constant 0 : index
    %378 = vector.load %arg11[%377, %c0_134, %c0_135] : memref<8x8x128xf32, #tpu.memory_space<vmem>>, vector<1x8x128xf32>
    %379 = vector.shape_cast %378 : vector<1x8x128xf32> to vector<8x128xf32>
    %380 = arith.addf %379, %365 : vector<8x128xf32>
    %381 = arith.addi %17, %295 : i32
    %382 = arith.index_cast %381 : i32 to index
    %c0_136 = arith.constant 0 : index
    %c0_137 = arith.constant 0 : index
    %383 = vector.load %arg11[%382, %c0_136, %c0_137] : memref<8x8x128xf32, #tpu.memory_space<vmem>>, vector<1x8x128xf32>
    %384 = vector.shape_cast %383 : vector<1x8x128xf32> to vector<8x128xf32>
    %385 = vector.shape_cast %380 : vector<8x128xf32> to vector<1x8x128xf32>
    tpu.vector_store %arg11[%382, %c0_136, %c0_137], %385 {strides = array<i32>} : memref<8x8x128xf32, #tpu.memory_space<vmem>>, vector<1x8x128xf32>,
    %c4_i32 = arith.constant 4 : i32
    %c7_i32_138 = arith.constant 7 : i32
    %386 = arith.subi %c7_i32_138, %c4_i32 : i32
    %387 = arith.index_cast %c4_i32 : i32 to index
    %c0_139 = arith.constant 0 : index
    %c0_140 = arith.constant 0 : index
    %388 = vector.load %arg1[%387, %c0_139, %c0_140] : memref<8x8x32xbf16, #tpu.memory_space<vmem>>, vector<1x8x32xbf16>
    %389 = vector.shape_cast %388 : vector<1x8x32xbf16> to vector<8x32xbf16>
    %c0_141 = arith.constant 0 : index
    %c0_142 = arith.constant 0 : index
    %390 = vector.load %arg3[%c0_141, %c0_142] : memref<32x384xbf16, #tpu.memory_space<vmem>>, vector<32x384xbf16>
    %cst_143 = arith.constant dense<0.000000e+00> : vector<8x384xf32>
    %391 = tpu.matmul %389, %390, %cst_143 {dimension_numbers = #tpu.dot_dimension_numbers<[1], [0], [0], [1], [0, 0, 1, 1], [], []>} : vector<8x32xbf16>, vector<32x384xbf16>, vector<8x384xf32> -> vector<8x384xf32>
    %392 = arith.addf %391, %5 : vector<8x384xf32>
    %c0_144 = arith.constant 0 : index
    %c0_145 = arith.constant 0 : index
    %393 = vector.load %arg7[%c0_144, %c0_145] : memref<128x384xf32, #tpu.memory_space<vmem>>, vector<128x384xf32>
    %cst_146 = arith.constant dense<0.000000e+00> : vector<8x384xf32>
    %394 = tpu.matmul %330, %393, %cst_146 {dimension_numbers = #tpu.dot_dimension_numbers<[1], [0], [0], [1], [0, 0, 1, 1], [], []>} : vector<8x128xf32>, vector<128x384xf32>, vector<8x384xf32> -> vector<8x384xf32>
    %395 = vector.extract_strided_slice %392 {offsets = [0, 0], sizes = [8, 128], strides = [1, 1]} : vector<8x384xf32> to vector<8x128xf32>
    %396 = vector.extract_strided_slice %394 {offsets = [0, 0], sizes = [8, 128], strides = [1, 1]} : vector<8x384xf32> to vector<8x128xf32>
    %397 = arith.addf %395, %396 : vector<8x128xf32>
    %398 = arith.negf %397 : vector<8x128xf32>
    %399 = math.exp %398 : vector<8x128xf32>
    %cst_147 = arith.constant 1.000000e+00 : f32
    %400 = vector.broadcast %cst_147 : f32 to vector<8x128xf32>
    %401 = arith.addf %400, %399 : vector<8x128xf32>
    %402 = arith.divf %400, %401 : vector<8x128xf32>
    %403 = vector.extract_strided_slice %392 {offsets = [0, 128], sizes = [8, 128], strides = [1, 1]} : vector<8x384xf32> to vector<8x128xf32>
    %404 = vector.extract_strided_slice %394 {offsets = [0, 128], sizes = [8, 128], strides = [1, 1]} : vector<8x384xf32> to vector<8x128xf32>
    %405 = arith.addf %403, %404 : vector<8x128xf32>
    %406 = arith.negf %405 : vector<8x128xf32>
    %407 = math.exp %406 : vector<8x128xf32>
    %cst_148 = arith.constant 1.000000e+00 : f32
    %408 = vector.broadcast %cst_148 : f32 to vector<8x128xf32>
    %409 = arith.addf %408, %407 : vector<8x128xf32>
    %410 = arith.divf %408, %409 : vector<8x128xf32>
    %411 = vector.extract_strided_slice %392 {offsets = [0, 256], sizes = [8, 128], strides = [1, 1]} : vector<8x384xf32> to vector<8x128xf32>
    %412 = vector.extract_strided_slice %394 {offsets = [0, 256], sizes = [8, 128], strides = [1, 1]} : vector<8x384xf32> to vector<8x128xf32>
    %413 = arith.addf %412, %11 : vector<8x128xf32>
    %414 = arith.mulf %402, %413 : vector<8x128xf32>
    %415 = arith.addf %411, %414 : vector<8x128xf32>
    %416 = math.tanh %415 : vector<8x128xf32>
    %cst_149 = arith.constant 1.000000e+00 : f32
    %417 = vector.broadcast %cst_149 : f32 to vector<8x128xf32>
    %418 = arith.subf %417, %410 : vector<8x128xf32>
    %419 = arith.mulf %418, %416 : vector<8x128xf32>
    %420 = arith.mulf %410, %330 : vector<8x128xf32>
    %421 = arith.addf %419, %420 : vector<8x128xf32>
    %422 = arith.index_cast %386 : i32 to index
    %c0_150 = arith.constant 0 : index
    %c0_151 = arith.constant 0 : index
    %423 = vector.load %arg2[%422, %c0_150, %c0_151] : memref<8x8x32xbf16, #tpu.memory_space<vmem>>, vector<1x8x32xbf16>
    %424 = vector.shape_cast %423 : vector<1x8x32xbf16> to vector<8x32xbf16>
    %c0_152 = arith.constant 0 : index
    %c0_153 = arith.constant 0 : index
    %425 = vector.load %arg4[%c0_152, %c0_153] : memref<32x384xbf16, #tpu.memory_space<vmem>>, vector<32x384xbf16>
    %cst_154 = arith.constant dense<0.000000e+00> : vector<8x384xf32>
    %426 = tpu.matmul %424, %425, %cst_154 {dimension_numbers = #tpu.dot_dimension_numbers<[1], [0], [0], [1], [0, 0, 1, 1], [], []>} : vector<8x32xbf16>, vector<32x384xbf16>, vector<8x384xf32> -> vector<8x384xf32>
    %427 = arith.addf %426, %8 : vector<8x384xf32>
    %c0_155 = arith.constant 0 : index
    %c0_156 = arith.constant 0 : index
    %428 = vector.load %arg8[%c0_155, %c0_156] : memref<128x384xf32, #tpu.memory_space<vmem>>, vector<128x384xf32>
    %cst_157 = arith.constant dense<0.000000e+00> : vector<8x384xf32>
    %429 = tpu.matmul %365, %428, %cst_157 {dimension_numbers = #tpu.dot_dimension_numbers<[1], [0], [0], [1], [0, 0, 1, 1], [], []>} : vector<8x128xf32>, vector<128x384xf32>, vector<8x384xf32> -> vector<8x384xf32>
    %430 = vector.extract_strided_slice %427 {offsets = [0, 0], sizes = [8, 128], strides = [1, 1]} : vector<8x384xf32> to vector<8x128xf32>
    %431 = vector.extract_strided_slice %429 {offsets = [0, 0], sizes = [8, 128], strides = [1, 1]} : vector<8x384xf32> to vector<8x128xf32>
    %432 = arith.addf %430, %431 : vector<8x128xf32>
    %433 = arith.negf %432 : vector<8x128xf32>
    %434 = math.exp %433 : vector<8x128xf32>
    %cst_158 = arith.constant 1.000000e+00 : f32
    %435 = vector.broadcast %cst_158 : f32 to vector<8x128xf32>
    %436 = arith.addf %435, %434 : vector<8x128xf32>
    %437 = arith.divf %435, %436 : vector<8x128xf32>
    %438 = vector.extract_strided_slice %427 {offsets = [0, 128], sizes = [8, 128], strides = [1, 1]} : vector<8x384xf32> to vector<8x128xf32>
    %439 = vector.extract_strided_slice %429 {offsets = [0, 128], sizes = [8, 128], strides = [1, 1]} : vector<8x384xf32> to vector<8x128xf32>
    %440 = arith.addf %438, %439 : vector<8x128xf32>
    %441 = arith.negf %440 : vector<8x128xf32>
    %442 = math.exp %441 : vector<8x128xf32>
    %cst_159 = arith.constant 1.000000e+00 : f32
    %443 = vector.broadcast %cst_159 : f32 to vector<8x128xf32>
    %444 = arith.addf %443, %442 : vector<8x128xf32>
    %445 = arith.divf %443, %444 : vector<8x128xf32>
    %446 = vector.extract_strided_slice %427 {offsets = [0, 256], sizes = [8, 128], strides = [1, 1]} : vector<8x384xf32> to vector<8x128xf32>
    %447 = vector.extract_strided_slice %429 {offsets = [0, 256], sizes = [8, 128], strides = [1, 1]} : vector<8x384xf32> to vector<8x128xf32>
    %448 = arith.addf %447, %14 : vector<8x128xf32>
    %449 = arith.mulf %437, %448 : vector<8x128xf32>
    %450 = arith.addf %446, %449 : vector<8x128xf32>
    %451 = math.tanh %450 : vector<8x128xf32>
    %cst_160 = arith.constant 1.000000e+00 : f32
    %452 = vector.broadcast %cst_160 : f32 to vector<8x128xf32>
    %453 = arith.subf %452, %445 : vector<8x128xf32>
    %454 = arith.mulf %453, %451 : vector<8x128xf32>
    %455 = arith.mulf %445, %365 : vector<8x128xf32>
    %456 = arith.addf %454, %455 : vector<8x128xf32>
    %457 = arith.addi %15, %c4_i32 : i32
    %458 = arith.index_cast %457 : i32 to index
    %c0_161 = arith.constant 0 : index
    %c0_162 = arith.constant 0 : index
    %459 = vector.load %arg11[%458, %c0_161, %c0_162] : memref<8x8x128xf32, #tpu.memory_space<vmem>>, vector<1x8x128xf32>
    %460 = vector.shape_cast %459 : vector<1x8x128xf32> to vector<8x128xf32>
    %461 = arith.addf %460, %421 : vector<8x128xf32>
    %462 = arith.addi %15, %c4_i32 : i32
    %463 = arith.index_cast %462 : i32 to index
    %c0_163 = arith.constant 0 : index
    %c0_164 = arith.constant 0 : index
    %464 = vector.load %arg11[%463, %c0_163, %c0_164] : memref<8x8x128xf32, #tpu.memory_space<vmem>>, vector<1x8x128xf32>
    %465 = vector.shape_cast %464 : vector<1x8x128xf32> to vector<8x128xf32>
    %466 = vector.shape_cast %461 : vector<8x128xf32> to vector<1x8x128xf32>
    tpu.vector_store %arg11[%463, %c0_163, %c0_164], %466 {strides = array<i32>} : memref<8x8x128xf32, #tpu.memory_space<vmem>>, vector<1x8x128xf32>,
    %467 = arith.addi %17, %386 : i32
    %468 = arith.index_cast %467 : i32 to index
    %c0_165 = arith.constant 0 : index
    %c0_166 = arith.constant 0 : index
    %469 = vector.load %arg11[%468, %c0_165, %c0_166] : memref<8x8x128xf32, #tpu.memory_space<vmem>>, vector<1x8x128xf32>
    %470 = vector.shape_cast %469 : vector<1x8x128xf32> to vector<8x128xf32>
    %471 = arith.addf %470, %456 : vector<8x128xf32>
    %472 = arith.addi %17, %386 : i32
    %473 = arith.index_cast %472 : i32 to index
    %c0_167 = arith.constant 0 : index
    %c0_168 = arith.constant 0 : index
    %474 = vector.load %arg11[%473, %c0_167, %c0_168] : memref<8x8x128xf32, #tpu.memory_space<vmem>>, vector<1x8x128xf32>
    %475 = vector.shape_cast %474 : vector<1x8x128xf32> to vector<8x128xf32>
    %476 = vector.shape_cast %471 : vector<8x128xf32> to vector<1x8x128xf32>
    tpu.vector_store %arg11[%473, %c0_167, %c0_168], %476 {strides = array<i32>} : memref<8x8x128xf32, #tpu.memory_space<vmem>>, vector<1x8x128xf32>,
    %c5_i32 = arith.constant 5 : i32
    %c7_i32_169 = arith.constant 7 : i32
    %477 = arith.subi %c7_i32_169, %c5_i32 : i32
    %478 = arith.index_cast %c5_i32 : i32 to index
    %c0_170 = arith.constant 0 : index
    %c0_171 = arith.constant 0 : index
    %479 = vector.load %arg1[%478, %c0_170, %c0_171] : memref<8x8x32xbf16, #tpu.memory_space<vmem>>, vector<1x8x32xbf16>
    %480 = vector.shape_cast %479 : vector<1x8x32xbf16> to vector<8x32xbf16>
    %c0_172 = arith.constant 0 : index
    %c0_173 = arith.constant 0 : index
    %481 = vector.load %arg3[%c0_172, %c0_173] : memref<32x384xbf16, #tpu.memory_space<vmem>>, vector<32x384xbf16>
    %cst_174 = arith.constant dense<0.000000e+00> : vector<8x384xf32>
    %482 = tpu.matmul %480, %481, %cst_174 {dimension_numbers = #tpu.dot_dimension_numbers<[1], [0], [0], [1], [0, 0, 1, 1], [], []>} : vector<8x32xbf16>, vector<32x384xbf16>, vector<8x384xf32> -> vector<8x384xf32>
    %483 = arith.addf %482, %5 : vector<8x384xf32>
    %c0_175 = arith.constant 0 : index
    %c0_176 = arith.constant 0 : index
    %484 = vector.load %arg7[%c0_175, %c0_176] : memref<128x384xf32, #tpu.memory_space<vmem>>, vector<128x384xf32>
    %cst_177 = arith.constant dense<0.000000e+00> : vector<8x384xf32>
    %485 = tpu.matmul %421, %484, %cst_177 {dimension_numbers = #tpu.dot_dimension_numbers<[1], [0], [0], [1], [0, 0, 1, 1], [], []>} : vector<8x128xf32>, vector<128x384xf32>, vector<8x384xf32> -> vector<8x384xf32>
    %486 = vector.extract_strided_slice %483 {offsets = [0, 0], sizes = [8, 128], strides = [1, 1]} : vector<8x384xf32> to vector<8x128xf32>
    %487 = vector.extract_strided_slice %485 {offsets = [0, 0], sizes = [8, 128], strides = [1, 1]} : vector<8x384xf32> to vector<8x128xf32>
    %488 = arith.addf %486, %487 : vector<8x128xf32>
    %489 = arith.negf %488 : vector<8x128xf32>
    %490 = math.exp %489 : vector<8x128xf32>
    %cst_178 = arith.constant 1.000000e+00 : f32
    %491 = vector.broadcast %cst_178 : f32 to vector<8x128xf32>
    %492 = arith.addf %491, %490 : vector<8x128xf32>
    %493 = arith.divf %491, %492 : vector<8x128xf32>
    %494 = vector.extract_strided_slice %483 {offsets = [0, 128], sizes = [8, 128], strides = [1, 1]} : vector<8x384xf32> to vector<8x128xf32>
    %495 = vector.extract_strided_slice %485 {offsets = [0, 128], sizes = [8, 128], strides = [1, 1]} : vector<8x384xf32> to vector<8x128xf32>
    %496 = arith.addf %494, %495 : vector<8x128xf32>
    %497 = arith.negf %496 : vector<8x128xf32>
    %498 = math.exp %497 : vector<8x128xf32>
    %cst_179 = arith.constant 1.000000e+00 : f32
    %499 = vector.broadcast %cst_179 : f32 to vector<8x128xf32>
    %500 = arith.addf %499, %498 : vector<8x128xf32>
    %501 = arith.divf %499, %500 : vector<8x128xf32>
    %502 = vector.extract_strided_slice %483 {offsets = [0, 256], sizes = [8, 128], strides = [1, 1]} : vector<8x384xf32> to vector<8x128xf32>
    %503 = vector.extract_strided_slice %485 {offsets = [0, 256], sizes = [8, 128], strides = [1, 1]} : vector<8x384xf32> to vector<8x128xf32>
    %504 = arith.addf %503, %11 : vector<8x128xf32>
    %505 = arith.mulf %493, %504 : vector<8x128xf32>
    %506 = arith.addf %502, %505 : vector<8x128xf32>
    %507 = math.tanh %506 : vector<8x128xf32>
    %cst_180 = arith.constant 1.000000e+00 : f32
    %508 = vector.broadcast %cst_180 : f32 to vector<8x128xf32>
    %509 = arith.subf %508, %501 : vector<8x128xf32>
    %510 = arith.mulf %509, %507 : vector<8x128xf32>
    %511 = arith.mulf %501, %421 : vector<8x128xf32>
    %512 = arith.addf %510, %511 : vector<8x128xf32>
    %513 = arith.index_cast %477 : i32 to index
    %c0_181 = arith.constant 0 : index
    %c0_182 = arith.constant 0 : index
    %514 = vector.load %arg2[%513, %c0_181, %c0_182] : memref<8x8x32xbf16, #tpu.memory_space<vmem>>, vector<1x8x32xbf16>
    %515 = vector.shape_cast %514 : vector<1x8x32xbf16> to vector<8x32xbf16>
    %c0_183 = arith.constant 0 : index
    %c0_184 = arith.constant 0 : index
    %516 = vector.load %arg4[%c0_183, %c0_184] : memref<32x384xbf16, #tpu.memory_space<vmem>>, vector<32x384xbf16>
    %cst_185 = arith.constant dense<0.000000e+00> : vector<8x384xf32>
    %517 = tpu.matmul %515, %516, %cst_185 {dimension_numbers = #tpu.dot_dimension_numbers<[1], [0], [0], [1], [0, 0, 1, 1], [], []>} : vector<8x32xbf16>, vector<32x384xbf16>, vector<8x384xf32> -> vector<8x384xf32>
    %518 = arith.addf %517, %8 : vector<8x384xf32>
    %c0_186 = arith.constant 0 : index
    %c0_187 = arith.constant 0 : index
    %519 = vector.load %arg8[%c0_186, %c0_187] : memref<128x384xf32, #tpu.memory_space<vmem>>, vector<128x384xf32>
    %cst_188 = arith.constant dense<0.000000e+00> : vector<8x384xf32>
    %520 = tpu.matmul %456, %519, %cst_188 {dimension_numbers = #tpu.dot_dimension_numbers<[1], [0], [0], [1], [0, 0, 1, 1], [], []>} : vector<8x128xf32>, vector<128x384xf32>, vector<8x384xf32> -> vector<8x384xf32>
    %521 = vector.extract_strided_slice %518 {offsets = [0, 0], sizes = [8, 128], strides = [1, 1]} : vector<8x384xf32> to vector<8x128xf32>
    %522 = vector.extract_strided_slice %520 {offsets = [0, 0], sizes = [8, 128], strides = [1, 1]} : vector<8x384xf32> to vector<8x128xf32>
    %523 = arith.addf %521, %522 : vector<8x128xf32>
    %524 = arith.negf %523 : vector<8x128xf32>
    %525 = math.exp %524 : vector<8x128xf32>
    %cst_189 = arith.constant 1.000000e+00 : f32
    %526 = vector.broadcast %cst_189 : f32 to vector<8x128xf32>
    %527 = arith.addf %526, %525 : vector<8x128xf32>
    %528 = arith.divf %526, %527 : vector<8x128xf32>
    %529 = vector.extract_strided_slice %518 {offsets = [0, 128], sizes = [8, 128], strides = [1, 1]} : vector<8x384xf32> to vector<8x128xf32>
    %530 = vector.extract_strided_slice %520 {offsets = [0, 128], sizes = [8, 128], strides = [1, 1]} : vector<8x384xf32> to vector<8x128xf32>
    %531 = arith.addf %529, %530 : vector<8x128xf32>
    %532 = arith.negf %531 : vector<8x128xf32>
    %533 = math.exp %532 : vector<8x128xf32>
    %cst_190 = arith.constant 1.000000e+00 : f32
    %534 = vector.broadcast %cst_190 : f32 to vector<8x128xf32>
    %535 = arith.addf %534, %533 : vector<8x128xf32>
    %536 = arith.divf %534, %535 : vector<8x128xf32>
    %537 = vector.extract_strided_slice %518 {offsets = [0, 256], sizes = [8, 128], strides = [1, 1]} : vector<8x384xf32> to vector<8x128xf32>
    %538 = vector.extract_strided_slice %520 {offsets = [0, 256], sizes = [8, 128], strides = [1, 1]} : vector<8x384xf32> to vector<8x128xf32>
    %539 = arith.addf %538, %14 : vector<8x128xf32>
    %540 = arith.mulf %528, %539 : vector<8x128xf32>
    %541 = arith.addf %537, %540 : vector<8x128xf32>
    %542 = math.tanh %541 : vector<8x128xf32>
    %cst_191 = arith.constant 1.000000e+00 : f32
    %543 = vector.broadcast %cst_191 : f32 to vector<8x128xf32>
    %544 = arith.subf %543, %536 : vector<8x128xf32>
    %545 = arith.mulf %544, %542 : vector<8x128xf32>
    %546 = arith.mulf %536, %456 : vector<8x128xf32>
    %547 = arith.addf %545, %546 : vector<8x128xf32>
    %548 = arith.addi %15, %c5_i32 : i32
    %549 = arith.index_cast %548 : i32 to index
    %c0_192 = arith.constant 0 : index
    %c0_193 = arith.constant 0 : index
    %550 = vector.load %arg11[%549, %c0_192, %c0_193] : memref<8x8x128xf32, #tpu.memory_space<vmem>>, vector<1x8x128xf32>
    %551 = vector.shape_cast %550 : vector<1x8x128xf32> to vector<8x128xf32>
    %552 = arith.addf %551, %512 : vector<8x128xf32>
    %553 = arith.addi %15, %c5_i32 : i32
    %554 = arith.index_cast %553 : i32 to index
    %c0_194 = arith.constant 0 : index
    %c0_195 = arith.constant 0 : index
    %555 = vector.load %arg11[%554, %c0_194, %c0_195] : memref<8x8x128xf32, #tpu.memory_space<vmem>>, vector<1x8x128xf32>
    %556 = vector.shape_cast %555 : vector<1x8x128xf32> to vector<8x128xf32>
    %557 = vector.shape_cast %552 : vector<8x128xf32> to vector<1x8x128xf32>
    tpu.vector_store %arg11[%554, %c0_194, %c0_195], %557 {strides = array<i32>} : memref<8x8x128xf32, #tpu.memory_space<vmem>>, vector<1x8x128xf32>,
    %558 = arith.addi %17, %477 : i32
    %559 = arith.index_cast %558 : i32 to index
    %c0_196 = arith.constant 0 : index
    %c0_197 = arith.constant 0 : index
    %560 = vector.load %arg11[%559, %c0_196, %c0_197] : memref<8x8x128xf32, #tpu.memory_space<vmem>>, vector<1x8x128xf32>
    %561 = vector.shape_cast %560 : vector<1x8x128xf32> to vector<8x128xf32>
    %562 = arith.addf %561, %547 : vector<8x128xf32>
    %563 = arith.addi %17, %477 : i32
    %564 = arith.index_cast %563 : i32 to index
    %c0_198 = arith.constant 0 : index
    %c0_199 = arith.constant 0 : index
    %565 = vector.load %arg11[%564, %c0_198, %c0_199] : memref<8x8x128xf32, #tpu.memory_space<vmem>>, vector<1x8x128xf32>
    %566 = vector.shape_cast %565 : vector<1x8x128xf32> to vector<8x128xf32>
    %567 = vector.shape_cast %562 : vector<8x128xf32> to vector<1x8x128xf32>
    tpu.vector_store %arg11[%564, %c0_198, %c0_199], %567 {strides = array<i32>} : memref<8x8x128xf32, #tpu.memory_space<vmem>>, vector<1x8x128xf32>,
    %c6_i32 = arith.constant 6 : i32
    %c7_i32_200 = arith.constant 7 : i32
    %568 = arith.subi %c7_i32_200, %c6_i32 : i32
    %569 = arith.index_cast %c6_i32 : i32 to index
    %c0_201 = arith.constant 0 : index
    %c0_202 = arith.constant 0 : index
    %570 = vector.load %arg1[%569, %c0_201, %c0_202] : memref<8x8x32xbf16, #tpu.memory_space<vmem>>, vector<1x8x32xbf16>
    %571 = vector.shape_cast %570 : vector<1x8x32xbf16> to vector<8x32xbf16>
    %c0_203 = arith.constant 0 : index
    %c0_204 = arith.constant 0 : index
    %572 = vector.load %arg3[%c0_203, %c0_204] : memref<32x384xbf16, #tpu.memory_space<vmem>>, vector<32x384xbf16>
    %cst_205 = arith.constant dense<0.000000e+00> : vector<8x384xf32>
    %573 = tpu.matmul %571, %572, %cst_205 {dimension_numbers = #tpu.dot_dimension_numbers<[1], [0], [0], [1], [0, 0, 1, 1], [], []>} : vector<8x32xbf16>, vector<32x384xbf16>, vector<8x384xf32> -> vector<8x384xf32>
    %574 = arith.addf %573, %5 : vector<8x384xf32>
    %c0_206 = arith.constant 0 : index
    %c0_207 = arith.constant 0 : index
    %575 = vector.load %arg7[%c0_206, %c0_207] : memref<128x384xf32, #tpu.memory_space<vmem>>, vector<128x384xf32>
    %cst_208 = arith.constant dense<0.000000e+00> : vector<8x384xf32>
    %576 = tpu.matmul %512, %575, %cst_208 {dimension_numbers = #tpu.dot_dimension_numbers<[1], [0], [0], [1], [0, 0, 1, 1], [], []>} : vector<8x128xf32>, vector<128x384xf32>, vector<8x384xf32> -> vector<8x384xf32>
    %577 = vector.extract_strided_slice %574 {offsets = [0, 0], sizes = [8, 128], strides = [1, 1]} : vector<8x384xf32> to vector<8x128xf32>
    %578 = vector.extract_strided_slice %576 {offsets = [0, 0], sizes = [8, 128], strides = [1, 1]} : vector<8x384xf32> to vector<8x128xf32>
    %579 = arith.addf %577, %578 : vector<8x128xf32>
    %580 = arith.negf %579 : vector<8x128xf32>
    %581 = math.exp %580 : vector<8x128xf32>
    %cst_209 = arith.constant 1.000000e+00 : f32
    %582 = vector.broadcast %cst_209 : f32 to vector<8x128xf32>
    %583 = arith.addf %582, %581 : vector<8x128xf32>
    %584 = arith.divf %582, %583 : vector<8x128xf32>
    %585 = vector.extract_strided_slice %574 {offsets = [0, 128], sizes = [8, 128], strides = [1, 1]} : vector<8x384xf32> to vector<8x128xf32>
    %586 = vector.extract_strided_slice %576 {offsets = [0, 128], sizes = [8, 128], strides = [1, 1]} : vector<8x384xf32> to vector<8x128xf32>
    %587 = arith.addf %585, %586 : vector<8x128xf32>
    %588 = arith.negf %587 : vector<8x128xf32>
    %589 = math.exp %588 : vector<8x128xf32>
    %cst_210 = arith.constant 1.000000e+00 : f32
    %590 = vector.broadcast %cst_210 : f32 to vector<8x128xf32>
    %591 = arith.addf %590, %589 : vector<8x128xf32>
    %592 = arith.divf %590, %591 : vector<8x128xf32>
    %593 = vector.extract_strided_slice %574 {offsets = [0, 256], sizes = [8, 128], strides = [1, 1]} : vector<8x384xf32> to vector<8x128xf32>
    %594 = vector.extract_strided_slice %576 {offsets = [0, 256], sizes = [8, 128], strides = [1, 1]} : vector<8x384xf32> to vector<8x128xf32>
    %595 = arith.addf %594, %11 : vector<8x128xf32>
    %596 = arith.mulf %584, %595 : vector<8x128xf32>
    %597 = arith.addf %593, %596 : vector<8x128xf32>
    %598 = math.tanh %597 : vector<8x128xf32>
    %cst_211 = arith.constant 1.000000e+00 : f32
    %599 = vector.broadcast %cst_211 : f32 to vector<8x128xf32>
    %600 = arith.subf %599, %592 : vector<8x128xf32>
    %601 = arith.mulf %600, %598 : vector<8x128xf32>
    %602 = arith.mulf %592, %512 : vector<8x128xf32>
    %603 = arith.addf %601, %602 : vector<8x128xf32>
    %604 = arith.index_cast %568 : i32 to index
    %c0_212 = arith.constant 0 : index
    %c0_213 = arith.constant 0 : index
    %605 = vector.load %arg2[%604, %c0_212, %c0_213] : memref<8x8x32xbf16, #tpu.memory_space<vmem>>, vector<1x8x32xbf16>
    %606 = vector.shape_cast %605 : vector<1x8x32xbf16> to vector<8x32xbf16>
    %c0_214 = arith.constant 0 : index
    %c0_215 = arith.constant 0 : index
    %607 = vector.load %arg4[%c0_214, %c0_215] : memref<32x384xbf16, #tpu.memory_space<vmem>>, vector<32x384xbf16>
    %cst_216 = arith.constant dense<0.000000e+00> : vector<8x384xf32>
    %608 = tpu.matmul %606, %607, %cst_216 {dimension_numbers = #tpu.dot_dimension_numbers<[1], [0], [0], [1], [0, 0, 1, 1], [], []>} : vector<8x32xbf16>, vector<32x384xbf16>, vector<8x384xf32> -> vector<8x384xf32>
    %609 = arith.addf %608, %8 : vector<8x384xf32>
    %c0_217 = arith.constant 0 : index
    %c0_218 = arith.constant 0 : index
    %610 = vector.load %arg8[%c0_217, %c0_218] : memref<128x384xf32, #tpu.memory_space<vmem>>, vector<128x384xf32>
    %cst_219 = arith.constant dense<0.000000e+00> : vector<8x384xf32>
    %611 = tpu.matmul %547, %610, %cst_219 {dimension_numbers = #tpu.dot_dimension_numbers<[1], [0], [0], [1], [0, 0, 1, 1], [], []>} : vector<8x128xf32>, vector<128x384xf32>, vector<8x384xf32> -> vector<8x384xf32>
    %612 = vector.extract_strided_slice %609 {offsets = [0, 0], sizes = [8, 128], strides = [1, 1]} : vector<8x384xf32> to vector<8x128xf32>
    %613 = vector.extract_strided_slice %611 {offsets = [0, 0], sizes = [8, 128], strides = [1, 1]} : vector<8x384xf32> to vector<8x128xf32>
    %614 = arith.addf %612, %613 : vector<8x128xf32>
    %615 = arith.negf %614 : vector<8x128xf32>
    %616 = math.exp %615 : vector<8x128xf32>
    %cst_220 = arith.constant 1.000000e+00 : f32
    %617 = vector.broadcast %cst_220 : f32 to vector<8x128xf32>
    %618 = arith.addf %617, %616 : vector<8x128xf32>
    %619 = arith.divf %617, %618 : vector<8x128xf32>
    %620 = vector.extract_strided_slice %609 {offsets = [0, 128], sizes = [8, 128], strides = [1, 1]} : vector<8x384xf32> to vector<8x128xf32>
    %621 = vector.extract_strided_slice %611 {offsets = [0, 128], sizes = [8, 128], strides = [1, 1]} : vector<8x384xf32> to vector<8x128xf32>
    %622 = arith.addf %620, %621 : vector<8x128xf32>
    %623 = arith.negf %622 : vector<8x128xf32>
    %624 = math.exp %623 : vector<8x128xf32>
    %cst_221 = arith.constant 1.000000e+00 : f32
    %625 = vector.broadcast %cst_221 : f32 to vector<8x128xf32>
    %626 = arith.addf %625, %624 : vector<8x128xf32>
    %627 = arith.divf %625, %626 : vector<8x128xf32>
    %628 = vector.extract_strided_slice %609 {offsets = [0, 256], sizes = [8, 128], strides = [1, 1]} : vector<8x384xf32> to vector<8x128xf32>
    %629 = vector.extract_strided_slice %611 {offsets = [0, 256], sizes = [8, 128], strides = [1, 1]} : vector<8x384xf32> to vector<8x128xf32>
    %630 = arith.addf %629, %14 : vector<8x128xf32>
    %631 = arith.mulf %619, %630 : vector<8x128xf32>
    %632 = arith.addf %628, %631 : vector<8x128xf32>
    %633 = math.tanh %632 : vector<8x128xf32>
    %cst_222 = arith.constant 1.000000e+00 : f32
    %634 = vector.broadcast %cst_222 : f32 to vector<8x128xf32>
    %635 = arith.subf %634, %627 : vector<8x128xf32>
    %636 = arith.mulf %635, %633 : vector<8x128xf32>
    %637 = arith.mulf %627, %547 : vector<8x128xf32>
    %638 = arith.addf %636, %637 : vector<8x128xf32>
    %639 = arith.addi %15, %c6_i32 : i32
    %640 = arith.index_cast %639 : i32 to index
    %c0_223 = arith.constant 0 : index
    %c0_224 = arith.constant 0 : index
    %641 = vector.load %arg11[%640, %c0_223, %c0_224] : memref<8x8x128xf32, #tpu.memory_space<vmem>>, vector<1x8x128xf32>
    %642 = vector.shape_cast %641 : vector<1x8x128xf32> to vector<8x128xf32>
    %643 = arith.addf %642, %603 : vector<8x128xf32>
    %644 = arith.addi %15, %c6_i32 : i32
    %645 = arith.index_cast %644 : i32 to index
    %c0_225 = arith.constant 0 : index
    %c0_226 = arith.constant 0 : index
    %646 = vector.load %arg11[%645, %c0_225, %c0_226] : memref<8x8x128xf32, #tpu.memory_space<vmem>>, vector<1x8x128xf32>
    %647 = vector.shape_cast %646 : vector<1x8x128xf32> to vector<8x128xf32>
    %648 = vector.shape_cast %643 : vector<8x128xf32> to vector<1x8x128xf32>
    tpu.vector_store %arg11[%645, %c0_225, %c0_226], %648 {strides = array<i32>} : memref<8x8x128xf32, #tpu.memory_space<vmem>>, vector<1x8x128xf32>,
    %649 = arith.addi %17, %568 : i32
    %650 = arith.index_cast %649 : i32 to index
    %c0_227 = arith.constant 0 : index
    %c0_228 = arith.constant 0 : index
    %651 = vector.load %arg11[%650, %c0_227, %c0_228] : memref<8x8x128xf32, #tpu.memory_space<vmem>>, vector<1x8x128xf32>
    %652 = vector.shape_cast %651 : vector<1x8x128xf32> to vector<8x128xf32>
    %653 = arith.addf %652, %638 : vector<8x128xf32>
    %654 = arith.addi %17, %568 : i32
    %655 = arith.index_cast %654 : i32 to index
    %c0_229 = arith.constant 0 : index
    %c0_230 = arith.constant 0 : index
    %656 = vector.load %arg11[%655, %c0_229, %c0_230] : memref<8x8x128xf32, #tpu.memory_space<vmem>>, vector<1x8x128xf32>
    %657 = vector.shape_cast %656 : vector<1x8x128xf32> to vector<8x128xf32>
    %658 = vector.shape_cast %653 : vector<8x128xf32> to vector<1x8x128xf32>
    tpu.vector_store %arg11[%655, %c0_229, %c0_230], %658 {strides = array<i32>} : memref<8x8x128xf32, #tpu.memory_space<vmem>>, vector<1x8x128xf32>,
    %c7_i32_231 = arith.constant 7 : i32
    %c7_i32_232 = arith.constant 7 : i32
    %659 = arith.subi %c7_i32_232, %c7_i32_231 : i32
    %660 = arith.index_cast %c7_i32_231 : i32 to index
    %c0_233 = arith.constant 0 : index
    %c0_234 = arith.constant 0 : index
    %661 = vector.load %arg1[%660, %c0_233, %c0_234] : memref<8x8x32xbf16, #tpu.memory_space<vmem>>, vector<1x8x32xbf16>
    %662 = vector.shape_cast %661 : vector<1x8x32xbf16> to vector<8x32xbf16>
    %c0_235 = arith.constant 0 : index
    %c0_236 = arith.constant 0 : index
    %663 = vector.load %arg3[%c0_235, %c0_236] : memref<32x384xbf16, #tpu.memory_space<vmem>>, vector<32x384xbf16>
    %cst_237 = arith.constant dense<0.000000e+00> : vector<8x384xf32>
    %664 = tpu.matmul %662, %663, %cst_237 {dimension_numbers = #tpu.dot_dimension_numbers<[1], [0], [0], [1], [0, 0, 1, 1], [], []>} : vector<8x32xbf16>, vector<32x384xbf16>, vector<8x384xf32> -> vector<8x384xf32>
    %665 = arith.addf %664, %5 : vector<8x384xf32>
    %c0_238 = arith.constant 0 : index
    %c0_239 = arith.constant 0 : index
    %666 = vector.load %arg7[%c0_238, %c0_239] : memref<128x384xf32, #tpu.memory_space<vmem>>, vector<128x384xf32>
    %cst_240 = arith.constant dense<0.000000e+00> : vector<8x384xf32>
    %667 = tpu.matmul %603, %666, %cst_240 {dimension_numbers = #tpu.dot_dimension_numbers<[1], [0], [0], [1], [0, 0, 1, 1], [], []>} : vector<8x128xf32>, vector<128x384xf32>, vector<8x384xf32> -> vector<8x384xf32>
    %668 = vector.extract_strided_slice %665 {offsets = [0, 0], sizes = [8, 128], strides = [1, 1]} : vector<8x384xf32> to vector<8x128xf32>
    %669 = vector.extract_strided_slice %667 {offsets = [0, 0], sizes = [8, 128], strides = [1, 1]} : vector<8x384xf32> to vector<8x128xf32>
    %670 = arith.addf %668, %669 : vector<8x128xf32>
    %671 = arith.negf %670 : vector<8x128xf32>
    %672 = math.exp %671 : vector<8x128xf32>
    %cst_241 = arith.constant 1.000000e+00 : f32
    %673 = vector.broadcast %cst_241 : f32 to vector<8x128xf32>
    %674 = arith.addf %673, %672 : vector<8x128xf32>
    %675 = arith.divf %673, %674 : vector<8x128xf32>
    %676 = vector.extract_strided_slice %665 {offsets = [0, 128], sizes = [8, 128], strides = [1, 1]} : vector<8x384xf32> to vector<8x128xf32>
    %677 = vector.extract_strided_slice %667 {offsets = [0, 128], sizes = [8, 128], strides = [1, 1]} : vector<8x384xf32> to vector<8x128xf32>
    %678 = arith.addf %676, %677 : vector<8x128xf32>
    %679 = arith.negf %678 : vector<8x128xf32>
    %680 = math.exp %679 : vector<8x128xf32>
    %cst_242 = arith.constant 1.000000e+00 : f32
    %681 = vector.broadcast %cst_242 : f32 to vector<8x128xf32>
    %682 = arith.addf %681, %680 : vector<8x128xf32>
    %683 = arith.divf %681, %682 : vector<8x128xf32>
    %684 = vector.extract_strided_slice %665 {offsets = [0, 256], sizes = [8, 128], strides = [1, 1]} : vector<8x384xf32> to vector<8x128xf32>
    %685 = vector.extract_strided_slice %667 {offsets = [0, 256], sizes = [8, 128], strides = [1, 1]} : vector<8x384xf32> to vector<8x128xf32>
    %686 = arith.addf %685, %11 : vector<8x128xf32>
    %687 = arith.mulf %675, %686 : vector<8x128xf32>
    %688 = arith.addf %684, %687 : vector<8x128xf32>
    %689 = math.tanh %688 : vector<8x128xf32>
    %cst_243 = arith.constant 1.000000e+00 : f32
    %690 = vector.broadcast %cst_243 : f32 to vector<8x128xf32>
    %691 = arith.subf %690, %683 : vector<8x128xf32>
    %692 = arith.mulf %691, %689 : vector<8x128xf32>
    %693 = arith.mulf %683, %603 : vector<8x128xf32>
    %694 = arith.addf %692, %693 : vector<8x128xf32>
    %695 = arith.index_cast %659 : i32 to index
    %c0_244 = arith.constant 0 : index
    %c0_245 = arith.constant 0 : index
    %696 = vector.load %arg2[%695, %c0_244, %c0_245] : memref<8x8x32xbf16, #tpu.memory_space<vmem>>, vector<1x8x32xbf16>
    %697 = vector.shape_cast %696 : vector<1x8x32xbf16> to vector<8x32xbf16>
    %c0_246 = arith.constant 0 : index
    %c0_247 = arith.constant 0 : index
    %698 = vector.load %arg4[%c0_246, %c0_247] : memref<32x384xbf16, #tpu.memory_space<vmem>>, vector<32x384xbf16>
    %cst_248 = arith.constant dense<0.000000e+00> : vector<8x384xf32>
    %699 = tpu.matmul %697, %698, %cst_248 {dimension_numbers = #tpu.dot_dimension_numbers<[1], [0], [0], [1], [0, 0, 1, 1], [], []>} : vector<8x32xbf16>, vector<32x384xbf16>, vector<8x384xf32> -> vector<8x384xf32>
    %700 = arith.addf %699, %8 : vector<8x384xf32>
    %c0_249 = arith.constant 0 : index
    %c0_250 = arith.constant 0 : index
    %701 = vector.load %arg8[%c0_249, %c0_250] : memref<128x384xf32, #tpu.memory_space<vmem>>, vector<128x384xf32>
    %cst_251 = arith.constant dense<0.000000e+00> : vector<8x384xf32>
    %702 = tpu.matmul %638, %701, %cst_251 {dimension_numbers = #tpu.dot_dimension_numbers<[1], [0], [0], [1], [0, 0, 1, 1], [], []>} : vector<8x128xf32>, vector<128x384xf32>, vector<8x384xf32> -> vector<8x384xf32>
    %703 = vector.extract_strided_slice %700 {offsets = [0, 0], sizes = [8, 128], strides = [1, 1]} : vector<8x384xf32> to vector<8x128xf32>
    %704 = vector.extract_strided_slice %702 {offsets = [0, 0], sizes = [8, 128], strides = [1, 1]} : vector<8x384xf32> to vector<8x128xf32>
    %705 = arith.addf %703, %704 : vector<8x128xf32>
    %706 = arith.negf %705 : vector<8x128xf32>
    %707 = math.exp %706 : vector<8x128xf32>
    %cst_252 = arith.constant 1.000000e+00 : f32
    %708 = vector.broadcast %cst_252 : f32 to vector<8x128xf32>
    %709 = arith.addf %708, %707 : vector<8x128xf32>
    %710 = arith.divf %708, %709 : vector<8x128xf32>
    %711 = vector.extract_strided_slice %700 {offsets = [0, 128], sizes = [8, 128], strides = [1, 1]} : vector<8x384xf32> to vector<8x128xf32>
    %712 = vector.extract_strided_slice %702 {offsets = [0, 128], sizes = [8, 128], strides = [1, 1]} : vector<8x384xf32> to vector<8x128xf32>
    %713 = arith.addf %711, %712 : vector<8x128xf32>
    %714 = arith.negf %713 : vector<8x128xf32>
    %715 = math.exp %714 : vector<8x128xf32>
    %cst_253 = arith.constant 1.000000e+00 : f32
    %716 = vector.broadcast %cst_253 : f32 to vector<8x128xf32>
    %717 = arith.addf %716, %715 : vector<8x128xf32>
    %718 = arith.divf %716, %717 : vector<8x128xf32>
    %719 = vector.extract_strided_slice %700 {offsets = [0, 256], sizes = [8, 128], strides = [1, 1]} : vector<8x384xf32> to vector<8x128xf32>
    %720 = vector.extract_strided_slice %702 {offsets = [0, 256], sizes = [8, 128], strides = [1, 1]} : vector<8x384xf32> to vector<8x128xf32>
    %721 = arith.addf %720, %14 : vector<8x128xf32>
    %722 = arith.mulf %710, %721 : vector<8x128xf32>
    %723 = arith.addf %719, %722 : vector<8x128xf32>
    %724 = math.tanh %723 : vector<8x128xf32>
    %cst_254 = arith.constant 1.000000e+00 : f32
    %725 = vector.broadcast %cst_254 : f32 to vector<8x128xf32>
    %726 = arith.subf %725, %718 : vector<8x128xf32>
    %727 = arith.mulf %726, %724 : vector<8x128xf32>
    %728 = arith.mulf %718, %638 : vector<8x128xf32>
    %729 = arith.addf %727, %728 : vector<8x128xf32>
    %730 = arith.addi %15, %c7_i32_231 : i32
    %731 = arith.index_cast %730 : i32 to index
    %c0_255 = arith.constant 0 : index
    %c0_256 = arith.constant 0 : index
    %732 = vector.load %arg11[%731, %c0_255, %c0_256] : memref<8x8x128xf32, #tpu.memory_space<vmem>>, vector<1x8x128xf32>
    %733 = vector.shape_cast %732 : vector<1x8x128xf32> to vector<8x128xf32>
    %734 = arith.addf %733, %694 : vector<8x128xf32>
    %735 = arith.addi %15, %c7_i32_231 : i32
    %736 = arith.index_cast %735 : i32 to index
    %c0_257 = arith.constant 0 : index
    %c0_258 = arith.constant 0 : index
    %737 = vector.load %arg11[%736, %c0_257, %c0_258] : memref<8x8x128xf32, #tpu.memory_space<vmem>>, vector<1x8x128xf32>
    %738 = vector.shape_cast %737 : vector<1x8x128xf32> to vector<8x128xf32>
    %739 = vector.shape_cast %734 : vector<8x128xf32> to vector<1x8x128xf32>
    tpu.vector_store %arg11[%736, %c0_257, %c0_258], %739 {strides = array<i32>} : memref<8x8x128xf32, #tpu.memory_space<vmem>>, vector<1x8x128xf32>,
    %740 = arith.addi %17, %659 : i32
    %741 = arith.index_cast %740 : i32 to index
    %c0_259 = arith.constant 0 : index
    %c0_260 = arith.constant 0 : index
    %742 = vector.load %arg11[%741, %c0_259, %c0_260] : memref<8x8x128xf32, #tpu.memory_space<vmem>>, vector<1x8x128xf32>
    %743 = vector.shape_cast %742 : vector<1x8x128xf32> to vector<8x128xf32>
    %744 = arith.addf %743, %729 : vector<8x128xf32>
    %745 = arith.addi %17, %659 : i32
    %746 = arith.index_cast %745 : i32 to index
    %c0_261 = arith.constant 0 : index
    %c0_262 = arith.constant 0 : index
    %747 = vector.load %arg11[%746, %c0_261, %c0_262] : memref<8x8x128xf32, #tpu.memory_space<vmem>>, vector<1x8x128xf32>
    %748 = vector.shape_cast %747 : vector<1x8x128xf32> to vector<8x128xf32>
    %749 = vector.shape_cast %744 : vector<8x128xf32> to vector<1x8x128xf32>
    tpu.vector_store %arg11[%746, %c0_261, %c0_262], %749 {strides = array<i32>} : memref<8x8x128xf32, #tpu.memory_space<vmem>>, vector<1x8x128xf32>,
    %c8_i32_263 = arith.constant 8 : i32
    %c0_264 = arith.constant 0 : index
    %c0_265 = arith.constant 0 : index
    %c0_266 = arith.constant 0 : index
    %750 = vector.load %arg12[%c0_264, %c0_265, %c0_266] : memref<2x8x128xf32, #tpu.memory_space<vmem>>, vector<1x8x128xf32>
    %751 = vector.shape_cast %750 : vector<1x8x128xf32> to vector<8x128xf32>
    %752 = vector.shape_cast %694 : vector<8x128xf32> to vector<1x8x128xf32>
    tpu.vector_store %arg12[%c0_264, %c0_265, %c0_266], %752 {strides = array<i32>} : memref<2x8x128xf32, #tpu.memory_space<vmem>>, vector<1x8x128xf32>,
    %c1_267 = arith.constant 1 : index
    %c0_268 = arith.constant 0 : index
    %c0_269 = arith.constant 0 : index
    %753 = vector.load %arg12[%c1_267, %c0_268, %c0_269] : memref<2x8x128xf32, #tpu.memory_space<vmem>>, vector<1x8x128xf32>
    %754 = vector.shape_cast %753 : vector<1x8x128xf32> to vector<8x128xf32>
    %755 = vector.shape_cast %729 : vector<8x128xf32> to vector<1x8x128xf32>
    tpu.vector_store %arg12[%c1_267, %c0_268, %c0_269], %755 {strides = array<i32>} : memref<2x8x128xf32, #tpu.memory_space<vmem>>, vector<1x8x128xf32>,
    return
  }
  func.func @transform_0(%arg0: i32) -> (i32, i32, i32) {
    %c0_i32 = arith.constant 0 : i32
    %c0_i32_0 = arith.constant 0 : i32
    %c0_i32_1 = arith.constant 0 : i32
    return %arg0, %c0_i32, %c0_i32_0 : i32, i32, i32
  }
  func.func @transform_1(%arg0: i32) -> (i32, i32, i32) {
    %c0_i32 = arith.constant 0 : i32
    %0 = arith.subi %c0_i32, %arg0 : i32
    %c0_i32_0 = arith.constant 0 : i32
    %c0_i32_1 = arith.constant 0 : i32
    %c0_i32_2 = arith.constant 0 : i32
    return %0, %c0_i32_0, %c0_i32_1 : i32, i32, i32
  }
  func.func @transform_2(%arg0: i32) -> (i32, i32) {
    %c0_i32 = arith.constant 0 : i32
    %c0_i32_0 = arith.constant 0 : i32
    %c0_i32_1 = arith.constant 0 : i32
    return %c0_i32, %c0_i32_0 : i32, i32
  }
  func.func @transform_3(%arg0: i32) -> (i32, i32) {
    %c0_i32 = arith.constant 0 : i32
    %c0_i32_0 = arith.constant 0 : i32
    %c0_i32_1 = arith.constant 0 : i32
    return %c0_i32, %c0_i32_0 : i32, i32
  }
  func.func @transform_4(%arg0: i32) -> (i32, i32) {
    %c0_i32 = arith.constant 0 : i32
    %c0_i32_0 = arith.constant 0 : i32
    %c0_i32_1 = arith.constant 0 : i32
    return %c0_i32, %c0_i32_0 : i32, i32
  }
  func.func @transform_5(%arg0: i32) -> (i32, i32) {
    %c0_i32 = arith.constant 0 : i32
    %c0_i32_0 = arith.constant 0 : i32
    %c0_i32_1 = arith.constant 0 : i32
    return %c0_i32, %c0_i32_0 : i32, i32
  }
  func.func @transform_6(%arg0: i32) -> (i32, i32) {
    %c0_i32 = arith.constant 0 : i32
    %c0_i32_0 = arith.constant 0 : i32
    %c0_i32_1 = arith.constant 0 : i32
    return %c0_i32, %c0_i32_0 : i32, i32
  }
  func.func @transform_7(%arg0: i32) -> (i32, i32) {
    %c0_i32 = arith.constant 0 : i32
    %c0_i32_0 = arith.constant 0 : i32
    %c0_i32_1 = arith.constant 0 : i32
    return %c0_i32, %c0_i32_0 : i32, i32
  }
  func.func @transform_8(%arg0: i32) -> (i32, i32) {
    %c0_i32 = arith.constant 0 : i32
    %c0_i32_0 = arith.constant 0 : i32
    %c0_i32_1 = arith.constant 0 : i32
    return %c0_i32, %c0_i32_0 : i32, i32
  }
  func.func @transform_9(%arg0: i32) -> (i32, i32) {
    %c0_i32 = arith.constant 0 : i32
    %c0_i32_0 = arith.constant 0 : i32
    %c0_i32_1 = arith.constant 0 : i32
    return %c0_i32, %c0_i32_0 : i32, i32
  }
  func.func @transform_10(%arg0: i32) -> (i32, i32, i32) {
    %c0_i32 = arith.constant 0 : i32
    %c0_i32_0 = arith.constant 0 : i32
    %c0_i32_1 = arith.constant 0 : i32
    %c0_i32_2 = arith.constant 0 : i32
    return %c0_i32, %c0_i32_0, %c0_i32_1 : i32, i32, i32
  }
  func.func @transform_11(%arg0: i32) -> (i32, i32, i32) {
    %c0_i32 = arith.constant 0 : i32
    %c0_i32_0 = arith.constant 0 : i32
    %c0_i32_1 = arith.constant 0 : i32
    %c0_i32_2 = arith.constant 0 : i32
    return %c0_i32, %c0_i32_0, %c0_i32_1 : i32, i32, i32
  }
}

</mosaic_0001>

<bundles_post_ra>
// kernel: encoder_forward.1
= control target key start
LH: loop header
LB: loop body
LE: loop exit
PB: predicated region body
PF: predicated region fallthrough
CT: control target
= control target key end

     0   :  { %v11029_v1 = vmov 0   ;;  %v11031_v2 = vmov 0.0   ;;  %vm8028_vm0 = vmmov 0   ;;  %vm169_vm1 = vcmask 261120   ;;  %s11017_s2 = inlined_call_operand.vmem [shape: bf16[32,384], index: 2, kind: input, shape index: {}]   ;;  %s11018_s6 = inlined_call_operand.vmem [shape: f32[128,384], index: 6, kind: input, shape index: {}]   ;;  %s11019_s0 = inlined_call_operand.vmem [shape: bf16[8,8,32], index: 0, kind: input, shape index: {}, may-alias: {0,1}]   ;;  %s11020_s3 = inlined_call_operand.vmem [shape: bf16[32,384], index: 3, kind: input, shape index: {}]   ;;  %s11021_s7 = inlined_call_operand.vmem [shape: f32[128,384], index: 7, kind: input, shape index: {}]   ;;  %s11022_s1 = inlined_call_operand.vmem [shape: bf16[8,8,32], index: 1, kind: input, shape index: {}, may-alias: {0,1}]   ;;  %s11023_s4 = inlined_call_operand.vmem [shape: f32[1,384], index: 4, kind: input, shape index: {}]   ;;  %s11024_s8 = inlined_call_operand.vmem [shape: f32[1,128], index: 8, kind: input, shape index: {}]   ;;  %s11025_s5 = inlined_call_operand.vmem [shape: f32[1,384], index: 5, kind: input, shape index: {}]   ;;  %s11026_s10 = inlined_call_operand.vmem [shape: f32[8,8,128], index: 10, kind: output, shape index: {0}]   ;;  %s11027_s9 = inlined_call_operand.vmem [shape: f32[1,128], index: 9, kind: input, shape index: {}]   ;;  %s11028_s11 = inlined_call_operand.vmem [shape: f32[2,8,128], index: 11, kind: output, shape index: {1}]  }
   0x1   :  { %v8093_v0 = vld [vmem:[%s11017_s2 + $0x4] ss:$12 sps:$4 sm:$0xff]   ;;  %205 = vmatprep.mubr.bf16.mxu0 %v11029_v1  ;;  %6192 = vmatprep.subr.bf16.mxu1 %v11031_v2  ;;  %v8100_v3 = vld [vmem:[%s11017_s2] ss:$12 sps:$4 sm:$0xff]   ;;  %v8108_v4 = vld [vmem:[%s11017_s2 + $0x1c] ss:$12 sps:$4 sm:$0xff]  }
   0x2   :  { %6196 = vmatprep.mubr.msk.bf16.mxu1 %vm8028_vm0, %v11031_v2  ;;  %173 = vmatprep.subr.bf16.mxu0 %v8093_v0  ;;  %v8114_v5 = vld [vmem:[%s11017_s2 + $0x18] ss:$12 sps:$4 sm:$0xff]   ;;  %v255_v6 = vld [vmem:[%s11018_s6 + $0x8] sm:$0xff]  ;;  %v264_v12 = vld [vmem:[%s11018_s6 + $0x50] sm:$0xff]  ;;  %v11033_v36 = vmov 0.0|0.0  }
   0x3   :  { %174 = vmatpush1.bf16.msra.mxu0 %v8100_v3  ;;  %v258_v7 = vld [vmem:[%s11018_s6 + $0x20] sm:$0xff]  ;;  %v257_v10 = vld [vmem:[%s11018_s6 + $0x18] sm:$0xff]  ;;  %v260_v15 = vld [vmem:[%s11018_s6 + $0x30] sm:$0xff] }
   0x4   :  { %175 = vmatprep.subr.bf16.mxu0 %v8108_v4  ;;  %v8123_v8 = vpack.c.bf16 %v258_v7, %v255_v6  ;;  %v254_v9 = vld [vmem:[%s11018_s6] sm:$0xff]  ;;  %v261_v11 = vld [vmem:[%s11018_s6 + $0x38] sm:$0xff]  ;;  %v263_v17 = vld [vmem:[%s11018_s6 + $0x48] sm:$0xff] }
   0x5   :  { %v128_v13 = vld [vmem:[%s11019_s0] sm:$0xf]  ;;  %v8141_v14 = vpack.c.bf16 %v257_v10, %v254_v9  ;;  %v8147_v16 = vpack.c.bf16 %v264_v12, %v261_v11  ;;  %v267_v18 = vld [vmem:[%s11018_s6 + $0x68] sm:$0xff]  ;;  %v8163_v21 = vpack.c.bf16 %v263_v17, %v260_v15  ;;  %v269_v24 = vld [vmem:[%s11018_s6 + $0x78] sm:$0xff] }
   0x6   :  { %v270_v19 = vld [vmem:[%s11018_s6 + $0x80] sm:$0xff]  ;;  %v7786_v20 = vld [vmem:[%s11017_s2 + $0x8] ss:$12 sps:$4 sm:$0xff]   ;;  %v273_v26 = vld [vmem:[%s11018_s6 + $0x98] sm:$0xff] }
   0x7   :  { %176 = vmatpush1.bf16.msra.mxu0 %v8114_v5  ;;  %6193 = vmatpush3.bf16.msra.mxu1 %v7786_v20  ;;  %v8166_v22 = vpack.c.bf16 %v270_v19, %v267_v18  ;;  %v266_v23 = vld [vmem:[%s11018_s6 + $0x60] sm:$0xff]  ;;  %v276_v27 = vld [vmem:[%s11018_s6 + $0xb0] sm:$0xff]  ;;  %v259_v29 = vld [vmem:[%s11018_s6 + $0x28] sm:$0xff] }
   0x8   :  { %6881 = vmatprep.subr.bf16.mxu0 %v8123_v8  ;;  %6194 = vmatprep.subr.bf16.mxu1 %v11031_v2  ;;  %v7787_v25 = vld [vmem:[%s11017_s2 + $0x20] ss:$12 sps:$4 sm:$0xff]   ;;  %v256_v28 = vld [vmem:[%s11018_s6 + $0x10] sm:$0xff]  ;;  %v8192_v30 = vpack.c.bf16 %v269_v24, %v266_v23  ;;  %v8203_v34 = vpack.c.bf16 %v276_v27, %v273_v26  ;;  %v265_v38 = vld [vmem:[%s11018_s6 + $0x58] sm:$0xff] }
   0x9   :  { %v272_v31 = vld [vmem:[%s11018_s6 + $0x90] sm:$0xff]  ;;  %v275_v32 = vld [vmem:[%s11018_s6 + $0xa8] sm:$0xff]  ;;  %v8200_v33 = vpack.c.bf16 %v259_v29, %v256_v28  ;;  %v262_v37 = vld [vmem:[%s11018_s6 + $0x40] sm:$0xff] }
   0xa   :  { %5675 = vmatmul.mubr.msk.bf16.vlgmr.msra.gmra.mrb[0].mxu0 %vm169_vm1, %v128_v13  ;;  %v279_v35 = vld [vmem:[%s11018_s6 + $0xc8] sm:$0xff]  ;;  %v282_v39 = vld [vmem:[%s11018_s6 + $0xe0] sm:$0xff]  ;;  %v8220_v40 = vpack.c.bf16 %v275_v32, %v272_v31  ;;  %v8226_v42 = vpack.c.bf16 %v265_v38, %v262_v37  ;;  %v281_v44 = vld [vmem:[%s11018_s6 + $0xd8] sm:$0xff] }
   0xb   :  { %6883 = vmatpush1.bf16.msra.mxu0 %v8141_v14  ;;  %366 = vmatprep.mubr.f32.mxu0 %v11031_v2  ;;  %v278_v41 = vld [vmem:[%s11018_s6 + $0xc0] sm:$0xff]  ;;  %v8229_v43 = vpack.c.bf16 %v282_v39, %v279_v35  ;;  %v268_v45 = vld [vmem:[%s11018_s6 + $0x70] sm:$0xff]  ;;  %v271_v46 = vld [vmem:[%s11018_s6 + $0x88] sm:$0xff] }
   0xc   :  { %6885 = vmatprep.subr.bf16.mxu0 %v8147_v16  ;;  %6195 = vmatpush3.bf16.msra.mxu1 %v7787_v25  ;;  %v285_v47 = vld [vmem:[%s11018_s6 + $0xf8] sm:$0xff]  ;;  %v288_v48 = vld [vmem:[%s11018_s6 + $0x110] sm:$0xff]  ;;  %v8250_v49 = vpack.c.bf16 %v281_v44, %v278_v41  ;;  %v8256_v51 = vpack.c.bf16 %v271_v46, %v268_v45  ;;  %v287_v53 = vld [vmem:[%s11018_s6 + $0x108] sm:$0xff] }
   0xd   :  { %6912 = vmatprep.subr.bf16.mxu1 %v11033_v36  ;;  %v284_v50 = vld [vmem:[%s11018_s6 + $0xf0] sm:$0xff]  ;;  %v8259_v52 = vpack.c.bf16 %v288_v48, %v285_v47  ;;  %v274_v54 = vld [vmem:[%s11018_s6 + $0xa0] sm:$0xff]  ;;  %v277_v55 = vld [vmem:[%s11018_s6 + $0xb8] sm:$0xff] }
   0xe   :  { %v291_v56 = vld [vmem:[%s11018_s6 + $0x128] sm:$0xff]  ;;  %v294_v57 = vld [vmem:[%s11018_s6 + $0x140] sm:$0xff]  ;;  %v8278_v58 = vpack.c.bf16 %v287_v53, %v284_v50  ;;  %v8284_v60 = vpack.c.bf16 %v277_v55, %v274_v54  ;;  %v293_v62 = vld [vmem:[%s11018_s6 + $0x138] sm:$0xff] }
   0xf   :  { %6887 = vmatpush1.bf16.msra.mxu0 %v8163_v21  ;;  %6197 = vmatmul.mubr.msk.bf16.vlgmr.msra.gmra.mrb[0].mxu1 %vm169_vm1, %v128_v13  ;;  %v290_v59 = vld [vmem:[%s11018_s6 + $0x120] sm:$0xff]  ;;  %v8287_v61 = vpack.c.bf16 %v294_v57, %v291_v56  ;;  %v280_v63 = vld [vmem:[%s11018_s6 + $0xd0] sm:$0xff]  ;;  %v283_v6 = vld [vmem:[%s11018_s6 + $0xe8] sm:$0xff] }
  0x10   :  { %6889 = vmatprep.subr.bf16.mxu0 %v8166_v22  ;;  %6914 = vmatpush3.bf16.msra.mxu1 %v8200_v33  ;;  %v297_v7 = vld [vmem:[%s11018_s6 + $0x158] sm:$0xff]  ;;  %v300_v9 = vld [vmem:[%s11018_s6 + $0x170] sm:$0xff]  ;;  %v8306_v10 = vpack.c.bf16 %v293_v62, %v290_v59  ;;  %v299_v12 = vld [vmem:[%s11018_s6 + $0x168] sm:$0xff]  ;;  %v8315_v13 = vpack.c.bf16 %v283_v6, %v280_v63 }
  0x11   :  { %6915 = vmatprep.subr.bf16.mxu1 %v11033_v36  ;;  %6232 = vmatprep.mubr.msk.f32.mxu1 %vm8028_vm0, %v11031_v2  ;;  %v296_v11 = vld [vmem:[%s11018_s6 + $0x150] sm:$0xff]  ;;  %v286_v15 = vld [vmem:[%s11018_s6 + $0x100] sm:$0xff]  ;;  %v8321_v17 = vpack.c.bf16 %v300_v9, %v297_v7  ;;  %v289_v18 = vld [vmem:[%s11018_s6 + $0x118] sm:$0xff] }
  0x12   :  { %v8328_v19 = vpack.c.bf16 %v299_v12, %v296_v11  ;;  %v8331_v20 = vpack.c.bf16 %v289_v18, %v286_v15  ;;  %v8337_v23 = vld [vmem:[%s11020_s3 + $0x4] ss:$12 sps:$4 sm:$0xff]   ;;  %v295_v25 = vld [vmem:[%s11018_s6 + $0x148] sm:$0xff]  ;;  %v301_v37 = vld [vmem:[%s11018_s6 + $0x178] sm:$0xff] }
  0x13   :  { %6891 = vmatpush1.bf16.msra.mxu0 %v8192_v30  ;;  %v292_v24 = vld [vmem:[%s11018_s6 + $0x130] sm:$0xff]  ;;  %v8350_v26 = vld [vmem:[%s11020_s3] ss:$12 sps:$4 sm:$0xff]   ;;  %v8357_v27 = vld [vmem:[%s11020_s3 + $0x1c] ss:$12 sps:$4 sm:$0xff]  }
  0x14   :  { %6893 = vmatprep.subr.bf16.mxu0 %v8203_v34  ;;  %6917 = vmatpush3.bf16.msra.mxu1 %v8226_v42  ;;  %v592_v28 = vld [vmem:[%s11021_s7 + $0x8] sm:$0xff]  ;;  %v8363_v29 = vpack.c.bf16 %v295_v25, %v292_v24  ;;  %v8368_v31 = vld [vmem:[%s11020_s3 + $0x18] ss:$12 sps:$4 sm:$0xff]   ;;  %v601_v44 = vld [vmem:[%s11021_s7 + $0x50] sm:$0xff] }
  0x15   :  { %6918 = vmatprep.subr.bf16.mxu1 %v11033_v36  ;;  %v595_v32 = vld [vmem:[%s11021_s7 + $0x20] sm:$0xff]  ;;  %v594_v39 = vld [vmem:[%s11021_s7 + $0x18] sm:$0xff]  ;;  %v597_v48 = vld [vmem:[%s11021_s7 + $0x30] sm:$0xff] }
  0x16   :  { %v298_v35 = vld [vmem:[%s11018_s6 + $0x160] sm:$0xff]  ;;  %v598_v41 = vld [vmem:[%s11021_s7 + $0x38] sm:$0xff]  ;;  %v8395_v45 = vpack.c.bf16 %v595_v32, %v592_v28  ;;  %v600_v50 = vld [vmem:[%s11021_s7 + $0x48] sm:$0xff] }
  0x17   :  { %6895 = vmatpush1.bf16.msra.mxu0 %v8220_v40  ;;  %v591_v38 = vld [vmem:[%s11021_s7] sm:$0xff]  ;;  %v8398_v46 = vpack.c.bf16 %v301_v37, %v298_v35  ;;  %v5679_v47 = vld [vmem:[%s11022_s1 + $0x1c] sm:$0xf]  ;;  %v7794_v53 = vld [vmem:[%s11020_s3 + $0x8] ss:$12 sps:$4 sm:$0xff]   ;;  %v8423_v57 = vpack.c.bf16 %v601_v44, %v598_v41  ;;  %v8438_v6 = vpack.c.bf16 %v600_v50, %v597_v48 }
  0x18   :  { %6897 = vmatprep.subr.bf16.mxu0 %v8229_v43  ;;  %6920 = vmatpush3.bf16.msra.mxu1 %v8256_v51  ;;  %v8414_v54 = vpack.c.bf16 %v594_v39, %v591_v38  ;;  %v604_v55 = vld [vmem:[%s11021_s7 + $0x68] sm:$0xff]  ;;  %v607_v56 = vld [vmem:[%s11021_s7 + $0x80] sm:$0xff]  ;;  %v606_v62 = vld [vmem:[%s11021_s7 + $0x78] sm:$0xff] }
  0x19   :  { %6921 = vmatprep.subr.bf16.mxu1 %v11033_v36  ;;  %v603_v59 = vld [vmem:[%s11021_s7 + $0x60] sm:$0xff]  ;;  %v610_v7 = vld [vmem:[%s11021_s7 + $0x98] sm:$0xff]  ;;  %v613_v9 = vld [vmem:[%s11021_s7 + $0xb0] sm:$0xff]  ;;  %v8454_v15 = vpack.c.bf16 %v607_v56, %v604_v55 }
  0x1a   :  { %v7795_v63 = vld [vmem:[%s11020_s3 + $0x20] ss:$12 sps:$4 sm:$0xff]   ;;  %v593_v11 = vld [vmem:[%s11021_s7 + $0x10] sm:$0xff]  ;;  %v8467_v25 = vpack.c.bf16 %v606_v62, %v603_v59  ;;  %v602_v37 = vld [vmem:[%s11021_s7 + $0x58] sm:$0xff]  ;;  %v8482_v38 = vpack.c.bf16 %v613_v9, %v610_v7 }
  0x1b   :  { %6899 = vmatpush1.bf16.msra.mxu0 %v8250_v49  ;;  %v596_v12 = vld [vmem:[%s11021_s7 + $0x28] sm:$0xff]  ;;  %v609_v18 = vld [vmem:[%s11021_s7 + $0x90] sm:$0xff]  ;;  %v619_v32 = vld [vmem:[%s11021_s7 + $0xe0] sm:$0xff] }
  0x1c   :  { %6901 = vmatprep.subr.bf16.mxu0 %v8259_v52  ;;  %6923 = vmatpush3.bf16.msra.mxu1 %v8284_v60  ;;  %v612_v24 = vld [vmem:[%s11021_s7 + $0xa8] sm:$0xff]  ;;  %v599_v35 = vld [vmem:[%s11021_s7 + $0x40] sm:$0xff]  ;;  %v8484_v39 = vpack.c.bf16 %v596_v12, %v593_v11  ;;  %v618_v44 = vld [vmem:[%s11021_s7 + $0xd8] sm:$0xff] }
  0x1d   :  { %6924 = vmatprep.subr.bf16.mxu1 %v11033_v36  ;;  %v616_v28 = vld [vmem:[%s11021_s7 + $0xc8] sm:$0xff]  ;;  %v615_v41 = vld [vmem:[%s11021_s7 + $0xc0] sm:$0xff]  ;;  %v8494_v48 = vpack.c.bf16 %v612_v24, %v609_v18  ;;  %v622_v50 = vld [vmem:[%s11021_s7 + $0xf8] sm:$0xff]  ;;  %v8513_v62 = vpack.c.bf16 %v602_v37, %v599_v35 }
  0x1e   :  { %v605_v55 = vld [vmem:[%s11021_s7 + $0x70] sm:$0xff]  ;;  %v608_v56 = vld [vmem:[%s11021_s7 + $0x88] sm:$0xff]  ;;  %v8510_v59 = vpack.c.bf16 %v619_v32, %v616_v28  ;;  %v8525_v7 = vpack.c.bf16 %v618_v44, %v615_v41  ;;  %v631_v11 = vld [vmem:[%s11021_s7 + $0x140] sm:$0xff] }
  0x1f   :  { %6903 = vmatpush1.bf16.msra.mxu0 %v8278_v58  ;;  %v628_v9 = vld [vmem:[%s11021_s7 + $0x128] sm:$0xff]  ;;  %v611_v12 = vld [vmem:[%s11021_s7 + $0xa0] sm:$0xff]  ;;  %v614_v18 = vld [vmem:[%s11021_s7 + $0xb8] sm:$0xff]  ;;  %v8543_v28 = vpack.c.bf16 %v608_v56, %v605_v55 }
  0x20   :  { %6905 = vmatprep.subr.bf16.mxu0 %v8287_v61  ;;  %6926 = vmatpush3.bf16.msra.mxu1 %v8315_v13  ;;  %v627_v32 = vld [vmem:[%s11021_s7 + $0x120] sm:$0xff]  ;;  %v630_v35 = vld [vmem:[%s11021_s7 + $0x138] sm:$0xff]  ;;  %v8559_v44 = vpack.c.bf16 %v631_v11, %v628_v9  ;;  %v617_v55 = vld [vmem:[%s11021_s7 + $0xd0] sm:$0xff] }
  0x21   :  { %6927 = vmatprep.subr.bf16.mxu1 %v11033_v36  ;;  %v634_v41 = vld [vmem:[%s11021_s7 + $0x158] sm:$0xff]  ;;  %v620_v56 = vld [vmem:[%s11021_s7 + $0xe8] sm:$0xff]  ;;  %v633_v9 = vld [vmem:[%s11021_s7 + $0x150] sm:$0xff] }
  0x22   :  { %v636_v11 = vld [vmem:[%s11021_s7 + $0x168] sm:$0xff] }
  0x23   :  { %6907 = vmatpush1.bf16.msra.mxu0 %v8306_v10 }
  0x24   :  { %6909 = vmatprep.subr.bf16.mxu0 %v8321_v17  ;;  %6929 = vmatpush3.bf16.msra.mxu1 %v8331_v20 }
  0x25   :  { %6930 = vmatprep.subr.bf16.mxu1 %v11033_v36 }
  0x27   :  { %6911 = vmatpush1.bf16.msra.mxu0 %v8328_v19 }
  0x28   :  { %510 = vmatprep.subr.bf16.mxu0 %v8337_v23  ;;  %6932 = vmatpush3.bf16.msra.mxu1 %v8363_v29 }
  0x29   :  { %6933 = vmatprep.subr.bf16.mxu1 %v11033_v36 }
  0x2a   :  { %367 = vmatmul.mubr.f32.vlgmr.msra.gmra.mrb[4].mxu0 %v11031_v2 }
  0x2b   :  { %511 = vmatpush1.bf16.msra.mxu0 %v8350_v26  ;;  %542 = vmatprep.mubr.bf16.mxu0 %v11029_v1 }
  0x2c   :  { %512 = vmatprep.subr.bf16.mxu0 %v8357_v27  ;;  %6935 = vmatpush3.bf16.msra.mxu1 %v8398_v46 }
  0x2d   :  { %6235 = vmatprep.subr.bf16.mxu1 %v11031_v2 }
  0x2f   :  { %513 = vmatpush1.bf16.msra.mxu0 %v8368_v31  ;;  %6233 = vmatmul.mubr.f32.vlgmr.msra.gmra.mrb[4].mxu1 %v11031_v2 }
  0x30   :  { %6937 = vmatprep.subr.bf16.mxu0 %v8395_v45  ;;  %6236 = vmatpush3.bf16.msra.mxu1 %v7794_v53  ;;  %v625_v53 = vld [vmem:[%s11021_s7 + $0x110] sm:$0xff] }
  0x31   :  { %6237 = vmatprep.subr.bf16.mxu1 %v11031_v2  ;;  %6239 = vmatprep.mubr.msk.bf16.mxu1 %vm8028_vm0, %v11031_v2  ;;  %v8540_v24 = vpack.c.bf16 %v625_v53, %v622_v50  ;;  %v8562_v50 = vpack.c.bf16 %v614_v18, %v611_v12  ;;  %v637_v53 = vld [vmem:[%s11021_s7 + $0x170] sm:$0xff]  ;;  %v8587_v12 = vpack.c.bf16 %v620_v56, %v617_v55  ;;  %v623_v18 = vld [vmem:[%s11021_s7 + $0x100] sm:$0xff]  ;;  %v632_v55 = vld [vmem:[%s11021_s7 + $0x148] sm:$0xff] }
  0x32   :  { %5686 = vmatmul.mubr.msk.bf16.vlgmr.msra.gmra.mrb[8].mxu0 %vm169_vm1, %v5679_v47 }
  0x33   :  { %6939 = vmatpush1.bf16.msra.mxu0 %v8414_v54  ;;  %703 = vmatprep.mubr.f32.mxu0 %v11031_v2 }
  0x34   :  { %6941 = vmatprep.subr.bf16.mxu0 %v8423_v57  ;;  %6238 = vmatpush3.bf16.msra.mxu1 %v7795_v63  ;;  %v624_v63 = vld [vmem:[%s11021_s7 + $0x108] sm:$0xff] }
  0x35   :  { %6968 = vmatprep.subr.bf16.mxu1 %v11033_v36 }
  0x37   :  { %6943 = vmatpush1.bf16.msra.mxu0 %v8438_v6  ;;  %6240 = vmatmul.mubr.msk.bf16.vlgmr.msra.gmra.mrb[8].mxu1 %vm169_vm1, %v5679_v47  ;;  %v621_v47 = vld [vmem:[%s11021_s7 + $0xf0] sm:$0xff] }
  0x38   :  { %6945 = vmatprep.subr.bf16.mxu0 %v8454_v15  ;;  %6970 = vmatpush3.bf16.msra.mxu1 %v8484_v39  ;;  %v8553_v37 = vpack.c.bf16 %v624_v63, %v621_v47  ;;  %v8575_v47 = vpack.c.bf16 %v630_v35, %v627_v32  ;;  %v8578_v63 = vpack.c.bf16 %v637_v53, %v634_v41  ;;  %v626_v32 = vld [vmem:[%s11021_s7 + $0x118] sm:$0xff]  ;;  %v629_v53 = vld [vmem:[%s11021_s7 + $0x130] sm:$0xff] }
  0x39   :  { %6971 = vmatprep.subr.bf16.mxu1 %v11033_v36  ;;  %6275 = vmatprep.mubr.msk.f32.mxu1 %vm8028_vm0, %v11031_v2  ;;  %v8597_v35 = vpack.c.bf16 %v636_v11, %v633_v9  ;;  %v8601_v41 = vpack.c.bf16 %v626_v32, %v623_v18  ;;  %v8612_v56 = vpack.c.bf16 %v632_v55, %v629_v53  ;;  %v635_v9 = vld [vmem:[%s11021_s7 + $0x160] sm:$0xff]  ;;  %v638_v11 = vld [vmem:[%s11021_s7 + $0x178] sm:$0xff] }
  0x3a   :  { %v8626_v18 = vpack.c.bf16 %v638_v11, %v635_v9 }
  0x3b   :  { %6947 = vmatpush1.bf16.msra.mxu0 %v8467_v25 }
  0x3c   :  { %6949 = vmatprep.subr.bf16.mxu0 %v8482_v38  ;;  %6973 = vmatpush3.bf16.msra.mxu1 %v8513_v62 }
  0x3d   :  { %6974 = vmatprep.subr.bf16.mxu1 %v11033_v36 }
  0x3f   :  { %6951 = vmatpush1.bf16.msra.mxu0 %v8494_v48 }
  0x40   :  { %6953 = vmatprep.subr.bf16.mxu0 %v8510_v59  ;;  %6976 = vmatpush3.bf16.msra.mxu1 %v8543_v28 }
  0x41   :  { %6977 = vmatprep.subr.bf16.mxu1 %v11033_v36 }
  0x43   :  { %6955 = vmatpush1.bf16.msra.mxu0 %v8525_v7 }
  0x44   :  { %6957 = vmatprep.subr.bf16.mxu0 %v8540_v24  ;;  %6979 = vmatpush3.bf16.msra.mxu1 %v8562_v50 }
  0x45   :  { %6980 = vmatprep.subr.bf16.mxu1 %v11033_v36 }
  0x47   :  { %6959 = vmatpush1.bf16.msra.mxu0 %v8553_v37 }
  0x48   :  { %6961 = vmatprep.subr.bf16.mxu0 %v8559_v44  ;;  %6982 = vmatpush3.bf16.msra.mxu1 %v8587_v12 }
  0x49   :  { %6983 = vmatprep.subr.bf16.mxu1 %v11033_v36 }
  0x4b   :  { %6963 = vmatpush1.bf16.msra.mxu0 %v8575_v47 }
  0x4c   :  { %6965 = vmatprep.subr.bf16.mxu0 %v8578_v63  ;;  %6985 = vmatpush3.bf16.msra.mxu1 %v8601_v41 }
  0x4d   :  { %6986 = vmatprep.subr.bf16.mxu1 %v11033_v36 }
  0x4f   :  { %6967 = vmatpush1.bf16.msra.mxu0 %v8597_v35 }
  0x50   :  { %858 = vmatprep.subr.bf16.mxu0 %v8093_v0  ;;  %6988 = vmatpush3.bf16.msra.mxu1 %v8612_v56  ;;  %v7796_v0 = vld [vmem:[%s11017_s2 + $0x8] ss:$12 sps:$4 sm:$0xff]  }
  0x51   :  { %6989 = vmatprep.subr.bf16.mxu1 %v11033_v36 }
  0x52   :  { %704 = vmatmul.mubr.f32.vlgmr.msra.gmra.mrb[6].mxu0 %v11031_v2 }
  0x53   :  { %859 = vmatpush1.bf16.msra.mxu0 %v8100_v3  ;;  %890 = vmatprep.mubr.bf16.mxu0 %v11029_v1  ;;  %v7797_v3 = vld [vmem:[%s11017_s2 + $0x20] ss:$12 sps:$4 sm:$0xff]  }
  0x54   :  { %860 = vmatprep.subr.bf16.mxu0 %v8108_v4  ;;  %6991 = vmatpush3.bf16.msra.mxu1 %v8626_v18  ;;  %v5692_v4 = vld [vmem:[%s11019_s0 + $0x4] sm:$0xf] }
  0x55   :  { %6278 = vmatprep.subr.bf16.mxu1 %v11031_v2 }
  0x57   :  { %861 = vmatpush1.bf16.msra.mxu0 %v8114_v5  ;;  %6276 = vmatmul.mubr.f32.vlgmr.msra.gmra.mrb[6].mxu1 %v11031_v2 }
  0x58   :  { %6993 = vmatprep.subr.bf16.mxu0 %v8123_v8  ;;  %6282 = vmatprep.mubr.msk.bf16.mxu1 %vm8028_vm0, %v11031_v2 }
  0x59   :  { %6279 = vmatpush3.bf16.msra.mxu1 %v7796_v0 }
  0x5a   :  { %6280 = vmatprep.subr.bf16.mxu1 %v11031_v2  ;;  %5699 = vmatmul.mubr.msk.bf16.vlgmr.msra.gmra.mrb[12].mxu0 %vm169_vm1, %v5692_v4 }
  0x5b   :  { %6995 = vmatpush1.bf16.msra.mxu0 %v8141_v14  ;;  %1051 = vmatprep.mubr.f32.mxu0 %v11031_v2 }
  0x5c   :  { %6997 = vmatprep.subr.bf16.mxu0 %v8147_v16 }
  0x5d   :  { %6281 = vmatpush3.bf16.msra.mxu1 %v7797_v3 }
  0x5e   :  { %7024 = vmatprep.subr.bf16.mxu1 %v11033_v36 }
  0x5f   :  { %6999 = vmatpush1.bf16.msra.mxu0 %v8163_v21 }
  0x60   :  { %6283 = vmatmul.mubr.msk.bf16.vlgmr.msra.gmra.mrb[12].mxu1 %vm169_vm1, %v5692_v4  ;;  %7001 = vmatprep.subr.bf16.mxu0 %v8166_v22 }
  0x61   :  { %7026 = vmatpush3.bf16.msra.mxu1 %v8200_v33  ;;  %6318 = vmatprep.mubr.msk.f32.mxu1 %vm8028_vm0, %v11031_v2 }
  0x62   :  { %7027 = vmatprep.subr.bf16.mxu1 %v11033_v36 }
  0x63   :  { %7003 = vmatpush1.bf16.msra.mxu0 %v8192_v30 }
  0x64   :  { %7005 = vmatprep.subr.bf16.mxu0 %v8203_v34  ;;  %v76_v34 = vlaneseq }
  0x65   :  { %7029 = vmatpush3.bf16.msra.mxu1 %v8226_v42 }
  0x66   :  { %7030 = vmatprep.subr.bf16.mxu1 %v11033_v36 }
  0x67   :  { %7007 = vmatpush1.bf16.msra.mxu0 %v8220_v40  ;;  %v8685_v40 = vshrl.u32 %v76_v34, 7 }
  0x68   :  { %7009 = vmatprep.subr.bf16.mxu0 %v8229_v43  ;;  %v74_v43 = vld [vmem:[%s11023_s4] sm:$0x7] }
  0x69   :  { %7032 = vmatpush3.bf16.msra.mxu1 %v8256_v51  ;;  %v78_v42 = vsub.s32 0, %v8685_v40 }
  0x6a   :  { %7033 = vmatprep.subr.bf16.mxu1 %v11033_v36 }
  0x6b   :  { %7011 = vmatpush1.bf16.msra.mxu0 %v8250_v49  ;;  %v82_v49 = vsub.s32 1, %v8685_v40  ;;  %v8692_v51 = vrot.slane %v74_v43, %v78_v42 }
  0x6c   :  { %7013 = vmatprep.subr.bf16.mxu0 %v8259_v52 }
  0x6d   :  { %7035 = vmatpush3.bf16.msra.mxu1 %v8284_v60  ;;  %v8694_v52 = vrot.slane %v74_v43, %v82_v49 }
  0x6e   :  { %7036 = vmatprep.subr.bf16.mxu1 %v11033_v36 }
  0x6f   :  { %7015 = vmatpush1.bf16.msra.mxu0 %v8278_v58 }
  0x70   :  { %7017 = vmatprep.subr.bf16.mxu0 %v8287_v61 }
  0x71   :  { %7038 = vmatpush3.bf16.msra.mxu1 %v8315_v13 }
  0x72   :  { %7039 = vmatprep.subr.bf16.mxu1 %v11033_v36 }
  0x73   :  { %7019 = vmatpush1.bf16.msra.mxu0 %v8306_v10 }
  0x74   :  { %7021 = vmatprep.subr.bf16.mxu0 %v8321_v17 }
  0x75   :  { %7041 = vmatpush3.bf16.msra.mxu1 %v8331_v20 }
  0x76   :  { %7042 = vmatprep.subr.bf16.mxu1 %v11033_v36 }
  0x77   :  { %7023 = vmatpush1.bf16.msra.mxu0 %v8328_v19 }
  0x78   :  { %1195 = vmatprep.subr.bf16.mxu0 %v8337_v23 }
  0x79   :  { %7044 = vmatpush3.bf16.msra.mxu1 %v8363_v29 }
  0x7a   :  { %7045 = vmatprep.subr.bf16.mxu1 %v11033_v36 }
  0x7d   :  { %7047 = vmatpush3.bf16.msra.mxu1 %v8398_v46 }
  0x7e   :  { %6321 = vmatprep.subr.bf16.mxu1 %v11031_v2 }
  0xdd   :  { %v207_v5 = vpop.f32.mrb[0].mxu0 }
  0xde   :  { %v209_v8 = vpop.f32.mrb[1].mxu0  ;;  %v208_v58 = vadd.f32 %v207_v5, %v8692_v51 }
  0xdf   :  { %v211_v14 = vpop.f32.mrb[2].mxu0  ;;  %v210_v60 = vadd.f32 %v209_v8, %v8694_v52  ;;  %v86_v8 = vsub.s32 2, %v8685_v40  ;;  %v7803_v40 = vld [vmem:[%s11017_s2 + $0x8] ss:$12 sps:$4 sm:$0xff]  }
  0xe0   :  { %v212_v16 = vpop.f32.mrb[3].mxu0 }
  0xe1   :  { %v8704_v16 = vld [vmem:[%s11024_s8] ss:$0 sm:$0xff] }
  0xe2   :  { %v248_v21 = vpop.f32.mrb[0].mxu1 }
  0xe3   :  { %v6198_v22 = vpop.f32.mrb[1].mxu1 }
  0xe4   :  { %v251_v30 = vpop.f32.mrb[2].mxu1  ;;  %v8708_v22 = vrot.slane %v74_v43, %v86_v8 }
  0xe5   :  { %v6199_v33 = vpop.f32.mrb[3].mxu1 }
  0xfd   :  { %v368_v61 = vpop.f32.mrb[4].mxu0 }
  0xfe   :  { %v443_v10 = vadd.f32 %v368_v61, %v208_v58  ;;  %v370_v13 = vpop.f32.mrb[5].mxu0  ;;  %v249_v58 = vadd.f32 %v248_v21, %v8708_v22 }
  0xff   :  { %v450_v17 = vadd.f32 %v370_v13, %v210_v60 }
 0x100   :  { %v5677_v19 = vmul.f32 -1.442695, %v443_v10  ;;  %v91_v10 = vld [vmem:[%s11025_s5] sm:$0x7] }
 0x101   :  { %v5678_v20 = vmul.f32 -1.442695, %v450_v17  ;;  %v8715_v13 = vrot.slane %v91_v10, %v78_v42  ;;  %v8717_v17 = vrot.slane %v91_v10, %v82_v49  ;;  %v7798_v42 = vld [vmem:[%s11020_s3 + $0x8] ss:$12 sps:$4 sm:$0xff]  }
 0x102   :  { %7860 = vpow2.f32 %v5677_v19  ;;  %v439_v46 = vpop.f32.mrb[4].mxu1 }
 0x103   :  { %v6234_v53 = vpop.f32.mrb[5].mxu1  ;;  %7862 = vpow2.f32 %v5678_v20  ;;  %v457_v33 = vadd.f32 %v8704_v16, %v439_v46 }
 0x105   :  { %v544_v23 = vpop.f32.mrb[8].mxu0 }
 0x106   :  { %v546_v29 = vpop.f32.mrb[9].mxu0  ;;  %v545_v19 = vadd.f32 %v544_v23, %v8715_v13  ;;  %v7799_v23 = vld [vmem:[%s11020_s3 + $0x20] ss:$12 sps:$4 sm:$0xff]  }
 0x107   :  { %v548_v32 = vpop.f32.mrb[10].mxu0  ;;  %v547_v20 = vadd.f32 %v546_v29, %v8717_v17 }
 0x108   :  { %v549_v55 = vpop.f32.mrb[11].mxu0 }
 0x10a   :  { %v8698_v0 = vpop.f32.mrb[8].mxu1 }
 0x10b   :  { %v6241_v3 = vpop.f32.mrb[9].mxu1 }
 0x10c   :  { %v7861_v9 = vpop.eup %7860  ;;  %v588_v4 = vpop.f32.mrb[10].mxu1 }
 0x10d   :  { %v447_v11 = vadd.f32 1.0, %v7861_v9  ;;  %v6242_v5 = vpop.f32.mrb[11].mxu1  ;;  %v7863_v14 = vpop.eup %7862 }
 0x10e   :  { %v454_v30 = vadd.f32 1.0, %v7863_v14 }
 0x10f   :  { %7864 = vrcp.f32 %v447_v11 }
 0x110   :  { %7866 = vrcp.f32 %v454_v30 }
 0x119   :  { %v7865_v34 = vpop.eup %7864 }
 0x11a   :  { %v458_v60 = vmul.f32 %v7865_v34, %v457_v33  ;;  %v7867_v43 = vpop.eup %7866  ;;  %v7807_v33 = vld [vmem:[%s11017_s2 + $0x20] ss:$12 sps:$4 sm:$0xff]  }
 0x11b   :  { %v461_v55 = vsub.f32 1.0, %v7867_v43  ;;  %v463_v4 = vmul.f32 0.0, %v7867_v43  ;;  %v1626_v34 = vld [vmem:[%s11018_s6 + $0x8] sm:$0xff]  ;;  %v1628_v43 = vld [vmem:[%s11018_s6 + $0x18] sm:$0xff] }
 0x11c   :  { %v459_v61 = vadd.f32 %v458_v60, %v249_v58  ;;  %v1629_v58 = vld [vmem:[%s11018_s6 + $0x20] sm:$0xff]  ;;  %v5718_v60 = vld [vmem:[%s11019_s0 + $0x8] sm:$0xf] }
 0x11e   :  { %7868 = vtanh.f32 %v459_v61  ;;  %v8852_v61 = vpack.c.bf16 %v1629_v58, %v1626_v34  ;;  %v1654_v34 = vld [vmem:[%s11018_s6 + $0xe8] sm:$0xff] }
 0x125   :  { %v705_v46 = vpop.f32.mrb[6].mxu0 }
 0x126   :  { %v780_v32 = vadd.f32 %v705_v46, %v545_v19  ;;  %v707_v21 = vpop.f32.mrb[7].mxu0  ;;  %v1630_v46 = vld [vmem:[%s11018_s6 + $0x28] sm:$0xff] }
 0x127   :  { %v787_v53 = vadd.f32 %v707_v21, %v547_v20  ;;  %v1627_v20 = vld [vmem:[%s11018_s6 + $0x10] sm:$0xff]  ;;  %v1632_v21 = vld [vmem:[%s11018_s6 + $0x38] sm:$0xff] }
 0x128   :  { %v7869_v9 = vpop.eup %7868  ;;  %v5688_v11 = vmul.f32 -1.442695, %v780_v32  ;;  %v8871_v32 = vpack.c.bf16 %v1630_v46, %v1627_v20  ;;  %v1658_v46 = vld [vmem:[%s11018_s6 + $0x108] sm:$0xff] }
 0x129   :  { %v462_v3 = vmul.f32 %v7869_v9, %v461_v55  ;;  %v5689_v5 = vmul.f32 -1.442695, %v787_v53  ;;  %v1635_v53 = vld [vmem:[%s11018_s6 + $0x50] sm:$0xff] }
 0x12a   :  { %7870 = vpow2.f32 %v5688_v11  ;;  %v776_v29 = vpop.f32.mrb[6].mxu1  ;;  %v8883_v55 = vpack.c.bf16 %v1635_v53, %v1632_v21  ;;  %v1631_v9 = vld [vmem:[%s11018_s6 + $0x30] sm:$0xff]  ;;  %v1634_v11 = vld [vmem:[%s11018_s6 + $0x48] sm:$0xff]  ;;  %v1657_v21 = vld [vmem:[%s11018_s6 + $0x100] sm:$0xff] }
 0x12b   :  { %v8724_v49 = vadd.f32 %v463_v4, %v462_v3  ;;  %v6277_v14 = vpop.f32.mrb[7].mxu1  ;;  %7872 = vpow2.f32 %v5689_v5  ;;  %v8893_v3 = vpack.c.bf16 %v1634_v11, %v1631_v9  ;;  %v1633_v4 = vld [vmem:[%s11018_s6 + $0x40] sm:$0xff]  ;;  %v1660_v53 = vld [vmem:[%s11018_s6 + $0x118] sm:$0xff] }
 0x12c   :  { %v9014_v11 = vpack.c.bf16 %v1660_v53, %v1657_v21 }
 0x12d   :  { %1052 = vmatmul.mubr.f32.vlgmr.msra.gmra.mrb[16].mxu0 %v8724_v49  ;;  %6319 = vmatmul.mubr.f32.vlgmr.msra.gmra.mrb[16].mxu1 %v8724_v49  ;;  %806 = vst [vmem:[%s11026_s10] sm:$0xff] %v8724_v49 }
 0x12e   :  { %1196 = vmatpush1.bf16.msra.mxu0 %v8350_v26  ;;  %6322 = vmatpush3.bf16.msra.mxu1 %v7798_v42  ;;  %v5703_v26 = vld [vmem:[%s11022_s1 + $0x18] sm:$0xf] }
 0x12f   :  { %1197 = vmatprep.subr.bf16.mxu0 %v8357_v27  ;;  %6323 = vmatprep.subr.bf16.mxu1 %v11031_v2  ;;  %v1636_v42 = vld [vmem:[%s11018_s6 + $0x58] sm:$0xff] }
 0x130   :  { %1227 = vmatprep.mubr.bf16.mxu0 %v11029_v1  ;;  %6325 = vmatprep.mubr.msk.bf16.mxu1 %vm8028_vm0, %v11031_v2  ;;  %v8903_v5 = vpack.c.bf16 %v1636_v42, %v1633_v4  ;;  %v1662_v4 = vld [vmem:[%s11018_s6 + $0x128] sm:$0xff]  ;;  %v1665_v42 = vld [vmem:[%s11018_s6 + $0x140] sm:$0xff] }
 0x132   :  { %1198 = vmatpush1.bf16.msra.mxu0 %v8368_v31  ;;  %6324 = vmatpush3.bf16.msra.mxu1 %v7799_v23  ;;  %v1638_v23 = vld [vmem:[%s11018_s6 + $0x68] sm:$0xff] }
 0x133   :  { %7049 = vmatprep.subr.bf16.mxu0 %v8395_v45  ;;  %7080 = vmatprep.subr.bf16.mxu1 %v11033_v36  ;;  %v8763_v45 = vld [vmem:[%s11027_s9] ss:$0 sm:$0xff] }
 0x134   :  { %v7871_v27 = vpop.eup %7870 }
 0x135   :  { %v784_v30 = vadd.f32 1.0, %v7871_v27  ;;  %5710 = vmatmul.mubr.msk.bf16.vlgmr.msra.gmra.mrb[20].mxu0 %vm169_vm1, %v5703_v26  ;;  %6326 = vmatmul.mubr.msk.bf16.vlgmr.msra.gmra.mrb[20].mxu1 %vm169_vm1, %v5703_v26  ;;  %v7873_v31 = vpop.eup %7872  ;;  %v1637_v26 = vld [vmem:[%s11018_s6 + $0x60] sm:$0xff]  ;;  %v1640_v27 = vld [vmem:[%s11018_s6 + $0x78] sm:$0xff] }
 0x136   :  { %7051 = vmatpush1.bf16.msra.mxu0 %v8414_v54  ;;  %7082 = vmatpush3.bf16.msra.mxu1 %v8484_v39  ;;  %v8767_v54 = vrot.slane %v91_v10, %v86_v8  ;;  %v794_v39 = vadd.f32 %v8763_v45, %v776_v29  ;;  %v8835_v8 = vld [vmem:[%s11017_s2 + $0x18] ss:$12 sps:$4 sm:$0xff]  }
 0x137   :  { %7874 = vrcp.f32 %v784_v30  ;;  %7053 = vmatprep.subr.bf16.mxu0 %v8423_v57  ;;  %7083 = vmatprep.subr.bf16.mxu1 %v11033_v36  ;;  %v791_v57 = vadd.f32 1.0, %v7873_v31  ;;  %v1625_v10 = vld [vmem:[%s11018_s6] sm:$0xff]  ;;  %v8921_v30 = vpack.c.bf16 %v1640_v27, %v1637_v26  ;;  %v1639_v31 = vld [vmem:[%s11018_s6 + $0x70] sm:$0xff]  ;;  %v1664_v26 = vld [vmem:[%s11018_s6 + $0x138] sm:$0xff] }
 0x138   :  { %1388 = vmatprep.mubr.f32.mxu0 %v11031_v2  ;;  %6361 = vmatprep.mubr.msk.f32.mxu1 %vm8028_vm0, %v11031_v2  ;;  %v8861_v19 = vpack.c.bf16 %v1628_v43, %v1625_v10  ;;  %v1641_v29 = vld [vmem:[%s11018_s6 + $0x80] sm:$0xff]  ;;  %v1659_v10 = vld [vmem:[%s11018_s6 + $0x110] sm:$0xff] }
 0x139   :  { %7876 = vrcp.f32 %v791_v57  ;;  %v8913_v14 = vpack.c.bf16 %v1641_v29, %v1638_v23  ;;  %v1642_v57 = vld [vmem:[%s11018_s6 + $0x88] sm:$0xff]  ;;  %v1655_v43 = vld [vmem:[%s11018_s6 + $0xf0] sm:$0xff]  ;;  %v9023_v23 = vpack.c.bf16 %v1665_v42, %v1662_v4  ;;  %v1661_v29 = vld [vmem:[%s11018_s6 + $0x120] sm:$0xff] }
 0x13a   :  { %7055 = vmatpush1.bf16.msra.mxu0 %v8438_v6  ;;  %7085 = vmatpush3.bf16.msra.mxu1 %v8513_v62  ;;  %v9011_v9 = vpack.c.bf16 %v1658_v46, %v1655_v43  ;;  %v9034_v27 = vpack.c.bf16 %v1664_v26, %v1661_v29 }
 0x13b   :  { %7057 = vmatprep.subr.bf16.mxu0 %v8454_v15  ;;  %7086 = vmatprep.subr.bf16.mxu1 %v11033_v36  ;;  %v586_v15 = vadd.f32 %v8698_v0, %v8767_v54  ;;  %v8830_v0 = vld [vmem:[%s11017_s2 + $0x1c] ss:$12 sps:$4 sm:$0xff]  }
 0x13e   :  { %7059 = vmatpush1.bf16.msra.mxu0 %v8467_v25  ;;  %7088 = vmatpush3.bf16.msra.mxu1 %v8543_v28 }
 0x13f   :  { %7061 = vmatprep.subr.bf16.mxu0 %v8482_v38  ;;  %7089 = vmatprep.subr.bf16.mxu1 %v11033_v36 }
 0x141   :  { %v7875_v6 = vpop.eup %7874 }
 0x142   :  { %v795_v62 = vmul.f32 %v7875_v6, %v794_v39  ;;  %7063 = vmatpush1.bf16.msra.mxu0 %v8494_v48  ;;  %7091 = vmatpush3.bf16.msra.mxu1 %v8562_v50  ;;  %v8931_v39 = vpack.c.bf16 %v1642_v57, %v1639_v31  ;;  %v1644_v6 = vld [vmem:[%s11018_s6 + $0x98] sm:$0xff]  ;;  %v1663_v31 = vld [vmem:[%s11018_s6 + $0x130] sm:$0xff]  ;;  %v1666_v57 = vld [vmem:[%s11018_s6 + $0x148] sm:$0xff] }
 0x143   :  { %7065 = vmatprep.subr.bf16.mxu0 %v8510_v59  ;;  %7092 = vmatprep.subr.bf16.mxu1 %v11033_v36  ;;  %v7877_v38 = vpop.eup %7876 }
 0x144   :  { %v796_v25 = vadd.f32 %v795_v62, %v586_v15  ;;  %v798_v48 = vsub.f32 1.0, %v7877_v38  ;;  %v1647_v15 = vld [vmem:[%s11018_s6 + $0xb0] sm:$0xff] }
 0x145   :  { %v8941_v62 = vpack.c.bf16 %v1647_v15, %v1644_v6  ;;  %v9043_v6 = vpack.c.bf16 %v1666_v57, %v1663_v31  ;;  %v1668_v15 = vld [vmem:[%s11018_s6 + $0x158] sm:$0xff] }
 0x146   :  { %7878 = vtanh.f32 %v796_v25  ;;  %7067 = vmatpush1.bf16.msra.mxu0 %v8525_v7  ;;  %7094 = vmatpush3.bf16.msra.mxu1 %v8587_v12  ;;  %v1643_v25 = vld [vmem:[%s11018_s6 + $0x90] sm:$0xff] }
 0x147   :  { %7069 = vmatprep.subr.bf16.mxu0 %v8540_v24  ;;  %7095 = vmatprep.subr.bf16.mxu1 %v11033_v36  ;;  %v800_v24 = vmul.f32 0.0, %v7877_v38  ;;  %v1646_v38 = vld [vmem:[%s11018_s6 + $0xa8] sm:$0xff] }
 0x14a   :  { %7071 = vmatpush1.bf16.msra.mxu0 %v8553_v37  ;;  %7097 = vmatpush3.bf16.msra.mxu1 %v8601_v41  ;;  %v8806_v37 = vpop.f32.mrb[12].mxu0 }
 0x14b   :  { %7073 = vmatprep.subr.bf16.mxu0 %v8559_v44  ;;  %7098 = vmatprep.subr.bf16.mxu1 %v11033_v36  ;;  %v8808_v44 = vpop.f32.mrb[13].mxu0 }
 0x14c   :  { %v896_v50 = vpop.f32.mrb[14].mxu0 }
 0x14d   :  { %v1650_v50 = vld [vmem:[%s11018_s6 + $0xc8] sm:$0xff] }
 0x14e   :  { %7075 = vmatpush1.bf16.msra.mxu0 %v8575_v47  ;;  %7100 = vmatpush3.bf16.msra.mxu1 %v8612_v56  ;;  %v8810_v47 = vpop.f32.mrb[12].mxu1  ;;  %v8815_v56 = vld [vmem:[%s11017_s2 + $0x4] ss:$12 sps:$4 sm:$0xff]  }
 0x14f   :  { %7077 = vmatprep.subr.bf16.mxu0 %v8578_v63  ;;  %7101 = vmatprep.subr.bf16.mxu1 %v11033_v36  ;;  %v897_v63 = vpop.f32.mrb[15].mxu0  ;;  %v6284_v12 = vpop.f32.mrb[13].mxu1 }
 0x150   :  { %v7879_v59 = vpop.eup %7878  ;;  %v1653_v63 = vld [vmem:[%s11018_s6 + $0xe0] sm:$0xff] }
 0x151   :  { %v799_v7 = vmul.f32 %v7879_v59, %v798_v48  ;;  %v8949_v48 = vpack.c.bf16 %v1646_v38, %v1643_v25  ;;  %v1645_v59 = vld [vmem:[%s11018_s6 + $0xa0] sm:$0xff]  ;;  %v8969_v12 = vpack.c.bf16 %v1653_v63, %v1650_v50  ;;  %v1671_v25 = vld [vmem:[%s11018_s6 + $0x170] sm:$0xff] }
 0x152   :  { %7079 = vmatpush1.bf16.msra.mxu0 %v8597_v35  ;;  %7103 = vmatpush3.bf16.msra.mxu1 %v8626_v18  ;;  %v936_v35 = vpop.f32.mrb[14].mxu1  ;;  %v8820_v18 = vld [vmem:[%s11017_s2] ss:$12 sps:$4 sm:$0xff]   ;;  %v9053_v38 = vpack.c.bf16 %v1671_v25, %v1668_v15 }
 0x153   :  { %v8794_v28 = vadd.f32 %v800_v24, %v799_v7  ;;  %6364 = vmatprep.subr.bf16.mxu1 %v11031_v2  ;;  %v6285_v41 = vpop.f32.mrb[15].mxu1  ;;  %1544 = vmatprep.subr.bf16.mxu0 %v8815_v56  ;;  %v1648_v7 = vld [vmem:[%s11018_s6 + $0xb8] sm:$0xff]  ;;  %v1649_v35 = vld [vmem:[%s11018_s6 + $0xc0] sm:$0xff] }
 0x154   :  { %v8959_v24 = vpack.c.bf16 %v1648_v7, %v1645_v59  ;;  %v1652_v41 = vld [vmem:[%s11018_s6 + $0xd8] sm:$0xff]  ;;  %v1667_v59 = vld [vmem:[%s11018_s6 + $0x150] sm:$0xff]  ;;  %v1670_v7 = vld [vmem:[%s11018_s6 + $0x168] sm:$0xff] }
 0x155   :  { %1389 = vmatmul.mubr.f32.vlgmr.msra.gmra.mrb[18].mxu0 %v8794_v28  ;;  %6362 = vmatmul.mubr.f32.vlgmr.msra.gmra.mrb[18].mxu1 %v8794_v28  ;;  %5691 = vst [vmem:[%s11026_s10 + $0x38] sm:$0xff] %v8794_v28  ;;  %v9061_v50 = vpack.c.bf16 %v1670_v7, %v1667_v59  ;;  %v1669_v63 = vld [vmem:[%s11018_s6 + $0x160] sm:$0xff] }
 0x156   :  { %1576 = vmatprep.mubr.bf16.mxu0 %v11029_v1  ;;  %6368 = vmatprep.mubr.msk.bf16.mxu1 %vm8028_vm0, %v11031_v2 }
 0x157   :  { %1545 = vmatpush1.bf16.msra.mxu0 %v8820_v18  ;;  %6365 = vmatpush3.bf16.msra.mxu1 %v7803_v40  ;;  %v8977_v40 = vpack.c.bf16 %v1652_v41, %v1649_v35  ;;  %v1672_v35 = vld [vmem:[%s11018_s6 + $0x178] sm:$0xff] }
 0x158   :  { %1546 = vmatprep.subr.bf16.mxu0 %v8830_v0  ;;  %6366 = vmatprep.subr.bf16.mxu1 %v11031_v2  ;;  %v9071_v41 = vpack.c.bf16 %v1672_v35, %v1669_v63 }
 0x15b   :  { %1547 = vmatpush1.bf16.msra.mxu0 %v8835_v8  ;;  %6367 = vmatpush3.bf16.msra.mxu1 %v7807_v33  ;;  %v1651_v33 = vld [vmem:[%s11018_s6 + $0xd0] sm:$0xff] }
 0x15c   :  { %7136 = vmatprep.subr.bf16.mxu1 %v11033_v36  ;;  %7105 = vmatprep.subr.bf16.mxu0 %v8852_v61  ;;  %v8987_v58 = vpack.c.bf16 %v1654_v34, %v1651_v33  ;;  %v9078_v33 = vld [vmem:[%s11020_s3 + $0x4] ss:$12 sps:$4 sm:$0xff]   ;;  %v893_v34 = vadd.f32 %v8806_v37, %v8692_v51 }
 0x15e   :  { %5725 = vmatmul.mubr.msk.bf16.vlgmr.msra.gmra.mrb[24].mxu0 %vm169_vm1, %v5718_v60  ;;  %6369 = vmatmul.mubr.msk.bf16.vlgmr.msra.gmra.mrb[24].mxu1 %vm169_vm1, %v5718_v60  ;;  %v1656_v60 = vld [vmem:[%s11018_s6 + $0xf8] sm:$0xff] }
 0x15f   :  { %1737 = vmatprep.mubr.f32.mxu0 %v11031_v2  ;;  %7107 = vmatpush1.bf16.msra.mxu0 %v8861_v19  ;;  %v9000_v20 = vpack.c.bf16 %v1659_v10, %v1656_v60  ;;  %v895_v60 = vadd.f32 %v8808_v44, %v8694_v52 }
 0x160   :  { %7138 = vmatpush3.bf16.msra.mxu1 %v8871_v32  ;;  %6404 = vmatprep.mubr.msk.f32.mxu1 %vm8028_vm0, %v11031_v2 }
 0x161   :  { %7139 = vmatprep.subr.bf16.mxu1 %v11033_v36  ;;  %7109 = vmatprep.subr.bf16.mxu0 %v8883_v55 }
 0x163   :  { %7111 = vmatpush1.bf16.msra.mxu0 %v8893_v3 }
 0x164   :  { %7141 = vmatpush3.bf16.msra.mxu1 %v8903_v5  ;;  %7113 = vmatprep.subr.bf16.mxu0 %v8913_v14 }
 0x165   :  { %7142 = vmatprep.subr.bf16.mxu1 %v11033_v36 }
 0x167   :  { %7115 = vmatpush1.bf16.msra.mxu0 %v8921_v30 }
 0x168   :  { %7144 = vmatpush3.bf16.msra.mxu1 %v8931_v39  ;;  %7117 = vmatprep.subr.bf16.mxu0 %v8941_v62 }
 0x169   :  { %7145 = vmatprep.subr.bf16.mxu1 %v11033_v36 }
 0x16b   :  { %7119 = vmatpush1.bf16.msra.mxu0 %v8949_v48 }
 0x16c   :  { %7147 = vmatpush3.bf16.msra.mxu1 %v8959_v24  ;;  %7121 = vmatprep.subr.bf16.mxu0 %v8969_v12 }
 0x16d   :  { %7148 = vmatprep.subr.bf16.mxu1 %v11033_v36 }
 0x16f   :  { %7123 = vmatpush1.bf16.msra.mxu0 %v8977_v40 }
 0x170   :  { %7150 = vmatpush3.bf16.msra.mxu1 %v8987_v58  ;;  %7125 = vmatprep.subr.bf16.mxu0 %v9000_v20 }
 0x171   :  { %7151 = vmatprep.subr.bf16.mxu1 %v11033_v36 }
 0x173   :  { %7127 = vmatpush1.bf16.msra.mxu0 %v9011_v9 }
 0x174   :  { %7153 = vmatpush3.bf16.msra.mxu1 %v9014_v11  ;;  %7129 = vmatprep.subr.bf16.mxu0 %v9023_v23 }
 0x175   :  { %7154 = vmatprep.subr.bf16.mxu1 %v11033_v36 }
 0x177   :  { %7131 = vmatpush1.bf16.msra.mxu0 %v9034_v27 }
 0x178   :  { %7156 = vmatpush3.bf16.msra.mxu1 %v9043_v6  ;;  %7133 = vmatprep.subr.bf16.mxu0 %v9053_v38 }
 0x179   :  { %7157 = vmatprep.subr.bf16.mxu1 %v11033_v36 }
 0x17b   :  { %7135 = vmatpush1.bf16.msra.mxu0 %v9061_v50 }
 0x17c   :  { %7159 = vmatpush3.bf16.msra.mxu1 %v9071_v41  ;;  %1881 = vmatprep.subr.bf16.mxu0 %v9078_v33 }
 0x17d   :  { %6407 = vmatprep.subr.bf16.mxu1 %v11031_v2 }
 0x200   :  { %v1053_v10 = vpop.f32.mrb[16].mxu0  ;;  %v1124_v43 = vpop.f32.mrb[16].mxu1 }
 0x201   :  { %v1128_v46 = vadd.f32 %v1053_v10, %v893_v34  ;;  %v1055_v21 = vpop.f32.mrb[17].mxu0  ;;  %v6320_v53 = vpop.f32.mrb[17].mxu1 }
 0x202   :  { %v1135_v4 = vadd.f32 %v1055_v21, %v895_v60  ;;  %v1142_v60 = vadd.f32 %v8704_v16, %v1124_v43 }
 0x203   :  { %v5701_v42 = vmul.f32 -1.442695, %v1128_v46  ;;  %v934_v46 = vadd.f32 %v8810_v47, %v8708_v22 }
 0x204   :  { %v5702_v29 = vmul.f32 -1.442695, %v1135_v4 }
 0x205   :  { %7880 = vpow2.f32 %v5701_v42 }
 0x206   :  { %7882 = vpow2.f32 %v5702_v29 }
 0x208   :  { %v1229_v26 = vpop.f32.mrb[20].mxu0  ;;  %v9086_v31 = vpop.f32.mrb[20].mxu1 }
 0x209   :  { %v1231_v57 = vpop.f32.mrb[21].mxu0  ;;  %v6327_v15 = vpop.f32.mrb[21].mxu1  ;;  %v1230_v42 = vadd.f32 %v1229_v26, %v8715_v13  ;;  %v9099_v26 = vld [vmem:[%s11020_s3] ss:$12 sps:$4 sm:$0xff]  }
 0x20a   :  { %v1233_v25 = vpop.f32.mrb[22].mxu0  ;;  %v1273_v59 = vpop.f32.mrb[22].mxu1  ;;  %v1232_v29 = vadd.f32 %v1231_v57, %v8717_v17  ;;  %v7811_v57 = vld [vmem:[%s11020_s3 + $0x8] ss:$12 sps:$4 sm:$0xff]  }
 0x20b   :  { %v1234_v37 = vpop.f32.mrb[23].mxu0  ;;  %v6328_v7 = vpop.f32.mrb[23].mxu1 }
 0x20f   :  { %v7881_v44 = vpop.eup %7880 }
 0x210   :  { %v1132_v63 = vadd.f32 1.0, %v7881_v44  ;;  %v7883_v35 = vpop.eup %7882 }
 0x211   :  { %v1139_v34 = vadd.f32 1.0, %v7883_v35 }
 0x212   :  { %7884 = vrcp.f32 %v1132_v63 }
 0x213   :  { %7886 = vrcp.f32 %v1139_v34 }
 0x21c   :  { %v7885_v10 = vpop.eup %7884 }
 0x21d   :  { %v1143_v21 = vmul.f32 %v7885_v10, %v1142_v60  ;;  %v7887_v4 = vpop.eup %7886  ;;  %v9109_v60 = vld [vmem:[%s11020_s3 + $0x1c] ss:$12 sps:$4 sm:$0xff]   ;;  %v1966_v10 = vld [vmem:[%s11021_s7 + $0x20] sm:$0xff] }
 0x21e   :  { %v1146_v43 = vsub.f32 1.0, %v7887_v4  ;;  %v1148_v35 = vmul.f32 %v7887_v4, %v8724_v49  ;;  %v1963_v49 = vld [vmem:[%s11021_s7 + $0x8] sm:$0xff]  ;;  %v1962_v4 = vld [vmem:[%s11021_s7] sm:$0xff] }
 0x21f   :  { %v1144_v53 = vadd.f32 %v1143_v21, %v934_v46  ;;  %v9123_v21 = vld [vmem:[%s11020_s3 + $0x18] ss:$12 sps:$4 sm:$0xff]  }
 0x221   :  { %7888 = vtanh.f32 %v1144_v53  ;;  %v7815_v53 = vld [vmem:[%s11020_s3 + $0x20] ss:$12 sps:$4 sm:$0xff]  }
 0x228   :  { %v1390_v15 = vpop.f32.mrb[18].mxu0  ;;  %v9093_v25 = vpop.f32.mrb[18].mxu1 }
 0x229   :  { %v1465_v59 = vadd.f32 %v1390_v15, %v1230_v42  ;;  %v1392_v37 = vpop.f32.mrb[19].mxu0  ;;  %v6363_v7 = vpop.f32.mrb[19].mxu1  ;;  %v9137_v42 = vpack.c.bf16 %v1966_v10, %v1963_v49  ;;  %v1964_v15 = vld [vmem:[%s11021_s7 + $0x10] sm:$0xff]  ;;  %v1973_v49 = vld [vmem:[%s11021_s7 + $0x58] sm:$0xff] }
 0x22a   :  { %v1472_v16 = vadd.f32 %v1392_v37, %v1232_v29  ;;  %v1965_v29 = vld [vmem:[%s11021_s7 + $0x18] sm:$0xff]  ;;  %v1972_v7 = vld [vmem:[%s11021_s7 + $0x50] sm:$0xff] }
 0x22b   :  { %v7889_v44 = vpop.eup %7888  ;;  %v5712_v63 = vmul.f32 -1.442695, %v1465_v59  ;;  %v1967_v59 = vld [vmem:[%s11021_s7 + $0x28] sm:$0xff]  ;;  %v1969_v37 = vld [vmem:[%s11021_s7 + $0x38] sm:$0xff] }
 0x22c   :  { %v1147_v47 = vmul.f32 %v7889_v44, %v1146_v43  ;;  %v5713_v46 = vmul.f32 -1.442695, %v1472_v16  ;;  %v5729_v16 = vld [vmem:[%s11022_s1 + $0x14] sm:$0xf]  ;;  %v9161_v43 = vpack.c.bf16 %v1965_v29, %v1962_v4  ;;  %v9163_v44 = vpack.c.bf16 %v1967_v59, %v1964_v15  ;;  %v1974_v59 = vld [vmem:[%s11021_s7 + $0x60] sm:$0xff] }
 0x22d   :  { %7890 = vpow2.f32 %v5712_v63  ;;  %v1968_v63 = vld [vmem:[%s11021_s7 + $0x30] sm:$0xff] }
 0x22e   :  { %v9104_v34 = vadd.f32 %v1148_v35, %v1147_v47  ;;  %7892 = vpow2.f32 %v5713_v46  ;;  %v9170_v47 = vpack.c.bf16 %v1972_v7, %v1969_v37  ;;  %v1971_v35 = vld [vmem:[%s11021_s7 + $0x48] sm:$0xff]  ;;  %v1977_v7 = vld [vmem:[%s11021_s7 + $0x78] sm:$0xff] }
 0x22f   :  { %v1975_v46 = vld [vmem:[%s11021_s7 + $0x68] sm:$0xff]  ;;  %v9191_v29 = vpack.c.bf16 %v1971_v35, %v1968_v63  ;;  %v1981_v35 = vld [vmem:[%s11021_s7 + $0x98] sm:$0xff] }
 0x230   :  { %1738 = vmatmul.mubr.f32.vlgmr.msra.gmra.mrb[28].mxu0 %v9104_v34  ;;  %6405 = vmatmul.mubr.f32.vlgmr.msra.gmra.mrb[28].mxu1 %v9104_v34  ;;  %5715 = vst [vmem:[%s11026_s10 + $0x8] sm:$0xff] %v9104_v34  ;;  %v1979_v63 = vld [vmem:[%s11021_s7 + $0x88] sm:$0xff] }
 0x231   :  { %1882 = vmatpush1.bf16.msra.mxu0 %v9099_v26  ;;  %6408 = vmatpush3.bf16.msra.mxu1 %v7811_v57  ;;  %v1970_v57 = vld [vmem:[%s11021_s7 + $0x40] sm:$0xff] }
 0x232   :  { %1883 = vmatprep.subr.bf16.mxu0 %v9109_v60  ;;  %6409 = vmatprep.subr.bf16.mxu1 %v11031_v2  ;;  %v9193_v15 = vpack.c.bf16 %v1973_v49, %v1970_v57  ;;  %v1984_v57 = vld [vmem:[%s11021_s7 + $0xb0] sm:$0xff]  ;;  %v9222_v49 = vpack.c.bf16 %v1977_v7, %v1974_v59  ;;  %v1982_v59 = vld [vmem:[%s11021_s7 + $0xa0] sm:$0xff]  ;;  %v1985_v7 = vld [vmem:[%s11021_s7 + $0xb8] sm:$0xff] }
 0x233   :  { %1913 = vmatprep.mubr.bf16.mxu0 %v11029_v1  ;;  %6411 = vmatprep.mubr.msk.bf16.mxu1 %vm8028_vm0, %v11031_v2  ;;  %v1983_v1 = vld [vmem:[%s11021_s7 + $0xa8] sm:$0xff] }
 0x234   :  { %11072 = vst [vmem:[#allocation2_spill] sm:$0xff] %v9193_v15  ;;  %11074 = vst [vmem:[#allocation4_spill] sm:$0xff] %v9222_v49 }
 0x235   :  { %1884 = vmatpush1.bf16.msra.mxu0 %v9123_v21  ;;  %6410 = vmatpush3.bf16.msra.mxu1 %v7815_v53  ;;  %v1978_v53 = vld [vmem:[%s11021_s7 + $0x80] sm:$0xff] }
 0x236   :  { %7161 = vmatprep.subr.bf16.mxu0 %v9137_v42  ;;  %7192 = vmatprep.subr.bf16.mxu1 %v11033_v36  ;;  %v9200_v37 = vpack.c.bf16 %v1978_v53, %v1975_v46  ;;  %v1980_v46 = vld [vmem:[%s11021_s7 + $0x90] sm:$0xff] }
 0x237   :  { %v7891_v10 = vpop.eup %7890 }
 0x238   :  { %v1469_v4 = vadd.f32 1.0, %v7891_v10  ;;  %5736 = vmatmul.mubr.msk.bf16.vlgmr.msra.gmra.mrb[32].mxu0 %vm169_vm1, %v5729_v16  ;;  %6412 = vmatmul.mubr.msk.bf16.vlgmr.msra.gmra.mrb[32].mxu1 %vm169_vm1, %v5729_v16  ;;  %11073 = vst [vmem:[#allocation3_spill] sm:$0xff] %v9200_v37  ;;  %v1976_v16 = vld [vmem:[%s11021_s7 + $0x70] sm:$0xff]  ;;  %v7893_v53 = vpop.eup %7892 }
 0x239   :  { %7163 = vmatpush1.bf16.msra.mxu0 %v9161_v43  ;;  %7194 = vmatpush3.bf16.msra.mxu1 %v9163_v44  ;;  %v9224_v10 = vpack.c.bf16 %v1979_v63, %v1976_v16  ;;  %v1987_v16 = vld [vmem:[%s11021_s7 + $0xc8] sm:$0xff]  ;;  %v1990_v63 = vld [vmem:[%s11021_s7 + $0xe0] sm:$0xff] }
 0x23a   :  { %7894 = vrcp.f32 %v1469_v4  ;;  %7165 = vmatprep.subr.bf16.mxu0 %v9170_v47  ;;  %7195 = vmatprep.subr.bf16.mxu1 %v11033_v36  ;;  %v9231_v4 = vpack.c.bf16 %v1984_v57, %v1981_v35  ;;  %v1476_v35 = vadd.f32 1.0, %v7893_v53  ;;  %v9250_v57 = vpack.c.bf16 %v1983_v1, %v1980_v46  ;;  %v1988_v1 = vld [vmem:[%s11021_s7 + $0xd0] sm:$0xff]  ;;  %v1991_v46 = vld [vmem:[%s11021_s7 + $0xe8] sm:$0xff] }
 0x23b   :  { %2074 = vmatprep.mubr.f32.mxu0 %v11031_v2  ;;  %6447 = vmatprep.mubr.msk.f32.mxu1 %vm8028_vm0, %v11031_v2  ;;  %11075 = vst [vmem:[#allocation5_spill] sm:$0xff] %v9224_v10  ;;  %v9252_v2 = vpack.c.bf16 %v1985_v7, %v1982_v59  ;;  %v9262_v53 = vpack.c.bf16 %v1990_v63, %v1987_v16  ;;  %v1993_v7 = vld [vmem:[%s11021_s7 + $0xf8] sm:$0xff]  ;;  %v1996_v16 = vld [vmem:[%s11021_s7 + $0x110] sm:$0xff] }
 0x23c   :  { %11076 = vst [vmem:[#allocation6_spill] sm:$0xff] %v9231_v4  ;;  %v1479_v59 = vadd.f32 %v8763_v45, %v9093_v25  ;;  %7896 = vrcp.f32 %v1476_v35  ;;  %v9284_v45 = vpack.c.bf16 %v1991_v46, %v1988_v1  ;;  %v1992_v25 = vld [vmem:[%s11021_s7 + $0xf0] sm:$0xff]  ;;  %v1997_v35 = vld [vmem:[%s11021_s7 + $0x118] sm:$0xff]  ;;  %v1999_v46 = vld [vmem:[%s11021_s7 + $0x128] sm:$0xff] }
 0x23d   :  { %7167 = vmatpush1.bf16.msra.mxu0 %v9191_v29  ;;  %7197 = vmatpush3.bf16.msra.mxu1 %v9193_v15  ;;  %v11077_v15 = vmov 0.0|0.0  }
 0x23e   :  { %7169 = vmatprep.subr.bf16.mxu0 %v9200_v37  ;;  %7198 = vmatprep.subr.bf16.mxu1 %v11033_v36  ;;  %v1986_v36 = vld [vmem:[%s11021_s7 + $0xc0] sm:$0xff]  ;;  %v1989_v37 = vld [vmem:[%s11021_s7 + $0xd8] sm:$0xff]  ;;  %11078 = vst [vmem:[#allocation7_spill] sm:$0xff] %v9284_v45 }
 0x241   :  { %7171 = vmatpush1.bf16.msra.mxu0 %v9222_v49  ;;  %7200 = vmatpush3.bf16.msra.mxu1 %v9224_v10  ;;  %v1271_v10 = vadd.f32 %v9086_v31, %v8767_v54  ;;  %v1995_v31 = vld [vmem:[%s11021_s7 + $0x108] sm:$0xff] }
 0x242   :  { %7173 = vmatprep.subr.bf16.mxu0 %v9231_v4  ;;  %7201 = vmatprep.subr.bf16.mxu1 %v11077_v15  ;;  %v9278_v4 = vpack.c.bf16 %v1989_v37, %v1986_v36  ;;  %v9291_v36 = vpack.c.bf16 %v1996_v16, %v1993_v7  ;;  %v1994_v37 = vld [vmem:[%s11021_s7 + $0x100] sm:$0xff]  ;;  %v9310_v7 = vpack.c.bf16 %v1995_v31, %v1992_v25  ;;  %v2000_v25 = vld [vmem:[%s11021_s7 + $0x130] sm:$0xff]  ;;  %v2003_v31 = vld [vmem:[%s11021_s7 + $0x148] sm:$0xff] }
 0x243   :  { %v9312_v16 = vpack.c.bf16 %v1997_v35, %v1994_v37  ;;  %v2005_v37 = vld [vmem:[%s11021_s7 + $0x158] sm:$0xff]  ;;  %v2008_v35 = vld [vmem:[%s11021_s7 + $0x170] sm:$0xff] }
 0x244   :  { %v7895_v63 = vpop.eup %7894  ;;  %11079 = vst [vmem:[#allocation8_spill] sm:$0xff] %v9291_v36  ;;  %11080 = vst [vmem:[#allocation9_spill] sm:$0xff] %v9310_v7 }
 0x245   :  { %v1480_v49 = vmul.f32 %v7895_v63, %v1479_v59  ;;  %7175 = vmatpush1.bf16.msra.mxu0 %v9250_v57  ;;  %7203 = vmatpush3.bf16.msra.mxu1 %v9252_v2  ;;  %v2002_v59 = vld [vmem:[%s11021_s7 + $0x140] sm:$0xff]  ;;  %11081 = vst [vmem:[#allocation10_spill] sm:$0xff] %v9312_v16  ;;  %v2001_v63 = vld [vmem:[%s11021_s7 + $0x138] sm:$0xff] }
 0x246   :  { %7177 = vmatprep.subr.bf16.mxu0 %v9262_v53  ;;  %7204 = vmatprep.subr.bf16.mxu1 %v11077_v15 }
 0x247   :  { %v1481_v1 = vadd.f32 %v1480_v49, %v1271_v10  ;;  %v1998_v49 = vld [vmem:[%s11021_s7 + $0x120] sm:$0xff]  ;;  %v9319_v10 = vpack.c.bf16 %v2002_v59, %v1999_v46  ;;  %v9340_v46 = vpack.c.bf16 %v2003_v31, %v2000_v25  ;;  %v2004_v59 = vld [vmem:[%s11021_s7 + $0x150] sm:$0xff]  ;;  %v7897_v25 = vpop.eup %7896 }
 0x249   :  { %7898 = vtanh.f32 %v1481_v1  ;;  %7179 = vmatpush1.bf16.msra.mxu0 %v9278_v4  ;;  %7206 = vmatpush3.bf16.msra.mxu1 %v9284_v45  ;;  %11082 = vst [vmem:[#allocation11_spill] sm:$0xff] %v9319_v10  ;;  %v9338_v1 = vpack.c.bf16 %v2001_v63, %v1998_v49  ;;  %v2006_v49 = vld [vmem:[%s11021_s7 + $0x160] sm:$0xff]  ;;  %v2009_v63 = vld [vmem:[%s11021_s7 + $0x178] sm:$0xff]  ;;  %v1485_v45 = vmul.f32 %v7897_v25, %v8794_v28  ;;  %v1578_v28 = vpop.f32.mrb[24].mxu0 }
 0x24a   :  { %7181 = vmatprep.subr.bf16.mxu0 %v9291_v36  ;;  %7207 = vmatprep.subr.bf16.mxu1 %v11077_v15  ;;  %v9347_v36 = vpack.c.bf16 %v2008_v35, %v2005_v37  ;;  %v9362_v37 = vpack.c.bf16 %v2009_v63, %v2006_v49  ;;  %v1483_v35 = vsub.f32 1.0, %v7897_v25 }
 0x24b   :  { %11083 = vst [vmem:[#allocation12_spill] sm:$0xff] %v9338_v1 }
 0x24d   :  { %7183 = vmatpush1.bf16.msra.mxu0 %v9310_v7  ;;  %7209 = vmatpush3.bf16.msra.mxu1 %v9312_v16  ;;  %v2007_v7 = vld [vmem:[%s11021_s7 + $0x168] sm:$0xff] }
 0x24e   :  { %7185 = vmatprep.subr.bf16.mxu0 %v9319_v10  ;;  %7210 = vmatprep.subr.bf16.mxu1 %v11077_v15  ;;  %v9360_v31 = vpack.c.bf16 %v2007_v7, %v2004_v59  ;;  %v11084_v7 = vmov 0.0   ;;  %v11085_v59 = vmov 0  }
 0x251   :  { %7187 = vmatpush1.bf16.msra.mxu0 %v9338_v1  ;;  %7212 = vmatpush3.bf16.msra.mxu1 %v9340_v46 }
 0x252   :  { %7189 = vmatprep.subr.bf16.mxu0 %v9347_v36  ;;  %7213 = vmatprep.subr.bf16.mxu1 %v11077_v15 }
 0x253   :  { %v7899_v10 = vpop.eup %7898 }
 0x254   :  { %v1484_v16 = vmul.f32 %v7899_v10, %v1483_v35 }
 0x255   :  { %7191 = vmatpush1.bf16.msra.mxu0 %v9360_v31  ;;  %7215 = vmatpush3.bf16.msra.mxu1 %v9362_v37 }
 0x256   :  { %v9369_v1 = vadd.f32 %v1485_v45, %v1484_v16  ;;  %2230 = vmatprep.subr.bf16.mxu0 %v8815_v56  ;;  %6450 = vmatprep.subr.bf16.mxu1 %v11084_v7  ;;  %v1580_v56 = vpop.f32.mrb[25].mxu0 }
 0x257   :  { %v1582_v45 = vpop.f32.mrb[26].mxu0 }
 0x258   :  { %2075 = vmatmul.mubr.f32.vlgmr.msra.gmra.mrb[30].mxu0 %v9369_v1  ;;  %6448 = vmatmul.mubr.f32.vlgmr.msra.gmra.mrb[30].mxu1 %v9369_v1  ;;  %5717 = vst [vmem:[%s11026_s10 + $0x30] sm:$0xff] %v9369_v1  ;;  %v1583_v16 = vpop.f32.mrb[27].mxu0 }
 0x259   :  { %2231 = vmatpush1.bf16.msra.mxu0 %v8820_v18  ;;  %2262 = vmatprep.mubr.bf16.mxu0 %v11085_v59  ;;  %v9386_v18 = vpop.f32.mrb[24].mxu1 }
 0x25a   :  { %2232 = vmatprep.subr.bf16.mxu0 %v8830_v0  ;;  %6454 = vmatprep.mubr.msk.bf16.mxu1 %vm8028_vm0, %v11084_v7  ;;  %v6370_v10 = vpop.f32.mrb[25].mxu1  ;;  %v7816_v0 = vld [vmem:[%s11017_s2 + $0x8] ss:$12 sps:$4 sm:$0xff]   ;;  %v1620_v35 = vadd.f32 %v9386_v18, %v8708_v22 }
 0x25b   :  { %v1622_v49 = vpop.f32.mrb[26].mxu1  ;;  %6451 = vmatpush3.bf16.msra.mxu1 %v7816_v0 }
 0x25c   :  { %v6371_v63 = vpop.f32.mrb[27].mxu1  ;;  %6452 = vmatprep.subr.bf16.mxu1 %v11084_v7 }
 0x25d   :  { %2233 = vmatpush1.bf16.msra.mxu0 %v8835_v8  ;;  %v7817_v8 = vld [vmem:[%s11017_s2 + $0x20] ss:$12 sps:$4 sm:$0xff]  }
 0x25e   :  { %7217 = vmatprep.subr.bf16.mxu0 %v8852_v61  ;;  %v5744_v61 = vld [vmem:[%s11019_s0 + $0xc] sm:$0xf] }
 0x25f   :  { %6453 = vmatpush3.bf16.msra.mxu1 %v7817_v8 }
 0x260   :  { %5751 = vmatmul.mubr.msk.bf16.vlgmr.msra.gmra.mrb[36].mxu0 %vm169_vm1, %v5744_v61  ;;  %7248 = vmatprep.subr.bf16.mxu1 %v11077_v15 }
 0x261   :  { %7219 = vmatpush1.bf16.msra.mxu0 %v8861_v19  ;;  %2423 = vmatprep.mubr.f32.mxu0 %v11084_v7  ;;  %v1579_v19 = vadd.f32 %v1578_v28, %v8692_v51 }
 0x262   :  { %6455 = vmatmul.mubr.msk.bf16.vlgmr.msra.gmra.mrb[36].mxu1 %vm169_vm1, %v5744_v61  ;;  %7221 = vmatprep.subr.bf16.mxu0 %v8883_v55 }
 0x263   :  { %7250 = vmatpush3.bf16.msra.mxu1 %v8871_v32  ;;  %6490 = vmatprep.mubr.msk.f32.mxu1 %vm8028_vm0, %v11084_v7  ;;  %v1581_v32 = vadd.f32 %v1580_v56, %v8694_v52 }
 0x264   :  { %7251 = vmatprep.subr.bf16.mxu1 %v11077_v15 }
 0x265   :  { %7223 = vmatpush1.bf16.msra.mxu0 %v8893_v3 }
 0x266   :  { %7225 = vmatprep.subr.bf16.mxu0 %v8913_v14 }
 0x267   :  { %7253 = vmatpush3.bf16.msra.mxu1 %v8903_v5 }
 0x268   :  { %7254 = vmatprep.subr.bf16.mxu1 %v11077_v15 }
 0x269   :  { %7227 = vmatpush1.bf16.msra.mxu0 %v8921_v30 }
 0x26a   :  { %7229 = vmatprep.subr.bf16.mxu0 %v8941_v62 }
 0x26b   :  { %7256 = vmatpush3.bf16.msra.mxu1 %v8931_v39 }
 0x26c   :  { %7257 = vmatprep.subr.bf16.mxu1 %v11077_v15 }
 0x26d   :  { %7231 = vmatpush1.bf16.msra.mxu0 %v8949_v48 }
 0x26e   :  { %7233 = vmatprep.subr.bf16.mxu0 %v8969_v12 }
 0x26f   :  { %7259 = vmatpush3.bf16.msra.mxu1 %v8959_v24 }
 0x270   :  { %7260 = vmatprep.subr.bf16.mxu1 %v11077_v15 }
 0x271   :  { %7235 = vmatpush1.bf16.msra.mxu0 %v8977_v40 }
 0x272   :  { %7237 = vmatprep.subr.bf16.mxu0 %v9000_v20 }
 0x273   :  { %7262 = vmatpush3.bf16.msra.mxu1 %v8987_v58 }
 0x274   :  { %7263 = vmatprep.subr.bf16.mxu1 %v11077_v15 }
 0x275   :  { %7239 = vmatpush1.bf16.msra.mxu0 %v9011_v9 }
 0x276   :  { %7241 = vmatprep.subr.bf16.mxu0 %v9023_v23 }
 0x277   :  { %7265 = vmatpush3.bf16.msra.mxu1 %v9014_v11 }
 0x278   :  { %7266 = vmatprep.subr.bf16.mxu1 %v11077_v15 }
 0x279   :  { %7243 = vmatpush1.bf16.msra.mxu0 %v9034_v27 }
 0x27a   :  { %7245 = vmatprep.subr.bf16.mxu0 %v9053_v38 }
 0x27b   :  { %7268 = vmatpush3.bf16.msra.mxu1 %v9043_v6 }
 0x27c   :  { %7269 = vmatprep.subr.bf16.mxu1 %v11077_v15 }
 0x27d   :  { %7247 = vmatpush1.bf16.msra.mxu0 %v9061_v50 }
 0x27e   :  { %2567 = vmatprep.subr.bf16.mxu0 %v9078_v33 }
 0x27f   :  { %7271 = vmatpush3.bf16.msra.mxu1 %v9071_v41  ;;  %v9443_v41 = vld [vmem:[%s11024_s8] ss:$0 sm:$0xff] }
 0x280   :  { %6493 = vmatprep.subr.bf16.mxu1 %v11084_v7 }
 0x303   :  { %v1739_v55 = vpop.f32.mrb[28].mxu0  ;;  %v1810_v3 = vpop.f32.mrb[28].mxu1 }
 0x304   :  { %v1814_v5 = vadd.f32 %v1739_v55, %v1579_v19  ;;  %v1741_v14 = vpop.f32.mrb[29].mxu0  ;;  %v6406_v30 = vpop.f32.mrb[29].mxu1  ;;  %v1828_v33 = vadd.f32 %v9443_v41, %v1810_v3 }
 0x305   :  { %v1821_v39 = vadd.f32 %v1741_v14, %v1581_v32  ;;  %v7818_v14 = vld [vmem:[%s11020_s3 + $0x8] ss:$12 sps:$4 sm:$0xff]  }
 0x306   :  { %v5727_v62 = vmul.f32 -1.442695, %v1814_v5 }
 0x307   :  { %v5728_v48 = vmul.f32 -1.442695, %v1821_v39 }
 0x308   :  { %7900 = vpow2.f32 %v5727_v62  ;;  %v7819_v62 = vld [vmem:[%s11020_s3 + $0x20] ss:$12 sps:$4 sm:$0xff]  }
 0x309   :  { %7902 = vpow2.f32 %v5728_v48  ;;  %v11087_v48 = vld [vmem:[#allocation3_spill] sm:$0xff] }
 0x30b   :  { %v1915_v24 = vpop.f32.mrb[32].mxu0  ;;  %v9438_v12 = vpop.f32.mrb[32].mxu1 }
 0x30c   :  { %v1917_v40 = vpop.f32.mrb[33].mxu0  ;;  %v6413_v58 = vpop.f32.mrb[33].mxu1  ;;  %v1916_v16 = vadd.f32 %v1915_v24, %v8715_v13  ;;  %v11090_v24 = vld [vmem:[#allocation6_spill] sm:$0xff] }
 0x30d   :  { %v1919_v20 = vpop.f32.mrb[34].mxu0  ;;  %v1959_v9 = vpop.f32.mrb[34].mxu1  ;;  %v1918_v10 = vadd.f32 %v1917_v40, %v8717_v17 }
 0x30e   :  { %v1920_v11 = vpop.f32.mrb[35].mxu0  ;;  %v6414_v23 = vpop.f32.mrb[35].mxu1  ;;  %v1957_v20 = vadd.f32 %v9438_v12, %v8767_v54  ;;  %v11093_v12 = vld [vmem:[#allocation9_spill] sm:$0xff] }
 0x30f   :  { %v11091_v23 = vld [vmem:[#allocation7_spill] sm:$0xff] }
 0x312   :  { %v7901_v27 = vpop.eup %7900 }
 0x313   :  { %v1818_v6 = vadd.f32 1.0, %v7901_v27  ;;  %v7903_v38 = vpop.eup %7902  ;;  %v11092_v27 = vld [vmem:[#allocation8_spill] sm:$0xff] }
 0x314   :  { %v1825_v50 = vadd.f32 1.0, %v7903_v38 }
 0x315   :  { %7904 = vrcp.f32 %v1818_v6  ;;  %v11094_v6 = vld [vmem:[#allocation10_spill] sm:$0xff] }
 0x316   :  { %7906 = vrcp.f32 %v1825_v50 }
 0x31f   :  { %v7905_v25 = vpop.eup %7904 }
 0x320   :  { %v1829_v28 = vmul.f32 %v7905_v25, %v1828_v33  ;;  %v7907_v45 = vpop.eup %7906 }
 0x321   :  { %v1832_v32 = vsub.f32 1.0, %v7907_v45  ;;  %v1834_v18 = vmul.f32 %v7907_v45, %v9104_v34  ;;  %v9542_v45 = vld [vmem:[%s11017_s2 + $0x4] ss:$12 sps:$4 sm:$0xff]  }
 0x322   :  { %v1830_v56 = vadd.f32 %v1829_v28, %v1620_v35 }
 0x324   :  { %7908 = vtanh.f32 %v1830_v56 }
 0x32b   :  { %v2076_v49 = vpop.f32.mrb[30].mxu0  ;;  %v2147_v63 = vpop.f32.mrb[30].mxu1 }
 0x32c   :  { %v2151_v0 = vadd.f32 %v2076_v49, %v1916_v16  ;;  %v2078_v8 = vpop.f32.mrb[31].mxu0  ;;  %v6449_v61 = vpop.f32.mrb[31].mxu1  ;;  %v9547_v16 = vld [vmem:[%s11017_s2] ss:$12 sps:$4 sm:$0xff]   ;;  %v9557_v49 = vld [vmem:[%s11017_s2 + $0x1c] ss:$12 sps:$4 sm:$0xff]  }
 0x32d   :  { %v2158_v19 = vadd.f32 %v2078_v8, %v1918_v10  ;;  %v7823_v10 = vld [vmem:[%s11017_s2 + $0x8] ss:$12 sps:$4 sm:$0xff]   ;;  %v3001_v61 = vld [vmem:[%s11018_s6 + $0x20] sm:$0xff] }
 0x32e   :  { %v7909_v55 = vpop.eup %7908  ;;  %v5738_v3 = vmul.f32 -1.442695, %v2151_v0  ;;  %v7827_v0 = vld [vmem:[%s11017_s2 + $0x20] ss:$12 sps:$4 sm:$0xff]  }
 0x32f   :  { %v1833_v5 = vmul.f32 %v7909_v55, %v1832_v32  ;;  %v5739_v39 = vmul.f32 -1.442695, %v2158_v19  ;;  %v2998_v8 = vld [vmem:[%s11018_s6 + $0x8] sm:$0xff]  ;;  %v5770_v19 = vld [vmem:[%s11019_s0 + $0x10] sm:$0xf]  ;;  %v2997_v55 = vld [vmem:[%s11018_s6] sm:$0xff] }
 0x330   :  { %7910 = vpow2.f32 %v5738_v3  ;;  %v9579_v32 = vpack.c.bf16 %v3001_v61, %v2998_v8  ;;  %v3000_v3 = vld [vmem:[%s11018_s6 + $0x18] sm:$0xff]  ;;  %v3026_v8 = vld [vmem:[%s11018_s6 + $0xe8] sm:$0xff] }
 0x331   :  { %v9454_v30 = vadd.f32 %v1834_v18, %v1833_v5  ;;  %7912 = vpow2.f32 %v5739_v39  ;;  %v9588_v5 = vpack.c.bf16 %v3000_v3, %v2997_v55  ;;  %v2999_v18 = vld [vmem:[%s11018_s6 + $0x10] sm:$0xff] }
 0x332   :  { %v3031_v55 = vld [vmem:[%s11018_s6 + $0x110] sm:$0xff] }
 0x333   :  { %2424 = vmatmul.mubr.f32.vlgmr.msra.gmra.mrb[40].mxu0 %v9454_v30  ;;  %6491 = vmatmul.mubr.f32.vlgmr.msra.gmra.mrb[40].mxu1 %v9454_v30  ;;  %5741 = vst [vmem:[%s11026_s10 + $0x10] sm:$0xff] %v9454_v30  ;;  %v3027_v3 = vld [vmem:[%s11018_s6 + $0xf0] sm:$0xff] }
 0x334   :  { %2568 = vmatpush1.bf16.msra.mxu0 %v9099_v26  ;;  %6494 = vmatpush3.bf16.msra.mxu1 %v7818_v14  ;;  %v5755_v26 = vld [vmem:[%s11022_s1 + $0x10] sm:$0xf]  ;;  %v3002_v14 = vld [vmem:[%s11018_s6 + $0x28] sm:$0xff] }
 0x335   :  { %2569 = vmatprep.subr.bf16.mxu0 %v9109_v60  ;;  %6495 = vmatprep.subr.bf16.mxu1 %v11084_v7  ;;  %v9598_v39 = vpack.c.bf16 %v3002_v14, %v2999_v18  ;;  %v3030_v14 = vld [vmem:[%s11018_s6 + $0x108] sm:$0xff] }
 0x336   :  { %2599 = vmatprep.mubr.bf16.mxu0 %v11085_v59  ;;  %6497 = vmatprep.mubr.msk.bf16.mxu1 %vm8028_vm0, %v11084_v7 }
 0x338   :  { %2570 = vmatpush1.bf16.msra.mxu0 %v9123_v21  ;;  %6496 = vmatpush3.bf16.msra.mxu1 %v7819_v62  ;;  %v11086_v21 = vld [vmem:[#allocation2_spill] sm:$0xff]  ;;  %v3004_v62 = vld [vmem:[%s11018_s6 + $0x38] sm:$0xff] }
 0x339   :  { %7273 = vmatprep.subr.bf16.mxu0 %v9137_v42  ;;  %7304 = vmatprep.subr.bf16.mxu1 %v11077_v15 }
 0x33a   :  { %v7911_v34 = vpop.eup %7910 }
 0x33b   :  { %v2155_v60 = vadd.f32 1.0, %v7911_v34  ;;  %5762 = vmatmul.mubr.msk.bf16.vlgmr.msra.gmra.mrb[44].mxu0 %vm169_vm1, %v5755_v26  ;;  %6498 = vmatmul.mubr.msk.bf16.vlgmr.msra.gmra.mrb[44].mxu1 %vm169_vm1, %v5755_v26  ;;  %v7913_v42 = vpop.eup %7912  ;;  %v3007_v26 = vld [vmem:[%s11018_s6 + $0x50] sm:$0xff] }
 0x33c   :  { %7275 = vmatpush1.bf16.msra.mxu0 %v9161_v43  ;;  %7306 = vmatpush3.bf16.msra.mxu1 %v9163_v44  ;;  %v2162_v43 = vadd.f32 1.0, %v7913_v42  ;;  %v11088_v44 = vld [vmem:[#allocation4_spill] sm:$0xff]  ;;  %v9610_v34 = vpack.c.bf16 %v3007_v26, %v3004_v62  ;;  %v3029_v62 = vld [vmem:[%s11018_s6 + $0x100] sm:$0xff]  ;;  %v3032_v26 = vld [vmem:[%s11018_s6 + $0x118] sm:$0xff] }
 0x33d   :  { %7914 = vrcp.f32 %v2155_v60  ;;  %7277 = vmatprep.subr.bf16.mxu0 %v9170_v47  ;;  %7307 = vmatprep.subr.bf16.mxu1 %v11077_v15  ;;  %v11089_v47 = vld [vmem:[#allocation5_spill] sm:$0xff]  ;;  %v3003_v60 = vld [vmem:[%s11018_s6 + $0x30] sm:$0xff] }
 0x33e   :  { %2760 = vmatprep.mubr.f32.mxu0 %v11084_v7  ;;  %6533 = vmatprep.mubr.msk.f32.mxu1 %vm8028_vm0, %v11084_v7  ;;  %7916 = vrcp.f32 %v2162_v43  ;;  %v3008_v43 = vld [vmem:[%s11018_s6 + $0x58] sm:$0xff] }
 0x340   :  { %7279 = vmatpush1.bf16.msra.mxu0 %v9191_v29  ;;  %7309 = vmatpush3.bf16.msra.mxu1 %v11086_v21  ;;  %v9497_v29 = vld [vmem:[%s11027_s9] ss:$0 sm:$0xff]  ;;  %v3006_v21 = vld [vmem:[%s11018_s6 + $0x48] sm:$0xff] }
 0x341   :  { %7281 = vmatprep.subr.bf16.mxu0 %v11087_v48  ;;  %7310 = vmatprep.subr.bf16.mxu1 %v11077_v15  ;;  %v2165_v40 = vadd.f32 %v9497_v29, %v2147_v63  ;;  %v9562_v63 = vld [vmem:[%s11017_s2 + $0x18] ss:$12 sps:$4 sm:$0xff]   ;;  %v9620_v42 = vpack.c.bf16 %v3006_v21, %v3003_v60  ;;  %v9738_v60 = vpack.c.bf16 %v3030_v14, %v3027_v3 }
 0x342   :  { %v3005_v48 = vld [vmem:[%s11018_s6 + $0x40] sm:$0xff]  ;;  %v9741_v21 = vpack.c.bf16 %v3032_v26, %v3029_v62 }
 0x344   :  { %7283 = vmatpush1.bf16.msra.mxu0 %v11088_v44  ;;  %7312 = vmatpush3.bf16.msra.mxu1 %v11089_v47  ;;  %v9630_v44 = vpack.c.bf16 %v3008_v43, %v3005_v48  ;;  %v3010_v47 = vld [vmem:[%s11018_s6 + $0x68] sm:$0xff]  ;;  %v3037_v43 = vld [vmem:[%s11018_s6 + $0x140] sm:$0xff] }
 0x345   :  { %7285 = vmatprep.subr.bf16.mxu0 %v11090_v24  ;;  %7313 = vmatprep.subr.bf16.mxu1 %v11077_v15  ;;  %v3013_v24 = vld [vmem:[%s11018_s6 + $0x80] sm:$0xff]  ;;  %v3034_v48 = vld [vmem:[%s11018_s6 + $0x128] sm:$0xff] }
 0x347   :  { %v7915_v58 = vpop.eup %7914 }
 0x348   :  { %v2166_v9 = vmul.f32 %v7915_v58, %v2165_v40  ;;  %7287 = vmatpush1.bf16.msra.mxu0 %v9250_v57  ;;  %7315 = vmatpush3.bf16.msra.mxu1 %v9252_v2  ;;  %v11095_v57 = vld [vmem:[#allocation11_spill] sm:$0xff]  ;;  %v7917_v2 = vpop.eup %7916  ;;  %v9640_v40 = vpack.c.bf16 %v3013_v24, %v3010_v47  ;;  %v3009_v58 = vld [vmem:[%s11018_s6 + $0x60] sm:$0xff]  ;;  %v9750_v47 = vpack.c.bf16 %v3037_v43, %v3034_v48 }
 0x349   :  { %7289 = vmatprep.subr.bf16.mxu0 %v9262_v53  ;;  %7316 = vmatprep.subr.bf16.mxu1 %v11077_v15  ;;  %v11096_v53 = vld [vmem:[#allocation12_spill] sm:$0xff]  ;;  %v2171_v33 = vmul.f32 %v7917_v2, %v9369_v1  ;;  %v3033_v24 = vld [vmem:[%s11018_s6 + $0x120] sm:$0xff] }
 0x34a   :  { %v2167_v11 = vadd.f32 %v2166_v9, %v1957_v20  ;;  %v3012_v20 = vld [vmem:[%s11018_s6 + $0x78] sm:$0xff] }
 0x34b   :  { %v9648_v9 = vpack.c.bf16 %v3012_v20, %v3009_v58  ;;  %v3036_v58 = vld [vmem:[%s11018_s6 + $0x138] sm:$0xff] }
 0x34c   :  { %7918 = vtanh.f32 %v2167_v11  ;;  %7291 = vmatpush1.bf16.msra.mxu0 %v9278_v4  ;;  %7318 = vmatpush3.bf16.msra.mxu1 %v11091_v23  ;;  %v2169_v4 = vsub.f32 1.0, %v7917_v2  ;;  %v3011_v11 = vld [vmem:[%s11018_s6 + $0x70] sm:$0xff]  ;;  %v3014_v23 = vld [vmem:[%s11018_s6 + $0x88] sm:$0xff]  ;;  %v9761_v20 = vpack.c.bf16 %v3036_v58, %v3033_v24 }
 0x34d   :  { %7293 = vmatprep.subr.bf16.mxu0 %v11092_v27  ;;  %7319 = vmatprep.subr.bf16.mxu1 %v11077_v15  ;;  %v9658_v27 = vpack.c.bf16 %v3014_v23, %v3011_v11  ;;  %v3015_v2 = vld [vmem:[%s11018_s6 + $0x90] sm:$0xff]  ;;  %v3038_v23 = vld [vmem:[%s11018_s6 + $0x148] sm:$0xff] }
 0x34e   :  { %v3035_v11 = vld [vmem:[%s11018_s6 + $0x130] sm:$0xff] }
 0x350   :  { %7295 = vmatpush1.bf16.msra.mxu0 %v11093_v12  ;;  %7321 = vmatpush3.bf16.msra.mxu1 %v11094_v6  ;;  %v3016_v12 = vld [vmem:[%s11018_s6 + $0x98] sm:$0xff]  ;;  %v3019_v6 = vld [vmem:[%s11018_s6 + $0xb0] sm:$0xff] }
 0x351   :  { %7297 = vmatprep.subr.bf16.mxu0 %v11095_v57  ;;  %7322 = vmatprep.subr.bf16.mxu1 %v11077_v15  ;;  %v9668_v57 = vpack.c.bf16 %v3019_v6, %v3016_v12  ;;  %v9770_v12 = vpack.c.bf16 %v3038_v23, %v3035_v11  ;;  %v3040_v6 = vld [vmem:[%s11018_s6 + $0x158] sm:$0xff] }
 0x354   :  { %7299 = vmatpush1.bf16.msra.mxu0 %v11096_v53  ;;  %7324 = vmatpush3.bf16.msra.mxu1 %v9340_v46  ;;  %v3018_v53 = vld [vmem:[%s11018_s6 + $0xa8] sm:$0xff] }
 0x355   :  { %7301 = vmatprep.subr.bf16.mxu0 %v9347_v36  ;;  %7325 = vmatprep.subr.bf16.mxu1 %v11077_v15  ;;  %v9533_v36 = vpop.f32.mrb[36].mxu0 }
 0x356   :  { %v7919_v38 = vpop.eup %7918  ;;  %v9535_v1 = vpop.f32.mrb[37].mxu0 }
 0x357   :  { %v2170_v50 = vmul.f32 %v7919_v38, %v2169_v4  ;;  %v2268_v46 = vpop.f32.mrb[38].mxu0  ;;  %v9676_v4 = vpack.c.bf16 %v3018_v53, %v3015_v2  ;;  %v3017_v38 = vld [vmem:[%s11018_s6 + $0xa0] sm:$0xff]  ;;  %v3043_v2 = vld [vmem:[%s11018_s6 + $0x170] sm:$0xff] }
 0x358   :  { %7303 = vmatpush1.bf16.msra.mxu0 %v9360_v31  ;;  %7327 = vmatpush3.bf16.msra.mxu1 %v9362_v37  ;;  %v9537_v31 = vpop.f32.mrb[36].mxu1  ;;  %v2269_v37 = vpop.f32.mrb[39].mxu0  ;;  %v3022_v46 = vld [vmem:[%s11018_s6 + $0xc8] sm:$0xff]  ;;  %v9780_v53 = vpack.c.bf16 %v3043_v2, %v3040_v6 }
 0x359   :  { %v9521_v25 = vadd.f32 %v2171_v33, %v2170_v50  ;;  %6536 = vmatprep.subr.bf16.mxu1 %v11084_v7  ;;  %v6456_v35 = vpop.f32.mrb[37].mxu1  ;;  %2916 = vmatprep.subr.bf16.mxu0 %v9542_v45  ;;  %v3020_v50 = vld [vmem:[%s11018_s6 + $0xb8] sm:$0xff]  ;;  %v3025_v37 = vld [vmem:[%s11018_s6 + $0xe0] sm:$0xff] }
 0x35a   :  { %v2308_v28 = vpop.f32.mrb[38].mxu1  ;;  %v9686_v33 = vpack.c.bf16 %v3020_v50, %v3017_v38  ;;  %v9696_v35 = vpack.c.bf16 %v3025_v37, %v3022_v46  ;;  %v3039_v38 = vld [vmem:[%s11018_s6 + $0x150] sm:$0xff]  ;;  %v3042_v50 = vld [vmem:[%s11018_s6 + $0x168] sm:$0xff]  ;;  %v3041_v37 = vld [vmem:[%s11018_s6 + $0x160] sm:$0xff] }
 0x35b   :  { %2761 = vmatmul.mubr.f32.vlgmr.msra.gmra.mrb[42].mxu0 %v9521_v25  ;;  %6534 = vmatmul.mubr.f32.vlgmr.msra.gmra.mrb[42].mxu1 %v9521_v25  ;;  %5743 = vst [vmem:[%s11026_s10 + $0x28] sm:$0xff] %v9521_v25  ;;  %v6457_v56 = vpop.f32.mrb[39].mxu1  ;;  %v3021_v28 = vld [vmem:[%s11018_s6 + $0xc0] sm:$0xff]  ;;  %v9788_v46 = vpack.c.bf16 %v3042_v50, %v3039_v38 }
 0x35c   :  { %2948 = vmatprep.mubr.bf16.mxu0 %v11085_v59  ;;  %6540 = vmatprep.mubr.msk.bf16.mxu1 %vm8028_vm0, %v11084_v7  ;;  %v3024_v56 = vld [vmem:[%s11018_s6 + $0xd8] sm:$0xff] }
 0x35d   :  { %2917 = vmatpush1.bf16.msra.mxu0 %v9547_v16  ;;  %6537 = vmatpush3.bf16.msra.mxu1 %v7823_v10  ;;  %v9704_v10 = vpack.c.bf16 %v3024_v56, %v3021_v28  ;;  %v3044_v28 = vld [vmem:[%s11018_s6 + $0x178] sm:$0xff] }
 0x35e   :  { %2918 = vmatprep.subr.bf16.mxu0 %v9557_v49  ;;  %6538 = vmatprep.subr.bf16.mxu1 %v11084_v7  ;;  %v9798_v56 = vpack.c.bf16 %v3044_v28, %v3041_v37 }
 0x361   :  { %2919 = vmatpush1.bf16.msra.mxu0 %v9562_v63  ;;  %6539 = vmatpush3.bf16.msra.mxu1 %v7827_v0  ;;  %v3023_v0 = vld [vmem:[%s11018_s6 + $0xd0] sm:$0xff] }
 0x362   :  { %7360 = vmatprep.subr.bf16.mxu1 %v11077_v15  ;;  %7329 = vmatprep.subr.bf16.mxu0 %v9579_v32  ;;  %v9714_v61 = vpack.c.bf16 %v3026_v8, %v3023_v0  ;;  %v9805_v0 = vld [vmem:[%s11020_s3 + $0x4] ss:$12 sps:$4 sm:$0xff]   ;;  %v2265_v8 = vadd.f32 %v9533_v36, %v8692_v51 }
 0x364   :  { %5777 = vmatmul.mubr.msk.bf16.vlgmr.msra.gmra.mrb[48].mxu0 %vm169_vm1, %v5770_v19  ;;  %6541 = vmatmul.mubr.msk.bf16.vlgmr.msra.gmra.mrb[48].mxu1 %vm169_vm1, %v5770_v19  ;;  %v3028_v19 = vld [vmem:[%s11018_s6 + $0xf8] sm:$0xff] }
 0x365   :  { %3109 = vmatprep.mubr.f32.mxu0 %v11084_v7  ;;  %7331 = vmatpush1.bf16.msra.mxu0 %v9588_v5  ;;  %v9727_v18 = vpack.c.bf16 %v3031_v55, %v3028_v19  ;;  %v2267_v19 = vadd.f32 %v9535_v1, %v8694_v52 }
 0x366   :  { %7362 = vmatpush3.bf16.msra.mxu1 %v9598_v39  ;;  %6576 = vmatprep.mubr.msk.f32.mxu1 %vm8028_vm0, %v11084_v7 }
 0x367   :  { %7363 = vmatprep.subr.bf16.mxu1 %v11077_v15  ;;  %7333 = vmatprep.subr.bf16.mxu0 %v9610_v34 }
 0x369   :  { %7335 = vmatpush1.bf16.msra.mxu0 %v9620_v42 }
 0x36a   :  { %7365 = vmatpush3.bf16.msra.mxu1 %v9630_v44  ;;  %7337 = vmatprep.subr.bf16.mxu0 %v9640_v40 }
 0x36b   :  { %7366 = vmatprep.subr.bf16.mxu1 %v11077_v15 }
 0x36d   :  { %7339 = vmatpush1.bf16.msra.mxu0 %v9648_v9 }
 0x36e   :  { %7368 = vmatpush3.bf16.msra.mxu1 %v9658_v27  ;;  %7341 = vmatprep.subr.bf16.mxu0 %v9668_v57 }
 0x36f   :  { %7369 = vmatprep.subr.bf16.mxu1 %v11077_v15 }
 0x371   :  { %7343 = vmatpush1.bf16.msra.mxu0 %v9676_v4 }
 0x372   :  { %7371 = vmatpush3.bf16.msra.mxu1 %v9686_v33  ;;  %7345 = vmatprep.subr.bf16.mxu0 %v9696_v35 }
 0x373   :  { %7372 = vmatprep.subr.bf16.mxu1 %v11077_v15 }
 0x375   :  { %7347 = vmatpush1.bf16.msra.mxu0 %v9704_v10 }
 0x376   :  { %7374 = vmatpush3.bf16.msra.mxu1 %v9714_v61  ;;  %7349 = vmatprep.subr.bf16.mxu0 %v9727_v18 }
 0x377   :  { %7375 = vmatprep.subr.bf16.mxu1 %v11077_v15 }
 0x379   :  { %7351 = vmatpush1.bf16.msra.mxu0 %v9738_v60 }
 0x37a   :  { %7377 = vmatpush3.bf16.msra.mxu1 %v9741_v21  ;;  %7353 = vmatprep.subr.bf16.mxu0 %v9750_v47 }
 0x37b   :  { %7378 = vmatprep.subr.bf16.mxu1 %v11077_v15 }
 0x37d   :  { %7355 = vmatpush1.bf16.msra.mxu0 %v9761_v20 }
 0x37e   :  { %7380 = vmatpush3.bf16.msra.mxu1 %v9770_v12  ;;  %7357 = vmatprep.subr.bf16.mxu0 %v9780_v53 }
 0x37f   :  { %7381 = vmatprep.subr.bf16.mxu1 %v11077_v15 }
 0x381   :  { %7359 = vmatpush1.bf16.msra.mxu0 %v9788_v46 }
 0x382   :  { %7383 = vmatpush3.bf16.msra.mxu1 %v9798_v56  ;;  %3253 = vmatprep.subr.bf16.mxu0 %v9805_v0 }
 0x383   :  { %6579 = vmatprep.subr.bf16.mxu1 %v11084_v7 }
 0x406   :  { %v2425_v55 = vpop.f32.mrb[40].mxu0  ;;  %v2496_v3 = vpop.f32.mrb[40].mxu1 }
 0x407   :  { %v2500_v14 = vadd.f32 %v2425_v55, %v2265_v8  ;;  %v2427_v62 = vpop.f32.mrb[41].mxu0  ;;  %v6492_v26 = vpop.f32.mrb[41].mxu1 }
 0x408   :  { %v2507_v48 = vadd.f32 %v2427_v62, %v2267_v19  ;;  %v2514_v19 = vadd.f32 %v9443_v41, %v2496_v3 }
 0x409   :  { %v5753_v43 = vmul.f32 -1.442695, %v2500_v14  ;;  %v2306_v14 = vadd.f32 %v9537_v31, %v8708_v22 }
 0x40a   :  { %v5754_v24 = vmul.f32 -1.442695, %v2507_v48 }
 0x40b   :  { %7920 = vpow2.f32 %v5753_v43 }
 0x40c   :  { %7922 = vpow2.f32 %v5754_v24 }
 0x40e   :  { %v2601_v58 = vpop.f32.mrb[44].mxu0  ;;  %v9813_v11 = vpop.f32.mrb[44].mxu1 }
 0x40f   :  { %v2603_v23 = vpop.f32.mrb[45].mxu0  ;;  %v6499_v6 = vpop.f32.mrb[45].mxu1  ;;  %v2602_v43 = vadd.f32 %v2601_v58, %v8715_v13  ;;  %v9826_v58 = vld [vmem:[%s11020_s3] ss:$12 sps:$4 sm:$0xff]  }
 0x410   :  { %v2605_v2 = vpop.f32.mrb[46].mxu0  ;;  %v2645_v38 = vpop.f32.mrb[46].mxu1  ;;  %v2604_v24 = vadd.f32 %v2603_v23, %v8717_v17  ;;  %v7831_v23 = vld [vmem:[%s11020_s3 + $0x8] ss:$12 sps:$4 sm:$0xff]  }
 0x411   :  { %v2606_v36 = vpop.f32.mrb[47].mxu0  ;;  %v6500_v50 = vpop.f32.mrb[47].mxu1 }
 0x415   :  { %v7921_v1 = vpop.eup %7920 }
 0x416   :  { %v2504_v37 = vadd.f32 1.0, %v7921_v1  ;;  %v7923_v28 = vpop.eup %7922 }
 0x417   :  { %v2511_v8 = vadd.f32 1.0, %v7923_v28 }
 0x418   :  { %7924 = vrcp.f32 %v2504_v37 }
 0x419   :  { %7926 = vrcp.f32 %v2511_v8 }
 0x422   :  { %v7925_v55 = vpop.eup %7924 }
 0x423   :  { %v2515_v62 = vmul.f32 %v7925_v55, %v2514_v19  ;;  %v7927_v48 = vpop.eup %7926  ;;  %v9836_v19 = vld [vmem:[%s11020_s3 + $0x1c] ss:$12 sps:$4 sm:$0xff]   ;;  %v3338_v55 = vld [vmem:[%s11021_s7 + $0x20] sm:$0xff] }
 0x424   :  { %v2518_v3 = vsub.f32 1.0, %v7927_v48  ;;  %v2520_v28 = vmul.f32 %v7927_v48, %v9454_v30  ;;  %v3335_v30 = vld [vmem:[%s11021_s7 + $0x8] sm:$0xff]  ;;  %v3334_v48 = vld [vmem:[%s11021_s7] sm:$0xff] }
 0x425   :  { %v2516_v26 = vadd.f32 %v2515_v62, %v2306_v14  ;;  %v9850_v62 = vld [vmem:[%s11020_s3 + $0x18] ss:$12 sps:$4 sm:$0xff]  }
 0x427   :  { %7928 = vtanh.f32 %v2516_v26  ;;  %v7835_v26 = vld [vmem:[%s11020_s3 + $0x20] ss:$12 sps:$4 sm:$0xff]  }
 0x42e   :  { %v2762_v6 = vpop.f32.mrb[42].mxu0  ;;  %v9820_v2 = vpop.f32.mrb[42].mxu1 }
 0x42f   :  { %v2837_v38 = vadd.f32 %v2762_v6, %v2602_v43  ;;  %v2764_v36 = vpop.f32.mrb[43].mxu0  ;;  %v6535_v50 = vpop.f32.mrb[43].mxu1  ;;  %v9860_v43 = vpack.c.bf16 %v3338_v55, %v3335_v30  ;;  %v3336_v6 = vld [vmem:[%s11021_s7 + $0x10] sm:$0xff]  ;;  %v3345_v30 = vld [vmem:[%s11021_s7 + $0x58] sm:$0xff] }
 0x430   :  { %v2844_v41 = vadd.f32 %v2764_v36, %v2604_v24  ;;  %v3337_v24 = vld [vmem:[%s11021_s7 + $0x18] sm:$0xff]  ;;  %v3344_v50 = vld [vmem:[%s11021_s7 + $0x50] sm:$0xff] }
 0x431   :  { %v7929_v1 = vpop.eup %7928  ;;  %v5764_v37 = vmul.f32 -1.442695, %v2837_v38  ;;  %v3339_v38 = vld [vmem:[%s11021_s7 + $0x28] sm:$0xff]  ;;  %v3341_v36 = vld [vmem:[%s11021_s7 + $0x38] sm:$0xff] }
 0x432   :  { %v2519_v31 = vmul.f32 %v7929_v1, %v2518_v3  ;;  %v5765_v14 = vmul.f32 -1.442695, %v2844_v41  ;;  %v5781_v41 = vld [vmem:[%s11022_s1 + $0xc] sm:$0xf]  ;;  %v9884_v3 = vpack.c.bf16 %v3337_v24, %v3334_v48  ;;  %v9886_v1 = vpack.c.bf16 %v3339_v38, %v3336_v6  ;;  %v3346_v38 = vld [vmem:[%s11021_s7 + $0x60] sm:$0xff] }
 0x433   :  { %7930 = vpow2.f32 %v5764_v37  ;;  %v3340_v37 = vld [vmem:[%s11021_s7 + $0x30] sm:$0xff] }
 0x434   :  { %v9831_v8 = vadd.f32 %v2520_v28, %v2519_v31  ;;  %7932 = vpow2.f32 %v5765_v14  ;;  %v9893_v31 = vpack.c.bf16 %v3344_v50, %v3341_v36  ;;  %v3343_v28 = vld [vmem:[%s11021_s7 + $0x48] sm:$0xff]  ;;  %v3349_v50 = vld [vmem:[%s11021_s7 + $0x78] sm:$0xff] }
 0x435   :  { %v3347_v14 = vld [vmem:[%s11021_s7 + $0x68] sm:$0xff]  ;;  %v9914_v24 = vpack.c.bf16 %v3343_v28, %v3340_v37  ;;  %v3353_v28 = vld [vmem:[%s11021_s7 + $0x98] sm:$0xff] }
 0x436   :  { %3110 = vmatmul.mubr.f32.vlgmr.msra.gmra.mrb[52].mxu0 %v9831_v8  ;;  %6577 = vmatmul.mubr.f32.vlgmr.msra.gmra.mrb[52].mxu1 %v9831_v8  ;;  %11097 = vst [vmem:[#allocation2_spill] sm:$0xff] %v9893_v31  ;;  %v3351_v37 = vld [vmem:[%s11021_s7 + $0x88] sm:$0xff] }
 0x437   :  { %3254 = vmatpush1.bf16.msra.mxu0 %v9826_v58  ;;  %6580 = vmatpush3.bf16.msra.mxu1 %v7831_v23  ;;  %v3342_v23 = vld [vmem:[%s11021_s7 + $0x40] sm:$0xff]  ;;  %11098 = vst [vmem:[#allocation3_spill] sm:$0xff] %v9914_v24 }
 0x438   :  { %3255 = vmatprep.subr.bf16.mxu0 %v9836_v19  ;;  %6581 = vmatprep.subr.bf16.mxu1 %v11084_v7  ;;  %v9916_v6 = vpack.c.bf16 %v3345_v30, %v3342_v23  ;;  %v3356_v23 = vld [vmem:[%s11021_s7 + $0xb0] sm:$0xff]  ;;  %v9945_v30 = vpack.c.bf16 %v3349_v50, %v3346_v38  ;;  %v3354_v38 = vld [vmem:[%s11021_s7 + $0xa0] sm:$0xff]  ;;  %v3357_v50 = vld [vmem:[%s11021_s7 + $0xb8] sm:$0xff] }
 0x439   :  { %3285 = vmatprep.mubr.bf16.mxu0 %v11085_v59  ;;  %6583 = vmatprep.mubr.msk.bf16.mxu1 %vm8028_vm0, %v11084_v7 }
 0x43a   :  { %11099 = vst [vmem:[#allocation4_spill] sm:$0xff] %v9916_v6  ;;  %11101 = vst [vmem:[#allocation6_spill] sm:$0xff] %v9945_v30 }
 0x43b   :  { %3256 = vmatpush1.bf16.msra.mxu0 %v9850_v62  ;;  %6582 = vmatpush3.bf16.msra.mxu1 %v7835_v26  ;;  %v3350_v26 = vld [vmem:[%s11021_s7 + $0x80] sm:$0xff] }
 0x43c   :  { %7385 = vmatprep.subr.bf16.mxu0 %v9860_v43  ;;  %7416 = vmatprep.subr.bf16.mxu1 %v11077_v15  ;;  %v9923_v36 = vpack.c.bf16 %v3350_v26, %v3347_v14  ;;  %v3352_v14 = vld [vmem:[%s11021_s7 + $0x90] sm:$0xff] }
 0x43d   :  { %v7931_v55 = vpop.eup %7930 }
 0x43e   :  { %v2841_v48 = vadd.f32 1.0, %v7931_v55  ;;  %5788 = vmatmul.mubr.msk.bf16.vlgmr.msra.gmra.mrb[56].mxu0 %vm169_vm1, %v5781_v41  ;;  %6584 = vmatmul.mubr.msk.bf16.vlgmr.msra.gmra.mrb[56].mxu1 %vm169_vm1, %v5781_v41  ;;  %11100 = vst [vmem:[#allocation5_spill] sm:$0xff] %v9923_v36  ;;  %v3348_v41 = vld [vmem:[%s11021_s7 + $0x70] sm:$0xff]  ;;  %v7933_v26 = vpop.eup %7932 }
 0x43f   :  { %7387 = vmatpush1.bf16.msra.mxu0 %v9884_v3  ;;  %7418 = vmatpush3.bf16.msra.mxu1 %v9886_v1  ;;  %v9947_v55 = vpack.c.bf16 %v3351_v37, %v3348_v41  ;;  %v3359_v41 = vld [vmem:[%s11021_s7 + $0xc8] sm:$0xff]  ;;  %v3362_v37 = vld [vmem:[%s11021_s7 + $0xe0] sm:$0xff] }
 0x440   :  { %7934 = vrcp.f32 %v2841_v48  ;;  %7389 = vmatprep.subr.bf16.mxu0 %v9893_v31  ;;  %7419 = vmatprep.subr.bf16.mxu1 %v11077_v15  ;;  %v9954_v48 = vpack.c.bf16 %v3356_v23, %v3353_v28  ;;  %v2848_v28 = vadd.f32 1.0, %v7933_v26  ;;  %v3361_v31 = vld [vmem:[%s11021_s7 + $0xd8] sm:$0xff]  ;;  %v9985_v26 = vpack.c.bf16 %v3362_v37, %v3359_v41  ;;  %v3368_v41 = vld [vmem:[%s11021_s7 + $0x110] sm:$0xff] }
 0x441   :  { %3446 = vmatprep.mubr.f32.mxu0 %v11084_v7  ;;  %6619 = vmatprep.mubr.msk.f32.mxu1 %vm8028_vm0, %v11084_v7  ;;  %11102 = vst [vmem:[#allocation7_spill] sm:$0xff] %v9947_v55 }
 0x442   :  { %11103 = vst [vmem:[#allocation8_spill] sm:$0xff] %v9954_v48  ;;  %7936 = vrcp.f32 %v2848_v28  ;;  %v3369_v28 = vld [vmem:[%s11021_s7 + $0x118] sm:$0xff] }
 0x443   :  { %7391 = vmatpush1.bf16.msra.mxu0 %v9914_v24  ;;  %7421 = vmatpush3.bf16.msra.mxu1 %v9916_v6  ;;  %v3355_v24 = vld [vmem:[%s11021_s7 + $0xa8] sm:$0xff]  ;;  %v3358_v6 = vld [vmem:[%s11021_s7 + $0xc0] sm:$0xff] }
 0x444   :  { %7393 = vmatprep.subr.bf16.mxu0 %v9923_v36  ;;  %7422 = vmatprep.subr.bf16.mxu1 %v11077_v15  ;;  %v9973_v23 = vpack.c.bf16 %v3355_v24, %v3352_v14  ;;  %v9975_v36 = vpack.c.bf16 %v3357_v50, %v3354_v38  ;;  %v3360_v24 = vld [vmem:[%s11021_s7 + $0xd0] sm:$0xff]  ;;  %v3363_v14 = vld [vmem:[%s11021_s7 + $0xe8] sm:$0xff]  ;;  %v2851_v38 = vadd.f32 %v9497_v29, %v9820_v2  ;;  %v3365_v50 = vld [vmem:[%s11021_s7 + $0xf8] sm:$0xff] }
 0x445   :  { %v10007_v29 = vpack.c.bf16 %v3363_v14, %v3360_v24  ;;  %v3364_v2 = vld [vmem:[%s11021_s7 + $0xf0] sm:$0xff]  ;;  %v3371_v14 = vld [vmem:[%s11021_s7 + $0x128] sm:$0xff] }
 0x447   :  { %7395 = vmatpush1.bf16.msra.mxu0 %v9945_v30  ;;  %7424 = vmatpush3.bf16.msra.mxu1 %v9947_v55  ;;  %v2643_v55 = vadd.f32 %v9813_v11, %v8767_v54  ;;  %11104 = vst [vmem:[#allocation9_spill] sm:$0xff] %v10007_v29  ;;  %v3367_v11 = vld [vmem:[%s11021_s7 + $0x108] sm:$0xff] }
 0x448   :  { %7397 = vmatprep.subr.bf16.mxu0 %v9954_v48  ;;  %7425 = vmatprep.subr.bf16.mxu1 %v11077_v15  ;;  %v10001_v48 = vpack.c.bf16 %v3361_v31, %v3358_v6  ;;  %v10014_v31 = vpack.c.bf16 %v3368_v41, %v3365_v50  ;;  %v3366_v6 = vld [vmem:[%s11021_s7 + $0x100] sm:$0xff]  ;;  %v10033_v50 = vpack.c.bf16 %v3367_v11, %v3364_v2  ;;  %v3372_v2 = vld [vmem:[%s11021_s7 + $0x130] sm:$0xff]  ;;  %v3375_v11 = vld [vmem:[%s11021_s7 + $0x148] sm:$0xff] }
 0x449   :  { %v10035_v41 = vpack.c.bf16 %v3369_v28, %v3366_v6  ;;  %v3377_v6 = vld [vmem:[%s11021_s7 + $0x158] sm:$0xff]  ;;  %v3380_v28 = vld [vmem:[%s11021_s7 + $0x170] sm:$0xff] }
 0x44a   :  { %v7935_v37 = vpop.eup %7934  ;;  %11105 = vst [vmem:[#allocation10_spill] sm:$0xff] %v10014_v31  ;;  %11106 = vst [vmem:[#allocation11_spill] sm:$0xff] %v10033_v50 }
 0x44b   :  { %v2852_v30 = vmul.f32 %v7935_v37, %v2851_v38  ;;  %7399 = vmatpush1.bf16.msra.mxu0 %v9973_v23  ;;  %7427 = vmatpush3.bf16.msra.mxu1 %v9975_v36  ;;  %v3374_v38 = vld [vmem:[%s11021_s7 + $0x140] sm:$0xff]  ;;  %11107 = vst [vmem:[#allocation12_spill] sm:$0xff] %v10035_v41  ;;  %v3373_v37 = vld [vmem:[%s11021_s7 + $0x138] sm:$0xff] }
 0x44c   :  { %7401 = vmatprep.subr.bf16.mxu0 %v9985_v26  ;;  %7428 = vmatprep.subr.bf16.mxu1 %v11077_v15 }
 0x44d   :  { %v2853_v24 = vadd.f32 %v2852_v30, %v2643_v55  ;;  %v3370_v30 = vld [vmem:[%s11021_s7 + $0x120] sm:$0xff]  ;;  %v10042_v55 = vpack.c.bf16 %v3374_v38, %v3371_v14  ;;  %v10063_v14 = vpack.c.bf16 %v3375_v11, %v3372_v2  ;;  %v3376_v38 = vld [vmem:[%s11021_s7 + $0x150] sm:$0xff]  ;;  %v7937_v2 = vpop.eup %7936 }
 0x44f   :  { %7938 = vtanh.f32 %v2853_v24  ;;  %7403 = vmatpush1.bf16.msra.mxu0 %v10001_v48  ;;  %7430 = vmatpush3.bf16.msra.mxu1 %v10007_v29  ;;  %11108 = vst [vmem:[#allocation13_spill] sm:$0xff] %v10042_v55  ;;  %v10061_v24 = vpack.c.bf16 %v3373_v37, %v3370_v30  ;;  %v3378_v30 = vld [vmem:[%s11021_s7 + $0x160] sm:$0xff]  ;;  %v3381_v37 = vld [vmem:[%s11021_s7 + $0x178] sm:$0xff]  ;;  %v2857_v29 = vmul.f32 %v7937_v2, %v9521_v25  ;;  %v2950_v25 = vpop.f32.mrb[48].mxu0 }
 0x450   :  { %7405 = vmatprep.subr.bf16.mxu0 %v10014_v31  ;;  %7431 = vmatprep.subr.bf16.mxu1 %v11077_v15  ;;  %v10070_v31 = vpack.c.bf16 %v3380_v28, %v3377_v6  ;;  %v10085_v6 = vpack.c.bf16 %v3381_v37, %v3378_v30  ;;  %v2855_v28 = vsub.f32 1.0, %v7937_v2 }
 0x451   :  { %11109 = vst [vmem:[#allocation14_spill] sm:$0xff] %v10061_v24 }
 0x453   :  { %7407 = vmatpush1.bf16.msra.mxu0 %v10033_v50  ;;  %7433 = vmatpush3.bf16.msra.mxu1 %v10035_v41  ;;  %v3379_v50 = vld [vmem:[%s11021_s7 + $0x168] sm:$0xff] }
 0x454   :  { %7409 = vmatprep.subr.bf16.mxu0 %v10042_v55  ;;  %7434 = vmatprep.subr.bf16.mxu1 %v11077_v15  ;;  %v10083_v11 = vpack.c.bf16 %v3379_v50, %v3376_v38  ;;  %v10105_v50 = vpop.f32.mrb[48].mxu1 }
 0x455   :  { %v2992_v37 = vadd.f32 %v10105_v50, %v8708_v22 }
 0x457   :  { %7411 = vmatpush1.bf16.msra.mxu0 %v10061_v24  ;;  %7436 = vmatpush3.bf16.msra.mxu1 %v10063_v14 }
 0x458   :  { %7413 = vmatprep.subr.bf16.mxu0 %v10070_v31  ;;  %7437 = vmatprep.subr.bf16.mxu1 %v11077_v15 }
 0x459   :  { %v7939_v55 = vpop.eup %7938 }
 0x45a   :  { %v2856_v41 = vmul.f32 %v7939_v55, %v2855_v28  ;;  %v6542_v55 = vpop.f32.mrb[49].mxu1 }
 0x45b   :  { %7415 = vmatpush1.bf16.msra.mxu0 %v10083_v11  ;;  %7439 = vmatpush3.bf16.msra.mxu1 %v10085_v6  ;;  %v2994_v38 = vpop.f32.mrb[50].mxu1 }
 0x45c   :  { %v10092_v24 = vadd.f32 %v2857_v29, %v2856_v41  ;;  %3602 = vmatprep.subr.bf16.mxu0 %v9542_v45  ;;  %6622 = vmatprep.subr.bf16.mxu1 %v11084_v7  ;;  %v2952_v45 = vpop.f32.mrb[49].mxu0 }
 0x45d   :  { %v2954_v29 = vpop.f32.mrb[50].mxu0 }
 0x45e   :  { %3447 = vmatmul.mubr.f32.vlgmr.msra.gmra.mrb[54].mxu0 %v10092_v24  ;;  %6620 = vmatmul.mubr.f32.vlgmr.msra.gmra.mrb[54].mxu1 %v10092_v24  ;;  %v2955_v41 = vpop.f32.mrb[51].mxu0 }
 0x45f   :  { %3603 = vmatpush1.bf16.msra.mxu0 %v9547_v16  ;;  %3634 = vmatprep.mubr.bf16.mxu0 %v11085_v59  ;;  %v6543_v16 = vpop.f32.mrb[51].mxu1 }
 0x460   :  { %3604 = vmatprep.subr.bf16.mxu0 %v9557_v49  ;;  %6626 = vmatprep.mubr.msk.bf16.mxu1 %vm8028_vm0, %v11084_v7  ;;  %v7836_v49 = vld [vmem:[%s11017_s2 + $0x8] ss:$12 sps:$4 sm:$0xff]  }
 0x461   :  { %6623 = vmatpush3.bf16.msra.mxu1 %v7836_v49 }
 0x462   :  { %6624 = vmatprep.subr.bf16.mxu1 %v11084_v7 }
 0x463   :  { %3605 = vmatpush1.bf16.msra.mxu0 %v9562_v63  ;;  %v7837_v63 = vld [vmem:[%s11017_s2 + $0x20] ss:$12 sps:$4 sm:$0xff]  }
 0x464   :  { %7441 = vmatprep.subr.bf16.mxu0 %v9579_v32  ;;  %v5796_v32 = vld [vmem:[%s11019_s0 + $0x14] sm:$0xf] }
 0x465   :  { %6625 = vmatpush3.bf16.msra.mxu1 %v7837_v63 }
 0x466   :  { %5803 = vmatmul.mubr.msk.bf16.vlgmr.msra.gmra.mrb[60].mxu0 %vm169_vm1, %v5796_v32  ;;  %7472 = vmatprep.subr.bf16.mxu1 %v11077_v15 }
 0x467   :  { %7443 = vmatpush1.bf16.msra.mxu0 %v9588_v5  ;;  %3795 = vmatprep.mubr.f32.mxu0 %v11084_v7  ;;  %v2951_v5 = vadd.f32 %v2950_v25, %v8692_v51 }
 0x468   :  { %6627 = vmatmul.mubr.msk.bf16.vlgmr.msra.gmra.mrb[60].mxu1 %vm169_vm1, %v5796_v32  ;;  %7445 = vmatprep.subr.bf16.mxu0 %v9610_v34 }
 0x469   :  { %7474 = vmatpush3.bf16.msra.mxu1 %v9598_v39  ;;  %6662 = vmatprep.mubr.msk.f32.mxu1 %vm8028_vm0, %v11084_v7  ;;  %v2953_v39 = vadd.f32 %v2952_v45, %v8694_v52 }
 0x46a   :  { %7475 = vmatprep.subr.bf16.mxu1 %v11077_v15 }
 0x46b   :  { %7447 = vmatpush1.bf16.msra.mxu0 %v9620_v42 }
 0x46c   :  { %7449 = vmatprep.subr.bf16.mxu0 %v9640_v40 }
 0x46d   :  { %7477 = vmatpush3.bf16.msra.mxu1 %v9630_v44 }
 0x46e   :  { %7478 = vmatprep.subr.bf16.mxu1 %v11077_v15 }
 0x46f   :  { %7451 = vmatpush1.bf16.msra.mxu0 %v9648_v9 }
 0x470   :  { %7453 = vmatprep.subr.bf16.mxu0 %v9668_v57 }
 0x471   :  { %7480 = vmatpush3.bf16.msra.mxu1 %v9658_v27 }
 0x472   :  { %7481 = vmatprep.subr.bf16.mxu1 %v11077_v15 }
 0x473   :  { %7455 = vmatpush1.bf16.msra.mxu0 %v9676_v4 }
 0x474   :  { %7457 = vmatprep.subr.bf16.mxu0 %v9696_v35 }
 0x475   :  { %7483 = vmatpush3.bf16.msra.mxu1 %v9686_v33 }
 0x476   :  { %7484 = vmatprep.subr.bf16.mxu1 %v11077_v15 }
 0x477   :  { %7459 = vmatpush1.bf16.msra.mxu0 %v9704_v10 }
 0x478   :  { %7461 = vmatprep.subr.bf16.mxu0 %v9727_v18 }
 0x479   :  { %7486 = vmatpush3.bf16.msra.mxu1 %v9714_v61 }
 0x47a   :  { %7487 = vmatprep.subr.bf16.mxu1 %v11077_v15 }
 0x47b   :  { %7463 = vmatpush1.bf16.msra.mxu0 %v9738_v60 }
 0x47c   :  { %7465 = vmatprep.subr.bf16.mxu0 %v9750_v47 }
 0x47d   :  { %7489 = vmatpush3.bf16.msra.mxu1 %v9741_v21 }
 0x47e   :  { %7490 = vmatprep.subr.bf16.mxu1 %v11077_v15 }
 0x47f   :  { %7467 = vmatpush1.bf16.msra.mxu0 %v9761_v20 }
 0x480   :  { %7469 = vmatprep.subr.bf16.mxu0 %v9780_v53 }
 0x481   :  { %7492 = vmatpush3.bf16.msra.mxu1 %v9770_v12 }
 0x482   :  { %7493 = vmatprep.subr.bf16.mxu1 %v11077_v15 }
 0x483   :  { %7471 = vmatpush1.bf16.msra.mxu0 %v9788_v46 }
 0x484   :  { %3939 = vmatprep.subr.bf16.mxu0 %v9805_v0 }
 0x485   :  { %7495 = vmatpush3.bf16.msra.mxu1 %v9798_v56  ;;  %v10162_v56 = vld [vmem:[%s11024_s8] ss:$0 sm:$0xff] }
 0x486   :  { %6665 = vmatprep.subr.bf16.mxu1 %v11084_v7 }
 0x509   :  { %v3111_v34 = vpop.f32.mrb[52].mxu0  ;;  %v3182_v42 = vpop.f32.mrb[52].mxu1 }
 0x50a   :  { %v3186_v44 = vadd.f32 %v3111_v34, %v2951_v5  ;;  %v3113_v40 = vpop.f32.mrb[53].mxu0  ;;  %v6578_v9 = vpop.f32.mrb[53].mxu1  ;;  %v3200_v0 = vadd.f32 %v10162_v56, %v3182_v42  ;;  %v7838_v42 = vld [vmem:[%s11020_s3 + $0x8] ss:$12 sps:$4 sm:$0xff]  }
 0x50b   :  { %v3193_v27 = vadd.f32 %v3113_v40, %v2953_v39 }
 0x50c   :  { %v5779_v57 = vmul.f32 -1.442695, %v3186_v44 }
 0x50d   :  { %v5780_v4 = vmul.f32 -1.442695, %v3193_v27  ;;  %v7839_v27 = vld [vmem:[%s11020_s3 + $0x20] ss:$12 sps:$4 sm:$0xff]  }
 0x50e   :  { %7940 = vpow2.f32 %v5779_v57 }
 0x50f   :  { %7942 = vpow2.f32 %v5780_v4  ;;  %v11112_v4 = vld [vmem:[#allocation4_spill] sm:$0xff] }
 0x511   :  { %v3287_v33 = vpop.f32.mrb[56].mxu0  ;;  %v10157_v35 = vpop.f32.mrb[56].mxu1 }
 0x512   :  { %v3289_v10 = vpop.f32.mrb[57].mxu0  ;;  %v6585_v61 = vpop.f32.mrb[57].mxu1  ;;  %v3288_v45 = vadd.f32 %v3287_v33, %v8715_v13 }
 0x513   :  { %v3291_v18 = vpop.f32.mrb[58].mxu0  ;;  %v3331_v60 = vpop.f32.mrb[58].mxu1  ;;  %v3290_v29 = vadd.f32 %v3289_v10, %v8717_v17  ;;  %v11113_v10 = vld [vmem:[#allocation5_spill] sm:$0xff]  ;;  %v11115_v61 = vld [vmem:[#allocation7_spill] sm:$0xff] }
 0x514   :  { %v3292_v21 = vpop.f32.mrb[59].mxu0  ;;  %v6586_v47 = vpop.f32.mrb[59].mxu1  ;;  %v11116_v18 = vld [vmem:[#allocation8_spill] sm:$0xff]  ;;  %v10217_v60 = vld [vmem:[%s11027_s9] ss:$0 sm:$0xff] }
 0x518   :  { %v7941_v20 = vpop.eup %7940 }
 0x519   :  { %v3190_v12 = vadd.f32 1.0, %v7941_v20  ;;  %v7943_v53 = vpop.eup %7942  ;;  %v3329_v20 = vadd.f32 %v10157_v35, %v8767_v54  ;;  %v11119_v35 = vld [vmem:[#allocation11_spill] sm:$0xff] }
 0x51a   :  { %v3197_v46 = vadd.f32 1.0, %v7943_v53 }
 0x51b   :  { %7944 = vrcp.f32 %v3190_v12 }
 0x51c   :  { %7946 = vrcp.f32 %v3197_v46  ;;  %v11117_v46 = vld [vmem:[#allocation9_spill] sm:$0xff] }
 0x525   :  { %v7945_v30 = vpop.eup %7944 }
 0x526   :  { %v3201_v2 = vmul.f32 %v7945_v30, %v3200_v0  ;;  %v7947_v25 = vpop.eup %7946  ;;  %v11118_v0 = vld [vmem:[#allocation10_spill] sm:$0xff]  ;;  %v11120_v30 = vld [vmem:[#allocation12_spill] sm:$0xff] }
 0x527   :  { %v3204_v32 = vsub.f32 1.0, %v7947_v25  ;;  %v3206_v50 = vmul.f32 %v7947_v25, %v9831_v8 }
 0x528   :  { %v3202_v28 = vadd.f32 %v3201_v2, %v2992_v37 }
 0x52a   :  { %7948 = vtanh.f32 %v3202_v28 }
 0x531   :  { %v3448_v41 = vpop.f32.mrb[54].mxu0  ;;  %v3519_v55 = vpop.f32.mrb[54].mxu1 }
 0x532   :  { %v3523_v38 = vadd.f32 %v3448_v41, %v3288_v45  ;;  %v3450_v16 = vpop.f32.mrb[55].mxu0  ;;  %v6621_v49 = vpop.f32.mrb[55].mxu1  ;;  %v3537_v21 = vadd.f32 %v10217_v60, %v3519_v55  ;;  %v10263_v55 = vld [vmem:[%s11017_s2 + $0x4] ss:$12 sps:$4 sm:$0xff]  }
 0x533   :  { %v3530_v63 = vadd.f32 %v3450_v16, %v3290_v29  ;;  %v7843_v16 = vld [vmem:[%s11017_s2 + $0x8] ss:$12 sps:$4 sm:$0xff]  }
 0x534   :  { %v7949_v5 = vpop.eup %7948  ;;  %v5790_v39 = vmul.f32 -1.442695, %v3523_v38  ;;  %v10268_v38 = vld [vmem:[%s11017_s2] ss:$12 sps:$4 sm:$0xff]   ;;  %v10278_v49 = vld [vmem:[%s11017_s2 + $0x1c] ss:$12 sps:$4 sm:$0xff]  }
 0x535   :  { %v3205_v34 = vmul.f32 %v7949_v5, %v3204_v32  ;;  %v5791_v40 = vmul.f32 -1.442695, %v3530_v63  ;;  %v10283_v63 = vld [vmem:[%s11017_s2 + $0x18] ss:$12 sps:$4 sm:$0xff]   ;;  %v7847_v32 = vld [vmem:[%s11017_s2 + $0x20] ss:$12 sps:$4 sm:$0xff]  }
 0x536   :  { %7950 = vpow2.f32 %v5790_v39  ;;  %v4370_v5 = vld [vmem:[%s11018_s6 + $0x8] sm:$0xff]  ;;  %v4373_v39 = vld [vmem:[%s11018_s6 + $0x20] sm:$0xff] }
 0x537   :  { %v10173_v44 = vadd.f32 %v3206_v50, %v3205_v34  ;;  %7952 = vpow2.f32 %v5791_v40  ;;  %v5822_v34 = vld [vmem:[%s11019_s0 + $0x18] sm:$0xf]  ;;  %v10300_v50 = vpack.c.bf16 %v4373_v39, %v4370_v5  ;;  %v4398_v5 = vld [vmem:[%s11018_s6 + $0xe8] sm:$0xff] }
 0x538   :  { %v4372_v40 = vld [vmem:[%s11018_s6 + $0x18] sm:$0xff] }
 0x539   :  { %v3549_v9 = vadd.f32 %v10173_v44, %v10092_v24  ;;  %3796 = vmatmul.mubr.f32.vlgmr.msra.gmra.mrb[64].mxu0 %v10173_v44  ;;  %6663 = vmatmul.mubr.f32.vlgmr.msra.gmra.mrb[64].mxu1 %v10173_v44 }
 0x53a   :  { %3940 = vmatpush1.bf16.msra.mxu0 %v9826_v58  ;;  %6666 = vmatpush3.bf16.msra.mxu1 %v7838_v42  ;;  %v5807_v58 = vld [vmem:[%s11022_s1 + $0x8] sm:$0xf]  ;;  %v4369_v42 = vld [vmem:[%s11018_s6] sm:$0xff] }
 0x53b   :  { %5793 = vst [vmem:[%s11026_s10 + $0x20] sm:$0xff] %v3549_v9  ;;  %3941 = vmatprep.subr.bf16.mxu0 %v9836_v19  ;;  %6667 = vmatprep.subr.bf16.mxu1 %v11084_v7  ;;  %v10309_v9 = vpack.c.bf16 %v4372_v40, %v4369_v42  ;;  %v4403_v42 = vld [vmem:[%s11018_s6 + $0x110] sm:$0xff] }
 0x53c   :  { %3971 = vmatprep.mubr.bf16.mxu0 %v11085_v59  ;;  %6669 = vmatprep.mubr.msk.bf16.mxu1 %vm8028_vm0, %v11084_v7  ;;  %v4399_v40 = vld [vmem:[%s11018_s6 + $0xf0] sm:$0xff] }
 0x53e   :  { %3942 = vmatpush1.bf16.msra.mxu0 %v9850_v62  ;;  %6668 = vmatpush3.bf16.msra.mxu1 %v7839_v27  ;;  %v11110_v62 = vld [vmem:[#allocation2_spill] sm:$0xff]  ;;  %v4371_v27 = vld [vmem:[%s11018_s6 + $0x10] sm:$0xff] }
 0x53f   :  { %7497 = vmatprep.subr.bf16.mxu0 %v9860_v43  ;;  %7528 = vmatprep.subr.bf16.mxu1 %v11077_v15  ;;  %v11111_v43 = vld [vmem:[#allocation3_spill] sm:$0xff] }
 0x540   :  { %v7951_v19 = vpop.eup %7950 }
 0x541   :  { %v3527_v57 = vadd.f32 1.0, %v7951_v19  ;;  %5814 = vmatmul.mubr.msk.bf16.vlgmr.msra.gmra.mrb[68].mxu0 %vm169_vm1, %v5807_v58  ;;  %6670 = vmatmul.mubr.msk.bf16.vlgmr.msra.gmra.mrb[68].mxu1 %vm169_vm1, %v5807_v58  ;;  %v7953_v33 = vpop.eup %7952  ;;  %v4374_v58 = vld [vmem:[%s11018_s6 + $0x28] sm:$0xff] }
 0x542   :  { %7499 = vmatpush1.bf16.msra.mxu0 %v9884_v3  ;;  %7530 = vmatpush3.bf16.msra.mxu1 %v9886_v1  ;;  %v3534_v3 = vadd.f32 1.0, %v7953_v33  ;;  %v11114_v1 = vld [vmem:[#allocation6_spill] sm:$0xff]  ;;  %v10319_v19 = vpack.c.bf16 %v4374_v58, %v4371_v27  ;;  %v4378_v33 = vld [vmem:[%s11018_s6 + $0x48] sm:$0xff] }
 0x543   :  { %7954 = vrcp.f32 %v3527_v57  ;;  %7501 = vmatprep.subr.bf16.mxu0 %v11110_v62  ;;  %7531 = vmatprep.subr.bf16.mxu1 %v11077_v15  ;;  %v4376_v57 = vld [vmem:[%s11018_s6 + $0x38] sm:$0xff]  ;;  %v4379_v62 = vld [vmem:[%s11018_s6 + $0x50] sm:$0xff]  ;;  %v4402_v58 = vld [vmem:[%s11018_s6 + $0x108] sm:$0xff] }
 0x544   :  { %4132 = vmatprep.mubr.f32.mxu0 %v11084_v7  ;;  %6705 = vmatprep.mubr.msk.f32.mxu1 %vm8028_vm0, %v11084_v7  ;;  %7956 = vrcp.f32 %v3534_v3  ;;  %v4377_v3 = vld [vmem:[%s11018_s6 + $0x40] sm:$0xff] }
 0x546   :  { %7503 = vmatpush1.bf16.msra.mxu0 %v11111_v43  ;;  %7533 = vmatpush3.bf16.msra.mxu1 %v11112_v4  ;;  %v10331_v43 = vpack.c.bf16 %v4379_v62, %v4376_v57  ;;  %v4375_v4 = vld [vmem:[%s11018_s6 + $0x30] sm:$0xff]  ;;  %v4401_v57 = vld [vmem:[%s11018_s6 + $0x100] sm:$0xff]  ;;  %v4404_v62 = vld [vmem:[%s11018_s6 + $0x118] sm:$0xff] }
 0x547   :  { %7505 = vmatprep.subr.bf16.mxu0 %v11113_v10  ;;  %7534 = vmatprep.subr.bf16.mxu1 %v11077_v15  ;;  %v10341_v10 = vpack.c.bf16 %v4378_v33, %v4375_v4  ;;  %v10459_v4 = vpack.c.bf16 %v4402_v58, %v4399_v40  ;;  %v10462_v33 = vpack.c.bf16 %v4404_v62, %v4401_v57 }
 0x54a   :  { %7507 = vmatpush1.bf16.msra.mxu0 %v11114_v1  ;;  %7536 = vmatpush3.bf16.msra.mxu1 %v11115_v61  ;;  %v4380_v1 = vld [vmem:[%s11018_s6 + $0x58] sm:$0xff] }
 0x54b   :  { %7509 = vmatprep.subr.bf16.mxu0 %v11116_v18  ;;  %7537 = vmatprep.subr.bf16.mxu1 %v11077_v15  ;;  %v10351_v61 = vpack.c.bf16 %v4380_v1, %v4377_v3  ;;  %v4382_v18 = vld [vmem:[%s11018_s6 + $0x68] sm:$0xff]  ;;  %v4409_v1 = vld [vmem:[%s11018_s6 + $0x140] sm:$0xff] }
 0x54c   :  { %v4406_v3 = vld [vmem:[%s11018_s6 + $0x128] sm:$0xff] }
 0x54d   :  { %v7955_v47 = vpop.eup %7954 }
 0x54e   :  { %v3538_v12 = vmul.f32 %v7955_v47, %v3537_v21  ;;  %7511 = vmatpush1.bf16.msra.mxu0 %v9973_v23  ;;  %7539 = vmatpush3.bf16.msra.mxu1 %v9975_v36  ;;  %v11121_v23 = vld [vmem:[#allocation13_spill] sm:$0xff]  ;;  %v7957_v36 = vpop.eup %7956  ;;  %v4385_v21 = vld [vmem:[%s11018_s6 + $0x80] sm:$0xff] }
 0x54f   :  { %7513 = vmatprep.subr.bf16.mxu0 %v9985_v26  ;;  %7540 = vmatprep.subr.bf16.mxu1 %v11077_v15  ;;  %v11122_v26 = vld [vmem:[#allocation14_spill] sm:$0xff]  ;;  %v3543_v28 = vmul.f32 %v7957_v36, %v10092_v24  ;;  %v10361_v47 = vpack.c.bf16 %v4385_v21, %v4382_v18  ;;  %v10471_v18 = vpack.c.bf16 %v4409_v1, %v4406_v3 }
 0x550   :  { %v3539_v53 = vadd.f32 %v3538_v12, %v3329_v20  ;;  %v4381_v20 = vld [vmem:[%s11018_s6 + $0x60] sm:$0xff]  ;;  %v4384_v12 = vld [vmem:[%s11018_s6 + $0x78] sm:$0xff] }
 0x551   :  { %v4405_v21 = vld [vmem:[%s11018_s6 + $0x120] sm:$0xff] }
 0x552   :  { %7958 = vtanh.f32 %v3539_v53  ;;  %7515 = vmatpush1.bf16.msra.mxu0 %v10001_v48  ;;  %7542 = vmatpush3.bf16.msra.mxu1 %v11117_v46  ;;  %v3541_v48 = vsub.f32 1.0, %v7957_v36  ;;  %v10369_v53 = vpack.c.bf16 %v4384_v12, %v4381_v20  ;;  %v4383_v46 = vld [vmem:[%s11018_s6 + $0x70] sm:$0xff]  ;;  %v4408_v20 = vld [vmem:[%s11018_s6 + $0x138] sm:$0xff] }
 0x553   :  { %7517 = vmatprep.subr.bf16.mxu0 %v11118_v0  ;;  %7543 = vmatprep.subr.bf16.mxu1 %v11077_v15  ;;  %v4386_v0 = vld [vmem:[%s11018_s6 + $0x88] sm:$0xff]  ;;  %v10482_v12 = vpack.c.bf16 %v4408_v20, %v4405_v21 }
 0x556   :  { %7519 = vmatpush1.bf16.msra.mxu0 %v11119_v35  ;;  %7545 = vmatpush3.bf16.msra.mxu1 %v11120_v30  ;;  %v10379_v35 = vpack.c.bf16 %v4386_v0, %v4383_v46  ;;  %v4388_v30 = vld [vmem:[%s11018_s6 + $0x98] sm:$0xff]  ;;  %v4407_v46 = vld [vmem:[%s11018_s6 + $0x130] sm:$0xff]  ;;  %v4410_v0 = vld [vmem:[%s11018_s6 + $0x148] sm:$0xff] }
 0x557   :  { %7521 = vmatprep.subr.bf16.mxu0 %v11121_v23  ;;  %7546 = vmatprep.subr.bf16.mxu1 %v11077_v15  ;;  %v4391_v23 = vld [vmem:[%s11018_s6 + $0xb0] sm:$0xff] }
 0x558   :  { %v10389_v36 = vpack.c.bf16 %v4391_v23, %v4388_v30  ;;  %v10491_v30 = vpack.c.bf16 %v4410_v0, %v4407_v46  ;;  %v4412_v23 = vld [vmem:[%s11018_s6 + $0x158] sm:$0xff] }
 0x55a   :  { %7523 = vmatpush1.bf16.msra.mxu0 %v11122_v26  ;;  %7548 = vmatpush3.bf16.msra.mxu1 %v10063_v14  ;;  %v4387_v26 = vld [vmem:[%s11018_s6 + $0x90] sm:$0xff] }
 0x55b   :  { %7525 = vmatprep.subr.bf16.mxu0 %v10070_v31  ;;  %7549 = vmatprep.subr.bf16.mxu1 %v11077_v15  ;;  %v10254_v31 = vpop.f32.mrb[60].mxu0 }
 0x55c   :  { %v7959_v37 = vpop.eup %7958  ;;  %v10256_v24 = vpop.f32.mrb[61].mxu0 }
 0x55d   :  { %v3542_v2 = vmul.f32 %v7959_v37, %v3541_v48  ;;  %v4390_v48 = vld [vmem:[%s11018_s6 + $0xa8] sm:$0xff] }
 0x55e   :  { %7527 = vmatpush1.bf16.msra.mxu0 %v10083_v11  ;;  %7551 = vmatpush3.bf16.msra.mxu1 %v10085_v6  ;;  %v3640_v11 = vpop.f32.mrb[62].mxu0  ;;  %v10258_v6 = vpop.f32.mrb[60].mxu1  ;;  %v10397_v37 = vpack.c.bf16 %v4390_v48, %v4387_v26  ;;  %v4415_v26 = vld [vmem:[%s11018_s6 + $0x170] sm:$0xff] }
 0x55f   :  { %v10241_v25 = vadd.f32 %v3543_v28, %v3542_v2  ;;  %6708 = vmatprep.subr.bf16.mxu1 %v11084_v7  ;;  %v6628_v45 = vpop.f32.mrb[61].mxu1  ;;  %4288 = vmatprep.subr.bf16.mxu0 %v10263_v55  ;;  %v4389_v2 = vld [vmem:[%s11018_s6 + $0xa0] sm:$0xff]  ;;  %v4392_v28 = vld [vmem:[%s11018_s6 + $0xb8] sm:$0xff]  ;;  %v4394_v11 = vld [vmem:[%s11018_s6 + $0xc8] sm:$0xff]  ;;  %v10501_v48 = vpack.c.bf16 %v4415_v26, %v4412_v23 }
 0x560   :  { %v3680_v29 = vpop.f32.mrb[62].mxu1 }
 0x561   :  { %v3555_v14 = vadd.f32 %v10241_v25, %v9831_v8  ;;  %4133 = vmatmul.mubr.f32.vlgmr.msra.gmra.mrb[66].mxu0 %v10241_v25  ;;  %6706 = vmatmul.mubr.f32.vlgmr.msra.gmra.mrb[66].mxu1 %v10241_v25  ;;  %v3641_v8 = vpop.f32.mrb[63].mxu0  ;;  %v6629_v41 = vpop.f32.mrb[63].mxu1  ;;  %v4393_v29 = vld [vmem:[%s11018_s6 + $0xc0] sm:$0xff] }
 0x562   :  { %4320 = vmatprep.mubr.bf16.mxu0 %v11085_v59  ;;  %6712 = vmatprep.mubr.msk.bf16.mxu1 %vm8028_vm0, %v11084_v7  ;;  %v4397_v8 = vld [vmem:[%s11018_s6 + $0xe0] sm:$0xff]  ;;  %v4396_v41 = vld [vmem:[%s11018_s6 + $0xd8] sm:$0xff] }
 0x563   :  { %5795 = vst [vmem:[%s11026_s10 + $0x18] sm:$0xff] %v3555_v14  ;;  %4289 = vmatpush1.bf16.msra.mxu0 %v10268_v38  ;;  %6709 = vmatpush3.bf16.msra.mxu1 %v7843_v16  ;;  %v10407_v14 = vpack.c.bf16 %v4392_v28, %v4389_v2  ;;  %v10417_v45 = vpack.c.bf16 %v4397_v8, %v4394_v11  ;;  %v4411_v2 = vld [vmem:[%s11018_s6 + $0x150] sm:$0xff]  ;;  %v4414_v28 = vld [vmem:[%s11018_s6 + $0x168] sm:$0xff]  ;;  %v4413_v8 = vld [vmem:[%s11018_s6 + $0x160] sm:$0xff] }
 0x564   :  { %4290 = vmatprep.subr.bf16.mxu0 %v10278_v49  ;;  %6710 = vmatprep.subr.bf16.mxu1 %v11084_v7  ;;  %v10425_v16 = vpack.c.bf16 %v4396_v41, %v4393_v29  ;;  %v10509_v11 = vpack.c.bf16 %v4414_v28, %v4411_v2  ;;  %v4416_v29 = vld [vmem:[%s11018_s6 + $0x178] sm:$0xff] }
 0x565   :  { %v10519_v41 = vpack.c.bf16 %v4416_v29, %v4413_v8 }
 0x567   :  { %4291 = vmatpush1.bf16.msra.mxu0 %v10283_v63  ;;  %6711 = vmatpush3.bf16.msra.mxu1 %v7847_v32  ;;  %v4395_v32 = vld [vmem:[%s11018_s6 + $0xd0] sm:$0xff] }
 0x568   :  { %7584 = vmatprep.subr.bf16.mxu1 %v11077_v15  ;;  %7553 = vmatprep.subr.bf16.mxu0 %v10300_v50  ;;  %v10435_v39 = vpack.c.bf16 %v4398_v5, %v4395_v32  ;;  %v10526_v32 = vld [vmem:[%s11020_s3 + $0x4] ss:$12 sps:$4 sm:$0xff]   ;;  %v3637_v5 = vadd.f32 %v10254_v31, %v8692_v51 }
 0x56a   :  { %5829 = vmatmul.mubr.msk.bf16.vlgmr.msra.gmra.mrb[72].mxu0 %vm169_vm1, %v5822_v34  ;;  %6713 = vmatmul.mubr.msk.bf16.vlgmr.msra.gmra.mrb[72].mxu1 %vm169_vm1, %v5822_v34  ;;  %v4400_v34 = vld [vmem:[%s11018_s6 + $0xf8] sm:$0xff] }
 0x56b   :  { %4481 = vmatprep.mubr.f32.mxu0 %v11084_v7  ;;  %7555 = vmatpush1.bf16.msra.mxu0 %v10309_v9  ;;  %v10448_v27 = vpack.c.bf16 %v4403_v42, %v4400_v34  ;;  %v3639_v34 = vadd.f32 %v10256_v24, %v8694_v52 }
 0x56c   :  { %7586 = vmatpush3.bf16.msra.mxu1 %v10319_v19  ;;  %6748 = vmatprep.mubr.msk.f32.mxu1 %vm8028_vm0, %v11084_v7 }
 0x56d   :  { %7587 = vmatprep.subr.bf16.mxu1 %v11077_v15  ;;  %7557 = vmatprep.subr.bf16.mxu0 %v10331_v43 }
 0x56f   :  { %7559 = vmatpush1.bf16.msra.mxu0 %v10341_v10 }
 0x570   :  { %7589 = vmatpush3.bf16.msra.mxu1 %v10351_v61  ;;  %7561 = vmatprep.subr.bf16.mxu0 %v10361_v47 }
 0x571   :  { %7590 = vmatprep.subr.bf16.mxu1 %v11077_v15 }
 0x573   :  { %7563 = vmatpush1.bf16.msra.mxu0 %v10369_v53 }
 0x574   :  { %7592 = vmatpush3.bf16.msra.mxu1 %v10379_v35  ;;  %7565 = vmatprep.subr.bf16.mxu0 %v10389_v36 }
 0x575   :  { %7593 = vmatprep.subr.bf16.mxu1 %v11077_v15 }
 0x577   :  { %7567 = vmatpush1.bf16.msra.mxu0 %v10397_v37 }
 0x578   :  { %7595 = vmatpush3.bf16.msra.mxu1 %v10407_v14  ;;  %7569 = vmatprep.subr.bf16.mxu0 %v10417_v45 }
 0x579   :  { %7596 = vmatprep.subr.bf16.mxu1 %v11077_v15 }
 0x57b   :  { %7571 = vmatpush1.bf16.msra.mxu0 %v10425_v16 }
 0x57c   :  { %7598 = vmatpush3.bf16.msra.mxu1 %v10435_v39  ;;  %7573 = vmatprep.subr.bf16.mxu0 %v10448_v27 }
 0x57d   :  { %7599 = vmatprep.subr.bf16.mxu1 %v11077_v15 }
 0x57f   :  { %7575 = vmatpush1.bf16.msra.mxu0 %v10459_v4 }
 0x580   :  { %7601 = vmatpush3.bf16.msra.mxu1 %v10462_v33  ;;  %7577 = vmatprep.subr.bf16.mxu0 %v10471_v18 }
 0x581   :  { %7602 = vmatprep.subr.bf16.mxu1 %v11077_v15 }
 0x583   :  { %7579 = vmatpush1.bf16.msra.mxu0 %v10482_v12 }
 0x584   :  { %7604 = vmatpush3.bf16.msra.mxu1 %v10491_v30  ;;  %7581 = vmatprep.subr.bf16.mxu0 %v10501_v48 }
 0x585   :  { %7605 = vmatprep.subr.bf16.mxu1 %v11077_v15 }
 0x587   :  { %7583 = vmatpush1.bf16.msra.mxu0 %v10509_v11 }
 0x588   :  { %7607 = vmatpush3.bf16.msra.mxu1 %v10519_v41  ;;  %4625 = vmatprep.subr.bf16.mxu0 %v10526_v32 }
 0x589   :  { %6751 = vmatprep.subr.bf16.mxu1 %v11084_v7 }
 0x60c   :  { %v3797_v42 = vpop.f32.mrb[64].mxu0  ;;  %v3868_v40 = vpop.f32.mrb[64].mxu1 }
 0x60d   :  { %v3872_v58 = vadd.f32 %v3797_v42, %v3637_v5  ;;  %v3799_v57 = vpop.f32.mrb[65].mxu0  ;;  %v6664_v62 = vpop.f32.mrb[65].mxu1 }
 0x60e   :  { %v3879_v3 = vadd.f32 %v3799_v57, %v3639_v34  ;;  %v3886_v34 = vadd.f32 %v10162_v56, %v3868_v40 }
 0x60f   :  { %v5805_v1 = vmul.f32 -1.442695, %v3872_v58  ;;  %v3678_v58 = vadd.f32 %v10258_v6, %v8708_v22 }
 0x610   :  { %v5806_v21 = vmul.f32 -1.442695, %v3879_v3 }
 0x611   :  { %7960 = vpow2.f32 %v5805_v1 }
 0x612   :  { %7962 = vpow2.f32 %v5806_v21 }
 0x614   :  { %v3973_v20 = vpop.f32.mrb[68].mxu0  ;;  %v10534_v46 = vpop.f32.mrb[68].mxu1 }
 0x615   :  { %v3975_v0 = vpop.f32.mrb[69].mxu0  ;;  %v6671_v23 = vpop.f32.mrb[69].mxu1  ;;  %v3974_v1 = vadd.f32 %v3973_v20, %v8715_v13  ;;  %v10547_v20 = vld [vmem:[%s11020_s3] ss:$12 sps:$4 sm:$0xff]  }
 0x616   :  { %v3977_v26 = vpop.f32.mrb[70].mxu0  ;;  %v4017_v2 = vpop.f32.mrb[70].mxu1  ;;  %v3976_v21 = vadd.f32 %v3975_v0, %v8717_v17  ;;  %v7851_v0 = vld [vmem:[%s11020_s3 + $0x8] ss:$12 sps:$4 sm:$0xff]  }
 0x617   :  { %v3978_v31 = vpop.f32.mrb[71].mxu0  ;;  %v6672_v28 = vpop.f32.mrb[71].mxu1 }
 0x61b   :  { %v7961_v24 = vpop.eup %7960 }
 0x61c   :  { %v3876_v8 = vadd.f32 1.0, %v7961_v24  ;;  %v7963_v29 = vpop.eup %7962 }
 0x61d   :  { %v3883_v5 = vadd.f32 1.0, %v7963_v29 }
 0x61e   :  { %7964 = vrcp.f32 %v3876_v8 }
 0x61f   :  { %7966 = vrcp.f32 %v3883_v5 }
 0x628   :  { %v7965_v42 = vpop.eup %7964 }
 0x629   :  { %v3887_v57 = vmul.f32 %v7965_v42, %v3886_v34  ;;  %v7967_v3 = vpop.eup %7966  ;;  %v10557_v34 = vld [vmem:[%s11020_s3 + $0x1c] ss:$12 sps:$4 sm:$0xff]  }
 0x62a   :  { %v3890_v40 = vsub.f32 1.0, %v7967_v3  ;;  %v3892_v29 = vmul.f32 %v7967_v3, %v10173_v44  ;;  %v5818_v44 = vld [vmem:[%s11026_s10 + $0x28] sm:$0xff]  ;;  %v10575_v3 = vld [vmem:[%s11020_s3 + $0x18] ss:$12 sps:$4 sm:$0xff]  }
 0x62b   :  { %v3888_v62 = vadd.f32 %v3887_v57, %v3678_v58  ;;  %v4707_v42 = vld [vmem:[%s11021_s7 + $0x8] sm:$0xff]  ;;  %v4710_v58 = vld [vmem:[%s11021_s7 + $0x20] sm:$0xff] }
 0x62d   :  { %7968 = vtanh.f32 %v3888_v62 }
 0x634   :  { %v4134_v23 = vpop.f32.mrb[66].mxu0  ;;  %v10541_v26 = vpop.f32.mrb[66].mxu1 }
 0x635   :  { %v4209_v2 = vadd.f32 %v4134_v23, %v3974_v1  ;;  %v4136_v31 = vpop.f32.mrb[67].mxu0  ;;  %v6707_v28 = vpop.f32.mrb[67].mxu1  ;;  %v7855_v1 = vld [vmem:[%s11020_s3 + $0x20] ss:$12 sps:$4 sm:$0xff]   ;;  %v10588_v23 = vpack.c.bf16 %v4710_v58, %v4707_v42  ;;  %v4717_v58 = vld [vmem:[%s11021_s7 + $0x58] sm:$0xff] }
 0x636   :  { %v4216_v56 = vadd.f32 %v4136_v31, %v3976_v21  ;;  %v4706_v21 = vld [vmem:[%s11021_s7] sm:$0xff]  ;;  %v4708_v31 = vld [vmem:[%s11021_s7 + $0x10] sm:$0xff]  ;;  %v4711_v28 = vld [vmem:[%s11021_s7 + $0x28] sm:$0xff] }
 0x637   :  { %v7969_v24 = vpop.eup %7968  ;;  %v5816_v8 = vmul.f32 -1.442695, %v4209_v2  ;;  %v4709_v2 = vld [vmem:[%s11021_s7 + $0x18] sm:$0xff]  ;;  %v4714_v42 = vld [vmem:[%s11021_s7 + $0x40] sm:$0xff] }
 0x638   :  { %v3891_v6 = vmul.f32 %v7969_v24, %v3890_v40  ;;  %v5817_v57 = vmul.f32 -1.442695, %v4216_v56  ;;  %v4713_v56 = vld [vmem:[%s11021_s7 + $0x38] sm:$0xff]  ;;  %v4716_v40 = vld [vmem:[%s11021_s7 + $0x50] sm:$0xff]  ;;  %v5833_v24 = vld [vmem:[%s11022_s1 + $0x4] sm:$0xf] }
 0x639   :  { %7970 = vpow2.f32 %v5816_v8  ;;  %v10612_v8 = vpack.c.bf16 %v4709_v2, %v4706_v21 }
 0x63a   :  { %v10552_v5 = vadd.f32 %v3892_v29, %v3891_v6  ;;  %7972 = vpow2.f32 %v5817_v57  ;;  %v10614_v6 = vpack.c.bf16 %v4711_v28, %v4708_v31  ;;  %v4712_v29 = vld [vmem:[%s11021_s7 + $0x30] sm:$0xff]  ;;  %v10644_v31 = vpack.c.bf16 %v4717_v58, %v4714_v42  ;;  %v4718_v28 = vld [vmem:[%s11021_s7 + $0x60] sm:$0xff] }
 0x63b   :  { %v4728_v42 = vld [vmem:[%s11021_s7 + $0xb0] sm:$0xff] }
 0x63c   :  { %v4235_v62 = vadd.f32 %v5818_v44, %v10552_v5  ;;  %4482 = vmatmul.mubr.f32.vlgmr.msra.gmra.mrb[76].mxu0 %v10552_v5  ;;  %6749 = vmatmul.mubr.f32.vlgmr.msra.gmra.mrb[76].mxu1 %v10552_v5  ;;  %v4715_v44 = vld [vmem:[%s11021_s7 + $0x48] sm:$0xff]  ;;  %11125 = vst [vmem:[#allocation4_spill] sm:$0xff] %v10644_v31 }
 0x63d   :  { %4626 = vmatpush1.bf16.msra.mxu0 %v10547_v20  ;;  %6752 = vmatpush3.bf16.msra.mxu1 %v7851_v0  ;;  %v10621_v0 = vpack.c.bf16 %v4716_v40, %v4713_v56  ;;  %v10642_v2 = vpack.c.bf16 %v4715_v44, %v4712_v29  ;;  %v4721_v40 = vld [vmem:[%s11021_s7 + $0x78] sm:$0xff]  ;;  %v4723_v29 = vld [vmem:[%s11021_s7 + $0x88] sm:$0xff] }
 0x63e   :  { %5819 = vst [vmem:[%s11026_s10 + $0x28] sm:$0xff] %v4235_v62  ;;  %4627 = vmatprep.subr.bf16.mxu0 %v10557_v34  ;;  %6753 = vmatprep.subr.bf16.mxu1 %v11084_v7  ;;  %v4719_v62 = vld [vmem:[%s11021_s7 + $0x68] sm:$0xff]  ;;  %v4725_v44 = vld [vmem:[%s11021_s7 + $0x98] sm:$0xff]  ;;  %v10673_v58 = vpack.c.bf16 %v4721_v40, %v4718_v28  ;;  %v4726_v28 = vld [vmem:[%s11021_s7 + $0xa0] sm:$0xff] }
 0x63f   :  { %4657 = vmatprep.mubr.bf16.mxu0 %v11085_v59  ;;  %6755 = vmatprep.mubr.msk.bf16.mxu1 %vm8028_vm0, %v11084_v7  ;;  %11123 = vst [vmem:[#allocation2_spill] sm:$0xff] %v10621_v0  ;;  %11124 = vst [vmem:[#allocation3_spill] sm:$0xff] %v10642_v2  ;;  %v4729_v40 = vld [vmem:[%s11021_s7 + $0xb8] sm:$0xff] }
 0x640   :  { %11127 = vst [vmem:[#allocation6_spill] sm:$0xff] %v10673_v58 }
 0x641   :  { %4628 = vmatpush1.bf16.msra.mxu0 %v10575_v3  ;;  %6754 = vmatpush3.bf16.msra.mxu1 %v7855_v1  ;;  %v4722_v1 = vld [vmem:[%s11021_s7 + $0x80] sm:$0xff] }
 0x642   :  { %7609 = vmatprep.subr.bf16.mxu0 %v10588_v23  ;;  %7640 = vmatprep.subr.bf16.mxu1 %v11077_v15  ;;  %v10651_v56 = vpack.c.bf16 %v4722_v1, %v4719_v62  ;;  %v4724_v62 = vld [vmem:[%s11021_s7 + $0x90] sm:$0xff] }
 0x643   :  { %v7971_v57 = vpop.eup %7970 }
 0x644   :  { %v4213_v21 = vadd.f32 1.0, %v7971_v57  ;;  %5840 = vmatmul.mubr.msk.bf16.vlgmr.msra.gmra.mrb[80].mxu0 %vm169_vm1, %v5833_v24  ;;  %6756 = vmatmul.mubr.msk.bf16.vlgmr.msra.gmra.mrb[80].mxu1 %vm169_vm1, %v5833_v24  ;;  %11126 = vst [vmem:[#allocation5_spill] sm:$0xff] %v10651_v56  ;;  %v4720_v24 = vld [vmem:[%s11021_s7 + $0x70] sm:$0xff]  ;;  %v7973_v1 = vpop.eup %7972 }
 0x645   :  { %7611 = vmatpush1.bf16.msra.mxu0 %v10612_v8  ;;  %7642 = vmatpush3.bf16.msra.mxu1 %v10614_v6  ;;  %v10675_v57 = vpack.c.bf16 %v4723_v29, %v4720_v24  ;;  %v4731_v24 = vld [vmem:[%s11021_s7 + $0xc8] sm:$0xff]  ;;  %v4734_v29 = vld [vmem:[%s11021_s7 + $0xe0] sm:$0xff] }
 0x646   :  { %7974 = vrcp.f32 %v4213_v21  ;;  %7613 = vmatprep.subr.bf16.mxu0 %v10621_v0  ;;  %7643 = vmatprep.subr.bf16.mxu1 %v11077_v15  ;;  %v10682_v21 = vpack.c.bf16 %v4728_v42, %v4725_v44  ;;  %v4220_v44 = vadd.f32 1.0, %v7973_v1  ;;  %v4733_v0 = vld [vmem:[%s11021_s7 + $0xd8] sm:$0xff]  ;;  %v10713_v1 = vpack.c.bf16 %v4734_v29, %v4731_v24  ;;  %v4740_v24 = vld [vmem:[%s11021_s7 + $0x110] sm:$0xff] }
 0x647   :  { %4818 = vmatprep.mubr.f32.mxu0 %v11084_v7  ;;  %6791 = vmatprep.mubr.msk.f32.mxu1 %vm8028_vm0, %v11084_v7  ;;  %11128 = vst [vmem:[#allocation7_spill] sm:$0xff] %v10675_v57 }
 0x648   :  { %11129 = vst [vmem:[#allocation8_spill] sm:$0xff] %v10682_v21  ;;  %7976 = vrcp.f32 %v4220_v44  ;;  %v4741_v44 = vld [vmem:[%s11021_s7 + $0x118] sm:$0xff] }
 0x649   :  { %7615 = vmatpush1.bf16.msra.mxu0 %v10642_v2  ;;  %7645 = vmatpush3.bf16.msra.mxu1 %v10644_v31  ;;  %v4727_v2 = vld [vmem:[%s11021_s7 + $0xa8] sm:$0xff]  ;;  %v4730_v31 = vld [vmem:[%s11021_s7 + $0xc0] sm:$0xff] }
 0x64a   :  { %7617 = vmatprep.subr.bf16.mxu0 %v10651_v56  ;;  %7646 = vmatprep.subr.bf16.mxu1 %v11077_v15  ;;  %v10701_v42 = vpack.c.bf16 %v4727_v2, %v4724_v62  ;;  %v10703_v56 = vpack.c.bf16 %v4729_v40, %v4726_v28  ;;  %v4732_v2 = vld [vmem:[%s11021_s7 + $0xd0] sm:$0xff]  ;;  %v4735_v62 = vld [vmem:[%s11021_s7 + $0xe8] sm:$0xff]  ;;  %v4223_v28 = vadd.f32 %v10217_v60, %v10541_v26  ;;  %v4737_v40 = vld [vmem:[%s11021_s7 + $0xf8] sm:$0xff] }
 0x64b   :  { %v10735_v60 = vpack.c.bf16 %v4735_v62, %v4732_v2  ;;  %v4736_v26 = vld [vmem:[%s11021_s7 + $0xf0] sm:$0xff]  ;;  %v4743_v62 = vld [vmem:[%s11021_s7 + $0x128] sm:$0xff] }
 0x64d   :  { %7619 = vmatpush1.bf16.msra.mxu0 %v10673_v58  ;;  %7648 = vmatpush3.bf16.msra.mxu1 %v10675_v57  ;;  %v4015_v57 = vadd.f32 %v10534_v46, %v8767_v54  ;;  %11130 = vst [vmem:[#allocation9_spill] sm:$0xff] %v10735_v60  ;;  %v4739_v46 = vld [vmem:[%s11021_s7 + $0x108] sm:$0xff] }
 0x64e   :  { %7621 = vmatprep.subr.bf16.mxu0 %v10682_v21  ;;  %7649 = vmatprep.subr.bf16.mxu1 %v11077_v15  ;;  %v10729_v21 = vpack.c.bf16 %v4733_v0, %v4730_v31  ;;  %v10742_v0 = vpack.c.bf16 %v4740_v24, %v4737_v40  ;;  %v4738_v31 = vld [vmem:[%s11021_s7 + $0x100] sm:$0xff]  ;;  %v10761_v40 = vpack.c.bf16 %v4739_v46, %v4736_v26  ;;  %v4744_v26 = vld [vmem:[%s11021_s7 + $0x130] sm:$0xff]  ;;  %v4747_v46 = vld [vmem:[%s11021_s7 + $0x148] sm:$0xff] }
 0x64f   :  { %v10763_v24 = vpack.c.bf16 %v4741_v44, %v4738_v31  ;;  %v4749_v31 = vld [vmem:[%s11021_s7 + $0x158] sm:$0xff]  ;;  %v4752_v44 = vld [vmem:[%s11021_s7 + $0x170] sm:$0xff] }
 0x650   :  { %v7975_v29 = vpop.eup %7974  ;;  %11131 = vst [vmem:[#allocation10_spill] sm:$0xff] %v10742_v0  ;;  %11132 = vst [vmem:[#allocation11_spill] sm:$0xff] %v10761_v40 }
 0x651   :  { %v4224_v58 = vmul.f32 %v7975_v29, %v4223_v28  ;;  %7623 = vmatpush1.bf16.msra.mxu0 %v10701_v42  ;;  %7651 = vmatpush3.bf16.msra.mxu1 %v10703_v56  ;;  %v4746_v28 = vld [vmem:[%s11021_s7 + $0x140] sm:$0xff]  ;;  %11133 = vst [vmem:[#allocation12_spill] sm:$0xff] %v10763_v24  ;;  %v4745_v29 = vld [vmem:[%s11021_s7 + $0x138] sm:$0xff] }
 0x652   :  { %7625 = vmatprep.subr.bf16.mxu0 %v10713_v1  ;;  %7652 = vmatprep.subr.bf16.mxu1 %v11077_v15 }
 0x653   :  { %v4225_v2 = vadd.f32 %v4224_v58, %v4015_v57  ;;  %v4742_v58 = vld [vmem:[%s11021_s7 + $0x120] sm:$0xff]  ;;  %v10770_v57 = vpack.c.bf16 %v4746_v28, %v4743_v62  ;;  %v10791_v62 = vpack.c.bf16 %v4747_v46, %v4744_v26  ;;  %v4748_v28 = vld [vmem:[%s11021_s7 + $0x150] sm:$0xff]  ;;  %v7977_v26 = vpop.eup %7976 }
 0x655   :  { %7978 = vtanh.f32 %v4225_v2  ;;  %7627 = vmatpush1.bf16.msra.mxu0 %v10729_v21  ;;  %7654 = vmatpush3.bf16.msra.mxu1 %v10735_v60  ;;  %11134 = vst [vmem:[#allocation13_spill] sm:$0xff] %v10770_v57  ;;  %v10789_v2 = vpack.c.bf16 %v4745_v29, %v4742_v58  ;;  %v4750_v58 = vld [vmem:[%s11021_s7 + $0x160] sm:$0xff]  ;;  %v4753_v29 = vld [vmem:[%s11021_s7 + $0x178] sm:$0xff]  ;;  %v4229_v60 = vmul.f32 %v7977_v26, %v10241_v25  ;;  %v4322_v25 = vpop.f32.mrb[72].mxu0 }
 0x656   :  { %7629 = vmatprep.subr.bf16.mxu0 %v10742_v0  ;;  %7655 = vmatprep.subr.bf16.mxu1 %v11077_v15  ;;  %v10798_v0 = vpack.c.bf16 %v4752_v44, %v4749_v31  ;;  %v10813_v31 = vpack.c.bf16 %v4753_v29, %v4750_v58  ;;  %v4227_v44 = vsub.f32 1.0, %v7977_v26 }
 0x657   :  { %11135 = vst [vmem:[#allocation14_spill] sm:$0xff] %v10789_v2 }
 0x659   :  { %7631 = vmatpush1.bf16.msra.mxu0 %v10761_v40  ;;  %7657 = vmatpush3.bf16.msra.mxu1 %v10763_v24  ;;  %v4751_v40 = vld [vmem:[%s11021_s7 + $0x168] sm:$0xff] }
 0x65a   :  { %7633 = vmatprep.subr.bf16.mxu0 %v10770_v57  ;;  %7658 = vmatprep.subr.bf16.mxu1 %v11077_v15  ;;  %v10811_v46 = vpack.c.bf16 %v4751_v40, %v4748_v28  ;;  %v5820_v40 = vld [vmem:[%s11026_s10 + $0x10] sm:$0xff] }
 0x65d   :  { %7635 = vmatpush1.bf16.msra.mxu0 %v10789_v2  ;;  %7660 = vmatpush3.bf16.msra.mxu1 %v10791_v62 }
 0x65e   :  { %7637 = vmatprep.subr.bf16.mxu0 %v10798_v0  ;;  %7661 = vmatprep.subr.bf16.mxu1 %v11077_v15 }
 0x65f   :  { %v7979_v57 = vpop.eup %7978 }
 0x660   :  { %v4228_v24 = vmul.f32 %v7979_v57, %v4227_v44 }
 0x661   :  { %7639 = vmatpush1.bf16.msra.mxu0 %v10811_v46  ;;  %7663 = vmatpush3.bf16.msra.mxu1 %v10813_v31 }
 0x662   :  { %v10820_v2 = vadd.f32 %v4229_v60, %v4228_v24  ;;  %4974 = vmatprep.subr.bf16.mxu0 %v10263_v55  ;;  %6794 = vmatprep.subr.bf16.mxu1 %v11084_v7  ;;  %v4324_v55 = vpop.f32.mrb[73].mxu0  ;;  %v10840_v24 = vpop.f32.mrb[72].mxu1 }
 0x663   :  { %v4326_v60 = vpop.f32.mrb[74].mxu0  ;;  %v6714_v57 = vpop.f32.mrb[73].mxu1  ;;  %v4364_v44 = vadd.f32 %v10840_v24, %v8708_v22 }
 0x664   :  { %v4241_v28 = vadd.f32 %v5820_v40, %v10820_v2  ;;  %4819 = vmatmul.mubr.f32.vlgmr.msra.gmra.mrb[78].mxu0 %v10820_v2  ;;  %6792 = vmatmul.mubr.f32.vlgmr.msra.gmra.mrb[78].mxu1 %v10820_v2  ;;  %v4366_v58 = vpop.f32.mrb[74].mxu1 }
 0x665   :  { %4975 = vmatpush1.bf16.msra.mxu0 %v10268_v38  ;;  %5006 = vmatprep.mubr.bf16.mxu0 %v11085_v59  ;;  %v4327_v38 = vpop.f32.mrb[75].mxu0  ;;  %v6715_v29 = vpop.f32.mrb[75].mxu1 }
 0x666   :  { %5821 = vst [vmem:[%s11026_s10 + $0x10] sm:$0xff] %v4241_v28  ;;  %4976 = vmatprep.subr.bf16.mxu0 %v10278_v49  ;;  %6798 = vmatprep.mubr.msk.bf16.mxu1 %vm8028_vm0, %v11084_v7  ;;  %v7856_v49 = vld [vmem:[%s11017_s2 + $0x8] ss:$12 sps:$4 sm:$0xff]  }
 0x667   :  { %6795 = vmatpush3.bf16.msra.mxu1 %v7856_v49 }
 0x668   :  { %6796 = vmatprep.subr.bf16.mxu1 %v11084_v7 }
 0x669   :  { %4977 = vmatpush1.bf16.msra.mxu0 %v10283_v63  ;;  %v7857_v63 = vld [vmem:[%s11017_s2 + $0x20] ss:$12 sps:$4 sm:$0xff]  }
 0x66a   :  { %7665 = vmatprep.subr.bf16.mxu0 %v10300_v50  ;;  %v5848_v50 = vld [vmem:[%s11019_s0 + $0x1c] sm:$0xf] }
 0x66b   :  { %6797 = vmatpush3.bf16.msra.mxu1 %v7857_v63 }
 0x66c   :  { %5855 = vmatmul.mubr.msk.bf16.vlgmr.msra.gmra.mrb[84].mxu0 %vm169_vm1, %v5848_v50  ;;  %7696 = vmatprep.subr.bf16.mxu1 %v11077_v15 }
 0x66d   :  { %7667 = vmatpush1.bf16.msra.mxu0 %v10309_v9  ;;  %5167 = vmatprep.mubr.f32.mxu0 %v11084_v7  ;;  %v4323_v9 = vadd.f32 %v4322_v25, %v8692_v51 }
 0x66e   :  { %6799 = vmatmul.mubr.msk.bf16.vlgmr.msra.gmra.mrb[84].mxu1 %vm169_vm1, %v5848_v50  ;;  %7669 = vmatprep.subr.bf16.mxu0 %v10331_v43 }
 0x66f   :  { %7698 = vmatpush3.bf16.msra.mxu1 %v10319_v19  ;;  %6834 = vmatprep.mubr.msk.f32.mxu1 %vm8028_vm0, %v11084_v7  ;;  %v4325_v19 = vadd.f32 %v4324_v55, %v8694_v52 }
 0x670   :  { %7699 = vmatprep.subr.bf16.mxu1 %v11077_v15 }
 0x671   :  { %7671 = vmatpush1.bf16.msra.mxu0 %v10341_v10 }
 0x672   :  { %7673 = vmatprep.subr.bf16.mxu0 %v10361_v47 }
 0x673   :  { %7701 = vmatpush3.bf16.msra.mxu1 %v10351_v61 }
 0x674   :  { %7702 = vmatprep.subr.bf16.mxu1 %v11077_v15 }
 0x675   :  { %7675 = vmatpush1.bf16.msra.mxu0 %v10369_v53 }
 0x676   :  { %7677 = vmatprep.subr.bf16.mxu0 %v10389_v36 }
 0x677   :  { %7704 = vmatpush3.bf16.msra.mxu1 %v10379_v35 }
 0x678   :  { %7705 = vmatprep.subr.bf16.mxu1 %v11077_v15 }
 0x679   :  { %7679 = vmatpush1.bf16.msra.mxu0 %v10397_v37 }
 0x67a   :  { %7681 = vmatprep.subr.bf16.mxu0 %v10417_v45 }
 0x67b   :  { %7707 = vmatpush3.bf16.msra.mxu1 %v10407_v14 }
 0x67c   :  { %7708 = vmatprep.subr.bf16.mxu1 %v11077_v15 }
 0x67d   :  { %7683 = vmatpush1.bf16.msra.mxu0 %v10425_v16 }
 0x67e   :  { %7685 = vmatprep.subr.bf16.mxu0 %v10448_v27 }
 0x67f   :  { %7710 = vmatpush3.bf16.msra.mxu1 %v10435_v39 }
 0x680   :  { %7711 = vmatprep.subr.bf16.mxu1 %v11077_v15 }
 0x681   :  { %7687 = vmatpush1.bf16.msra.mxu0 %v10459_v4 }
 0x682   :  { %7689 = vmatprep.subr.bf16.mxu0 %v10471_v18 }
 0x683   :  { %7713 = vmatpush3.bf16.msra.mxu1 %v10462_v33 }
 0x684   :  { %7714 = vmatprep.subr.bf16.mxu1 %v11077_v15 }
 0x685   :  { %7691 = vmatpush1.bf16.msra.mxu0 %v10482_v12 }
 0x686   :  { %7693 = vmatprep.subr.bf16.mxu0 %v10501_v48 }
 0x687   :  { %7716 = vmatpush3.bf16.msra.mxu1 %v10491_v30 }
 0x688   :  { %7717 = vmatprep.subr.bf16.mxu1 %v11077_v15 }
 0x689   :  { %7695 = vmatpush1.bf16.msra.mxu0 %v10509_v11 }
 0x68a   :  { %5310 = vmatprep.subr.bf16.mxu0 %v10526_v32 }
 0x68b   :  { %7719 = vmatpush3.bf16.msra.mxu1 %v10519_v41  ;;  %v10897_v41 = vld [vmem:[%s11024_s8] ss:$0 sm:$0xff] }
 0x68c   :  { %6837 = vmatprep.subr.bf16.mxu1 %v11084_v7 }
 0x70f   :  { %v4483_v43 = vpop.f32.mrb[76].mxu0  ;;  %v4554_v10 = vpop.f32.mrb[76].mxu1 }
 0x710   :  { %v4558_v61 = vadd.f32 %v4483_v43, %v4323_v9  ;;  %v4485_v47 = vpop.f32.mrb[77].mxu0  ;;  %v6750_v53 = vpop.f32.mrb[77].mxu1  ;;  %v4572_v32 = vadd.f32 %v10897_v41, %v4554_v10  ;;  %v7858_v10 = vld [vmem:[%s11020_s3 + $0x8] ss:$12 sps:$4 sm:$0xff]  }
 0x711   :  { %v4565_v35 = vadd.f32 %v4485_v47, %v4325_v19  ;;  %v5844_v47 = vld [vmem:[%s11026_s10 + $0x30] sm:$0xff] }
 0x712   :  { %v5831_v36 = vmul.f32 -1.442695, %v4558_v61 }
 0x713   :  { %v5832_v37 = vmul.f32 -1.442695, %v4565_v35 }
 0x714   :  { %7980 = vpow2.f32 %v5831_v36 }
 0x715   :  { %7982 = vpow2.f32 %v5832_v37 }
 0x717   :  { %v4659_v14 = vpop.f32.mrb[80].mxu0  ;;  %v10892_v45 = vpop.f32.mrb[80].mxu1 }
 0x718   :  { %v4661_v16 = vpop.f32.mrb[81].mxu0  ;;  %v6757_v39 = vpop.f32.mrb[81].mxu1  ;;  %v4660_v55 = vadd.f32 %v4659_v14, %v8715_v13  ;;  %v11139_v14 = vld [vmem:[#allocation5_spill] sm:$0xff] }
 0x719   :  { %v4663_v27 = vpop.f32.mrb[82].mxu0  ;;  %v4703_v4 = vpop.f32.mrb[82].mxu1  ;;  %v4662_v60 = vadd.f32 %v4661_v16, %v8717_v17  ;;  %v11141_v16 = vld [vmem:[#allocation7_spill] sm:$0xff]  ;;  %v11142_v39 = vld [vmem:[#allocation8_spill] sm:$0xff] }
 0x71a   :  { %v4664_v33 = vpop.f32.mrb[83].mxu0  ;;  %v6758_v18 = vpop.f32.mrb[83].mxu1 }
 0x71b   :  { %v4701_v33 = vadd.f32 %v10892_v45, %v8767_v54  ;;  %v11145_v45 = vld [vmem:[#allocation11_spill] sm:$0xff] }
 0x71e   :  { %v7981_v12 = vpop.eup %7980 }
 0x71f   :  { %v4562_v30 = vadd.f32 1.0, %v7981_v12  ;;  %v7983_v48 = vpop.eup %7982 }
 0x720   :  { %v4569_v11 = vadd.f32 1.0, %v7983_v48  ;;  %v11144_v48 = vld [vmem:[#allocation10_spill] sm:$0xff] }
 0x721   :  { %7984 = vrcp.f32 %v4562_v30  ;;  %v11143_v30 = vld [vmem:[#allocation9_spill] sm:$0xff] }
 0x722   :  { %7986 = vrcp.f32 %v4569_v11  ;;  %v11146_v11 = vld [vmem:[#allocation12_spill] sm:$0xff] }
 0x72b   :  { %v7985_v26 = vpop.eup %7984 }
 0x72c   :  { %v4573_v40 = vmul.f32 %v7985_v26, %v4572_v32  ;;  %v7987_v25 = vpop.eup %7986 }
 0x72d   :  { %v4576_v50 = vsub.f32 1.0, %v7987_v25  ;;  %v4578_v24 = vmul.f32 %v7987_v25, %v10552_v5  ;;  %v7859_v5 = vld [vmem:[%s11020_s3 + $0x20] ss:$12 sps:$4 sm:$0xff]  }
 0x72e   :  { %v4574_v28 = vadd.f32 %v4573_v40, %v4364_v44 }
 0x730   :  { %7988 = vtanh.f32 %v4574_v28  ;;  %v5846_v28 = vld [vmem:[%s11026_s10 + $0x8] sm:$0xff] }
 0x737   :  { %v4820_v38 = vpop.f32.mrb[78].mxu0  ;;  %v4891_v57 = vpop.f32.mrb[78].mxu1 }
 0x738   :  { %v4895_v58 = vadd.f32 %v4820_v38, %v4660_v55  ;;  %v4822_v29 = vpop.f32.mrb[79].mxu0  ;;  %v6793_v49 = vpop.f32.mrb[79].mxu1 }
 0x739   :  { %v4902_v63 = vadd.f32 %v4822_v29, %v4662_v60 }
 0x73a   :  { %v7989_v9 = vpop.eup %7988  ;;  %v5842_v19 = vmul.f32 -1.442695, %v4895_v58 }
 0x73b   :  { %v4577_v43 = vmul.f32 %v7989_v9, %v4576_v50  ;;  %v5843_v53 = vmul.f32 -1.442695, %v4902_v63 }
 0x73c   :  { %7990 = vpow2.f32 %v5842_v19 }
 0x73d   :  { %v10908_v61 = vadd.f32 %v4578_v24, %v4577_v43  ;;  %7992 = vpow2.f32 %v5843_v53 }
 0x73f   :  { %v4921_v35 = vadd.f32 %v5844_v47, %v10908_v61  ;;  %5168 = vmatmul.mubr.f32.vlgmr.msra.gmra.mrb[88].mxu0 %v10908_v61  ;;  %6835 = vmatmul.mubr.f32.vlgmr.msra.gmra.mrb[88].mxu1 %v10908_v61 }
 0x740   :  { %5311 = vmatpush1.bf16.msra.mxu0 %v10547_v20  ;;  %6838 = vmatpush3.bf16.msra.mxu1 %v7858_v10  ;;  %v5266_v20 = vld [vmem:[%s11022_s1] sm:$0xf] }
 0x741   :  { %5845 = vst [vmem:[%s11026_s10 + $0x30] sm:$0xff] %v4921_v35  ;;  %5312 = vmatprep.subr.bf16.mxu0 %v10557_v34  ;;  %6839 = vmatprep.subr.bf16.mxu1 %v11084_v7 }
 0x742   :  { %5342 = vmatprep.mubr.bf16.mxu0 %v11085_v59  ;;  %6841 = vmatprep.mubr.msk.bf16.mxu1 %vm8028_vm0, %v11084_v7  ;;  %v11136_v59 = vld [vmem:[#allocation2_spill] sm:$0xff] }
 0x744   :  { %5313 = vmatpush1.bf16.msra.mxu0 %v10575_v3  ;;  %6840 = vmatpush3.bf16.msra.mxu1 %v7859_v5  ;;  %v11137_v3 = vld [vmem:[#allocation3_spill] sm:$0xff] }
 0x745   :  { %7721 = vmatprep.subr.bf16.mxu0 %v10588_v23  ;;  %7752 = vmatprep.subr.bf16.mxu1 %v11077_v15  ;;  %v11138_v23 = vld [vmem:[#allocation4_spill] sm:$0xff] }
 0x746   :  { %v7991_v34 = vpop.eup %7990 }
 0x747   :  { %v4899_v36 = vadd.f32 1.0, %v7991_v34  ;;  %5865 = vmatmul.mubr.msk.bf16.vlgmr.msra.gmra.mrb[92].mxu0 %vm169_vm1, %v5266_v20  ;;  %6842 = vmatmul.mubr.msk.bf16.vlgmr.msra.gmra.mrb[92].mxu1 %vm169_vm1, %v5266_v20  ;;  %v7993_v37 = vpop.eup %7992 }
 0x748   :  { %7723 = vmatpush1.bf16.msra.mxu0 %v10612_v8  ;;  %7754 = vmatpush3.bf16.msra.mxu1 %v10614_v6  ;;  %v4906_v8 = vadd.f32 1.0, %v7993_v37  ;;  %v11140_v6 = vld [vmem:[#allocation6_spill] sm:$0xff] }
 0x749   :  { %7994 = vrcp.f32 %v4899_v36  ;;  %7725 = vmatprep.subr.bf16.mxu0 %v11136_v59  ;;  %7755 = vmatprep.subr.bf16.mxu1 %v11077_v15 }
 0x74a   :  { %5503 = vmatprep.mubr.f32.mxu0 %v11084_v7  ;;  %6877 = vmatprep.mubr.msk.f32.mxu1 %vm8028_vm0, %v11084_v7  ;;  %v10954_v7 = vld [vmem:[%s11027_s9] ss:$0 sm:$0xff]  ;;  %7996 = vrcp.f32 %v4906_v8 }
 0x74b   :  { %v4909_v27 = vadd.f32 %v10954_v7, %v4891_v57 }
 0x74c   :  { %7727 = vmatpush1.bf16.msra.mxu0 %v11137_v3  ;;  %7757 = vmatpush3.bf16.msra.mxu1 %v11138_v23 }
 0x74d   :  { %7729 = vmatprep.subr.bf16.mxu0 %v11139_v14  ;;  %7758 = vmatprep.subr.bf16.mxu1 %v11077_v15 }
 0x750   :  { %7731 = vmatpush1.bf16.msra.mxu0 %v11140_v6  ;;  %7760 = vmatpush3.bf16.msra.mxu1 %v11141_v16 }
 0x751   :  { %7733 = vmatprep.subr.bf16.mxu0 %v11142_v39  ;;  %7761 = vmatprep.subr.bf16.mxu1 %v11077_v15 }
 0x753   :  { %v7995_v4 = vpop.eup %7994 }
 0x754   :  { %v4910_v18 = vmul.f32 %v7995_v4, %v4909_v27  ;;  %7735 = vmatpush1.bf16.msra.mxu0 %v10701_v42  ;;  %7763 = vmatpush3.bf16.msra.mxu1 %v10703_v56  ;;  %v11147_v42 = vld [vmem:[#allocation13_spill] sm:$0xff]  ;;  %v7997_v56 = vpop.eup %7996 }
 0x755   :  { %7737 = vmatprep.subr.bf16.mxu0 %v10713_v1  ;;  %7764 = vmatprep.subr.bf16.mxu1 %v11077_v15  ;;  %v11148_v1 = vld [vmem:[#allocation14_spill] sm:$0xff]  ;;  %v4915_v44 = vmul.f32 %v7997_v56, %v10820_v2 }
 0x756   :  { %v4911_v12 = vadd.f32 %v4910_v18, %v4701_v33 }
 0x758   :  { %7998 = vtanh.f32 %v4911_v12  ;;  %7739 = vmatpush1.bf16.msra.mxu0 %v10729_v21  ;;  %7766 = vmatpush3.bf16.msra.mxu1 %v11143_v30  ;;  %v4913_v21 = vsub.f32 1.0, %v7997_v56 }
 0x759   :  { %7741 = vmatprep.subr.bf16.mxu0 %v11144_v48  ;;  %7767 = vmatprep.subr.bf16.mxu1 %v11077_v15 }
 0x75c   :  { %7743 = vmatpush1.bf16.msra.mxu0 %v11145_v45  ;;  %7769 = vmatpush3.bf16.msra.mxu1 %v11146_v11 }
 0x75d   :  { %7745 = vmatprep.subr.bf16.mxu0 %v11147_v42  ;;  %7770 = vmatprep.subr.bf16.mxu1 %v11077_v15 }
 0x760   :  { %7747 = vmatpush1.bf16.msra.mxu0 %v11148_v1  ;;  %7772 = vmatpush3.bf16.msra.mxu1 %v10791_v62 }
 0x761   :  { %7749 = vmatprep.subr.bf16.mxu0 %v10798_v0  ;;  %7773 = vmatprep.subr.bf16.mxu1 %v11077_v15  ;;  %v5008_v15 = vpop.f32.mrb[84].mxu0 }
 0x762   :  { %v7999_v32 = vpop.eup %7998  ;;  %v5010_v0 = vpop.f32.mrb[85].mxu0  ;;  %v5009_v38 = vadd.f32 %v5008_v15, %v8692_v51 }
 0x763   :  { %v4914_v26 = vmul.f32 %v7999_v32, %v4913_v21  ;;  %v5012_v2 = vpop.f32.mrb[86].mxu0  ;;  %v5011_v57 = vadd.f32 %v5010_v0, %v8694_v52 }
 0x764   :  { %7751 = vmatpush1.bf16.msra.mxu0 %v10811_v46  ;;  %7775 = vmatpush3.bf16.msra.mxu1 %v10813_v31  ;;  %v5049_v46 = vpop.f32.mrb[84].mxu1  ;;  %v5013_v31 = vpop.f32.mrb[87].mxu0 }
 0x765   :  { %v10978_v40 = vadd.f32 %v4915_v44, %v4914_v26  ;;  %v6800_v25 = vpop.f32.mrb[85].mxu1  ;;  %v5050_v37 = vadd.f32 %v5049_v46, %v8708_v22 }
 0x766   :  { %v5052_v55 = vpop.f32.mrb[86].mxu1 }
 0x767   :  { %v4927_v62 = vadd.f32 %v5846_v28, %v10978_v40  ;;  %5504 = vmatmul.mubr.f32.vlgmr.msra.gmra.mrb[90].mxu0 %v10978_v40  ;;  %6878 = vmatmul.mubr.f32.vlgmr.msra.gmra.mrb[90].mxu1 %v10978_v40  ;;  %v6801_v60 = vpop.f32.mrb[87].mxu1 }
 0x768   :  { %v5610_v60 = vld [vmem:[%s11026_s10] sm:$0xff] }
 0x769   :  { %5847 = vst [vmem:[%s11026_s10 + $0x8] sm:$0xff] %v4927_v62 }
 0x812   :  { %v5169_v58 = vpop.f32.mrb[88].mxu0  ;;  %v5240_v29 = vpop.f32.mrb[88].mxu1 }
 0x813   :  { %v5244_v49 = vadd.f32 %v5169_v58, %v5009_v38  ;;  %v5171_v63 = vpop.f32.mrb[89].mxu0  ;;  %v6836_v50 = vpop.f32.mrb[89].mxu1  ;;  %v5258_v3 = vadd.f32 %v10897_v41, %v5240_v29 }
 0x814   :  { %v5251_v9 = vadd.f32 %v5171_v63, %v5011_v57 }
 0x815   :  { %v5857_v19 = vmul.f32 -1.442695, %v5244_v49 }
 0x816   :  { %v5858_v43 = vmul.f32 -1.442695, %v5251_v9 }
 0x817   :  { %8000 = vpow2.f32 %v5857_v19 }
 0x818   :  { %8002 = vpow2.f32 %v5858_v43 }
 0x81a   :  { %v5344_v24 = vpop.f32.mrb[92].mxu0  ;;  %v5385_v10 = vpop.f32.mrb[92].mxu1 }
 0x81b   :  { %v5346_v47 = vpop.f32.mrb[93].mxu0  ;;  %v6843_v53 = vpop.f32.mrb[93].mxu1  ;;  %v5345_v16 = vadd.f32 %v5344_v24, %v8715_v13  ;;  %v5869_v13 = vld [vmem:[%s11026_s10 + $0x38] sm:$0xff]  ;;  %v5386_v28 = vadd.f32 %v5385_v10, %v8767_v54 }
 0x81c   :  { %v5348_v35 = vpop.f32.mrb[94].mxu0  ;;  %v5388_v5 = vpop.f32.mrb[94].mxu1  ;;  %v5347_v39 = vadd.f32 %v5346_v47, %v8717_v17 }
 0x81d   :  { %v5349_v20 = vpop.f32.mrb[95].mxu0  ;;  %v6844_v34 = vpop.f32.mrb[95].mxu1 }
 0x821   :  { %v8001_v51 = vpop.eup %8000 }
 0x822   :  { %v5248_v52 = vadd.f32 1.0, %v8001_v51  ;;  %v8003_v36 = vpop.eup %8002 }
 0x823   :  { %v5255_v59 = vadd.f32 1.0, %v8003_v36 }
 0x824   :  { %8004 = vrcp.f32 %v5248_v52 }
 0x825   :  { %8006 = vrcp.f32 %v5255_v59 }
 0x82e   :  { %v8005_v23 = vpop.eup %8004 }
 0x82f   :  { %v5259_v14 = vmul.f32 %v8005_v23, %v5258_v3  ;;  %v8007_v6 = vpop.eup %8006 }
 0x830   :  { %v5262_v30 = vsub.f32 1.0, %v8007_v6  ;;  %v5264_v22 = vmul.f32 %v8007_v6, %v10908_v61 }
 0x831   :  { %v5260_v8 = vadd.f32 %v5259_v14, %v5050_v37 }
 0x833   :  { %8008 = vtanh.f32 %v5260_v8 }
 0x83a   :  { %v5505_v27 = vpop.f32.mrb[90].mxu0  ;;  %v5576_v4 = vpop.f32.mrb[90].mxu1 }
 0x83b   :  { %v5580_v33 = vadd.f32 %v5505_v27, %v5345_v16  ;;  %v5507_v18 = vpop.f32.mrb[91].mxu0  ;;  %v6879_v12 = vpop.f32.mrb[91].mxu1  ;;  %v5594_v26 = vadd.f32 %v10954_v7, %v5576_v4 }
 0x83c   :  { %v5587_v48 = vadd.f32 %v5507_v18, %v5347_v39 }
 0x83d   :  { %v8009_v41 = vpop.eup %8008  ;;  %v5867_v45 = vmul.f32 -1.442695, %v5580_v33 }
 0x83e   :  { %v5263_v11 = vmul.f32 %v8009_v41, %v5262_v30  ;;  %v5868_v17 = vmul.f32 -1.442695, %v5587_v48 }
 0x83f   :  { %8010 = vpow2.f32 %v5867_v45 }
 0x840   :  { %v5265_v42 = vadd.f32 %v5264_v22, %v5263_v11  ;;  %8012 = vpow2.f32 %v5868_v17 }
 0x842   :  { %v5606_v56 = vadd.f32 %v5869_v13, %v5265_v42  ;;  %5613 = vst [vmem:[%s11028_s11] sm:$0xff] %v5265_v42 }
 0x844   :  { %5870 = vst [vmem:[%s11026_s10 + $0x38] sm:$0xff] %v5606_v56 }
 0x849   :  { %v8011_v1 = vpop.eup %8010 }
 0x84a   :  { %v5584_v21 = vadd.f32 1.0, %v8011_v1  ;;  %v8013_v61 = vpop.eup %8012 }
 0x84b   :  { %v5591_v32 = vadd.f32 1.0, %v8013_v61 }
 0x84c   :  { %8014 = vrcp.f32 %v5584_v21 }
 0x84d   :  { %8016 = vrcp.f32 %v5591_v32 }
 0x856   :  { %v8015_v44 = vpop.eup %8014 }
 0x857   :  { %v5595_v62 = vmul.f32 %v8015_v44, %v5594_v26  ;;  %v8017_v0 = vpop.eup %8016 }
 0x858   :  { %v5598_v2 = vsub.f32 1.0, %v8017_v0  ;;  %v5600_v25 = vmul.f32 %v8017_v0, %v10978_v40 }
 0x859   :  { %v5596_v15 = vadd.f32 %v5595_v62, %v5386_v28 }
 0x85b   :  { %8018 = vtanh.f32 %v5596_v15 }
 0x865   :  { %v8019_v46 = vpop.eup %8018 }
 0x866   :  { %v5599_v31 = vmul.f32 %v8019_v46, %v5598_v2 }
 0x868   :  { %v5601_v55 = vadd.f32 %v5600_v25, %v5599_v31 }
 0x86a   :  { %v5611_v38 = vadd.f32 %v5610_v60, %v5601_v55  ;;  %5871 = vst [vmem:[%s11028_s11 + $0x8] sm:$0xff] %v5601_v55 }
 0x86c   :  { %5612 = vst [vmem:[%s11026_s10] sm:$0xff] %v5611_v38 }

</bundles_post_ra>
